<compile_context>
chip_gen: v6e
topology: v6e:2x2x1
jax: 0.10.0
libtpu: 0.0.40
codegen_flags: <defaults>
</compile_context>

<pallas_src>
import jax
import jax.numpy as jnp
from jax.experimental import pallas as pl
from jax.experimental.pallas import tpu as pltpu


# ----------------------------- Pallas kernel -------------------------------
def first_stage_kernel(x_ref, w_enc_ref, b_enc_ref, w_fc_ref, b_fc_ref,
                       out_ref, lat_ref):
    # encoder: flattened image -> Linear -> tanh   (bf16 weight storage, f32 MXU acc)
    x = x_ref[...]                                           # (B, Dflat) f32
    w_enc = w_enc_ref[...].astype(jnp.float32)               # (Dflat, L)
    feat = jnp.tanh(
        jnp.dot(x, w_enc, preferred_element_type=jnp.float32) + b_enc_ref[...]
    )                                                        # (B, L) f32
    lat_ref[...] = feat                                      # latent = encoder output

    # conv_block (1x1 conv) already folded into w_fc / b_fc by the wrapper
    w_fc = w_fc_ref[...].astype(jnp.float32)                 # (L, N)
    out_ref[...] = (
        jnp.dot(feat, w_fc, preferred_element_type=jnp.float32) + b_fc_ref[...]
    )                                                        # (B, N) f32


# ------------------------------- wrapper ------------------------------------
def first_stage_pallas(x_img, w_enc, b_enc, conv_w, conv_b, w_fc_t, b_fc):
    """Fused forward:  encoder(flatten->linear->tanh) -> 1x1 conv -> fc.

    Returns (out (B,1,768), latent (B,1,512)) like First_Stage.forward.
    """
    B = x_img.shape[0]
    x_flat = x_img.reshape(B, -1)                            # (B, Dflat) f32
    Dflat = x_flat.shape[1]
    L = w_enc.shape[1]                                       # 512
    N = w_fc_t.shape[1]                                      # 768

    # Fold the 1x1 Conv1d (scalar affine x*w+b) into the FC layer (exact, trace-time).
    w_fold = conv_w[0] * w_fc_t                              # (L, N)
    b_fold = conv_b[0] * jnp.sum(w_fc_t, axis=0) + b_fc      # (N,)

    # bf16 storage for the two big weight matrices -> half the HBM DMA traffic.
    w_enc_b16 = w_enc.astype(jnp.bfloat16)
    w_fold_b16 = w_fold.astype(jnp.bfloat16)

    cost = pl.CostEstimate(
        flops=2 * B * (Dflat * L + L * N),
        transcendentals=B * L,
        bytes_accessed=(B * Dflat * 4 + Dflat * L * 2 + L * 4
                        + L * N * 2 + N * 4 + B * N * 4 + B * L * 4),
    )

    vmem_spec = pl.BlockSpec(memory_space=pltpu.MemorySpace.VMEM)
    out, lat = pl.pallas_call(
        first_stage_kernel,
        out_shape=(
            jax.ShapeDtypeStruct((B, N), jnp.float32),
            jax.ShapeDtypeStruct((B, L), jnp.float32),
        ),
        in_specs=[vmem_spec] * 5,
        out_specs=(vmem_spec, vmem_spec),
        cost_estimate=cost,
    )(x_flat, w_enc_b16, b_enc.reshape(1, L), w_fold_b16, b_fold.reshape(1, N))

    return out.reshape(B, 1, N), lat.reshape(B, 1, L)


# --------------------------------- main --------------------------------------
if __name__ == "__main__":
    INPUT_DIM, OUTPUT_DIM = 512, 768
    B, C, H, W = 2, 4, 16, 16

    key = jax.random.PRNGKey(0)
    k_img, k_enc_w, k_enc_b, k_cw, k_cb, k_fw, k_fb = jax.random.split(key, 7)

    # example input image (NCHW, like PyTorch)
    x_img = jax.random.normal(k_img, (B, C, H, W), dtype=jnp.float32)

    # synthetic encoder params (flatten -> 512)   # external dep of First_Stage
    w_enc = jax.random.normal(k_enc_w, (C * H * W, INPUT_DIM), dtype=jnp.float32) * 0.02
    b_enc = jax.random.normal(k_enc_b, (INPUT_DIM,), dtype=jnp.float32) * 0.02

    # First_Stage params
    conv_w = jax.random.normal(k_cw, (1,), dtype=jnp.float32)   # Conv1d(1,1,1).weight
    conv_b = jax.random.normal(k_cb, (1,), dtype=jnp.float32)   # Conv1d(1,1,1).bias
    w_fc_t = jax.random.normal(k_fw, (INPUT_DIM, OUTPUT_DIM), dtype=jnp.float32) * 0.02
    b_fc = jax.random.normal(k_fb, (OUTPUT_DIM,), dtype=jnp.float32) * 0.02

    fwd = jax.jit(first_stage_pallas)
    out, latent = fwd(x_img, w_enc, b_enc, conv_w, conv_b, w_fc_t, b_fc)
    out = jax.block_until_ready(out)
    latent = jax.block_until_ready(latent)

    # --- reference mirroring the kernel math exactly (bf16 weight storage, f32 compute)
    x_flat = x_img.reshape(B, -1)
    w_enc_q = w_enc.astype(jnp.bfloat16).astype(jnp.float32)
    feat_ref = jnp.tanh(x_flat @ w_enc_q + b_enc)                          # (B, 512)
    w_fold_q = (conv_w[0] * w_fc_t).astype(jnp.bfloat16).astype(jnp.float32)
    b_fold = conv_b[0] * jnp.sum(w_fc_t, axis=0) + b_fc
    ref_out = (feat_ref @ w_fold_q + b_fold).reshape(B, 1, OUTPUT_DIM)
    ref_latent = feat_ref.reshape(B, 1, INPUT_DIM)

    # --- original-semantics (pure f32, unfused conv) reference for a looser sanity check
    feat_f32 = jnp.tanh(x_flat @ w_enc + b_enc).reshape(B, 1, INPUT_DIM)
    full_ref = (feat_f32 * conv_w[0] + conv_b[0]) @ w_fc_t + b_fc

    assert out.shape == (B, 1, OUTPUT_DIM)
    assert latent.shape == (B, 1, INPUT_DIM)
    assert jnp.allclose(out, ref_out, atol=1e-3, rtol=1e-3)
    assert jnp.allclose(latent, ref_latent, atol=1e-3, rtol=1e-3)
    assert jnp.allclose(out, full_ref, atol=5e-2, rtol=5e-2)       # bf16-weight drift only
    assert jnp.allclose(latent, feat_f32, atol=5e-2, rtol=5e-2)

    print("KERNEL_OK")
</pallas_src>

<mosaic_0001>
module attributes {stable_mosaic.version = 11 : i64} {
  func.func @first_stage_kernel(%arg0: memref<2x1024xf32, #tpu.memory_space<vmem>>, %arg1: memref<1024x512xbf16, #tpu.memory_space<vmem>>, %arg2: memref<1x512xf32, #tpu.memory_space<vmem>>, %arg3: memref<512x768xbf16, #tpu.memory_space<vmem>>, %arg4: memref<1x768xf32, #tpu.memory_space<vmem>>, %arg5: memref<2x768xf32, #tpu.memory_space<vmem>>, %arg6: memref<2x512xf32, #tpu.memory_space<vmem>>) attributes {dimension_semantics = [], scalar_prefetch = 0 : i64, scratch_operands = 0 : i64, tpu.core_type = #tpu.core_type<tc>} {
    %c0 = arith.constant 0 : index
    %c0_0 = arith.constant 0 : index
    %0 = vector.load %arg0[%c0, %c0_0] : memref<2x1024xf32, #tpu.memory_space<vmem>>, vector<2x1024xf32>
    %c0_1 = arith.constant 0 : index
    %c0_2 = arith.constant 0 : index
    %1 = vector.load %arg1[%c0_1, %c0_2] : memref<1024x512xbf16, #tpu.memory_space<vmem>>, vector<1024x512xbf16>
    %2 = arith.extf %1 : vector<1024x512xbf16> to vector<1024x512xf32>
    %cst = arith.constant dense<0.000000e+00> : vector<2x512xf32>
    %3 = tpu.matmul %0, %2, %cst {dimension_numbers = #tpu.dot_dimension_numbers<[1], [0], [0], [1], [0, 0, 1, 1], [], []>} : vector<2x1024xf32>, vector<1024x512xf32>, vector<2x512xf32> -> vector<2x512xf32>
    %c0_3 = arith.constant 0 : index
    %c0_4 = arith.constant 0 : index
    %4 = vector.load %arg2[%c0_3, %c0_4] : memref<1x512xf32, #tpu.memory_space<vmem>>, vector<1x512xf32>
    %5 = vector.broadcast %4 : vector<1x512xf32> to vector<2x512xf32>
    %6 = arith.addf %3, %5 : vector<2x512xf32>
    %7 = math.tanh %6 : vector<2x512xf32>
    %c0_5 = arith.constant 0 : index
    %c0_6 = arith.constant 0 : index
    %8 = vector.load %arg6[%c0_5, %c0_6] : memref<2x512xf32, #tpu.memory_space<vmem>>, vector<2x512xf32>
    tpu.vector_store %arg6[%c0_5, %c0_6], %7 {strides = array<i32>} : memref<2x512xf32, #tpu.memory_space<vmem>>, vector<2x512xf32>,
    %c0_7 = arith.constant 0 : index
    %c0_8 = arith.constant 0 : index
    %9 = vector.load %arg3[%c0_7, %c0_8] : memref<512x768xbf16, #tpu.memory_space<vmem>>, vector<512x768xbf16>
    %10 = arith.extf %9 : vector<512x768xbf16> to vector<512x768xf32>
    %cst_9 = arith.constant dense<0.000000e+00> : vector<2x768xf32>
    %11 = tpu.matmul %7, %10, %cst_9 {dimension_numbers = #tpu.dot_dimension_numbers<[1], [0], [0], [1], [0, 0, 1, 1], [], []>} : vector<2x512xf32>, vector<512x768xf32>, vector<2x768xf32> -> vector<2x768xf32>
    %c0_10 = arith.constant 0 : index
    %c0_11 = arith.constant 0 : index
    %12 = vector.load %arg4[%c0_10, %c0_11] : memref<1x768xf32, #tpu.memory_space<vmem>>, vector<1x768xf32>
    %13 = vector.broadcast %12 : vector<1x768xf32> to vector<2x768xf32>
    %14 = arith.addf %11, %13 : vector<2x768xf32>
    %c0_12 = arith.constant 0 : index
    %c0_13 = arith.constant 0 : index
    %15 = vector.load %arg5[%c0_12, %c0_13] : memref<2x768xf32, #tpu.memory_space<vmem>>, vector<2x768xf32>
    tpu.vector_store %arg5[%c0_12, %c0_13], %14 {strides = array<i32>} : memref<2x768xf32, #tpu.memory_space<vmem>>, vector<2x768xf32>,
    return
  }
}

</mosaic_0001>

<bundles_post_ra>
// kernel: first_stage_pallas.1
= control target key start
LH: loop header
LB: loop body
LE: loop exit
PB: predicated region body
PF: predicated region fallthrough
CT: control target
= control target key end

     0   :  { %s4056_s1 = inlined_call_operand.vmem [shape: bf16[1024,512], index: 1, kind: input, shape index: {}]   ;;  %s4057_s0 = inlined_call_operand.vmem [shape: f32[2,1024], index: 0, kind: input, shape index: {}]   ;;  %s4058_s3 = inlined_call_operand.vmem [shape: bf16[512,768], index: 3, kind: input, shape index: {}]   ;;  %s4059_s2 = inlined_call_operand.vmem [shape: f32[1,512], index: 2, kind: input, shape index: {}]   ;;  %s4060_s6 = inlined_call_operand.vmem [shape: f32[2,512], index: 6, kind: output, shape index: {1}]   ;;  %s4061_s4 = inlined_call_operand.vmem [shape: f32[1,768], index: 4, kind: input, shape index: {}]   ;;  %s4062_s5 = inlined_call_operand.vmem [shape: f32[2,768], index: 5, kind: output, shape index: {0}]  }
   0x1   :  { %v54_v0 = vld [vmem:[%s4056_s1 + $0xf0] sm:$0xff]  ;;  %v52_v2 = vld [vmem:[%s4056_s1 + $0xe0] sm:$0xff] }
   0x2   :  { %v118_v1 = vld [vmem:[%s4056_s1 + $0x2f0] sm:$0xff]  ;;  %v341_v3 = vunpack.c.h.bf16 %v54_v0  ;;  %v340_v5 = vunpack.c.l.bf16 %v54_v0  ;;  %v116_v7 = vld [vmem:[%s4056_s1 + $0x2e0] sm:$0xff]  ;;  %v337_v10 = vunpack.c.h.bf16 %v52_v2  ;;  %v336_v12 = vunpack.c.l.bf16 %v52_v2 }
   0x3   :  { %v469_v4 = vunpack.c.h.bf16 %v118_v1  ;;  %v468_v6 = vunpack.c.l.bf16 %v118_v1  ;;  %v50_v8 = vld [vmem:[%s4056_s1 + $0xd0] sm:$0xff]  ;;  %v465_v11 = vunpack.c.h.bf16 %v116_v7  ;;  %v464_v13 = vunpack.c.l.bf16 %v116_v7  ;;  %v48_v14 = vld [vmem:[%s4056_s1 + $0xc0] sm:$0xff] }
   0x4   :  { %v114_v9 = vld [vmem:[%s4056_s1 + $0x2d0] sm:$0xff]  ;;  %v112_v15 = vld [vmem:[%s4056_s1 + $0x2c0] sm:$0xff]  ;;  %858 = vmatprep.subr.mxu0 %v341_v3  ;;  %v333_v16 = vunpack.c.h.bf16 %v50_v8  ;;  %v332_v18 = vunpack.c.l.bf16 %v50_v8  ;;  %v329_v22 = vunpack.c.h.bf16 %v48_v14  ;;  %v328_v24 = vunpack.c.l.bf16 %v48_v14 }
   0x5   :  { %929 = vmatprep.subr.mxu1 %v469_v4  ;;  %v461_v17 = vunpack.c.h.bf16 %v114_v9  ;;  %859 = vmatpush1.msra.mxu0 %v340_v5  ;;  %v460_v19 = vunpack.c.l.bf16 %v114_v9  ;;  %v46_v20 = vld [vmem:[%s4056_s1 + $0xb0] sm:$0xff]  ;;  %v457_v23 = vunpack.c.h.bf16 %v112_v15  ;;  %v456_v25 = vunpack.c.l.bf16 %v112_v15  ;;  %v44_v26 = vld [vmem:[%s4056_s1 + $0xa0] sm:$0xff] }
   0x6   :  { %930 = vmatpush1.msra.mxu1 %v468_v6  ;;  %v110_v21 = vld [vmem:[%s4056_s1 + $0x2b0] sm:$0xff]  ;;  %860 = vmatprep.subr.mxu0 %v337_v10  ;;  %v108_v27 = vld [vmem:[%s4056_s1 + $0x2a0] sm:$0xff]  ;;  %v325_v28 = vunpack.c.h.bf16 %v46_v20  ;;  %v324_v30 = vunpack.c.l.bf16 %v46_v20  ;;  %v321_v34 = vunpack.c.h.bf16 %v44_v26  ;;  %v320_v36 = vunpack.c.l.bf16 %v44_v26 }
   0x7   :  { %931 = vmatprep.subr.mxu1 %v465_v11  ;;  %861 = vmatpush1.msra.mxu0 %v336_v12  ;;  %v453_v29 = vunpack.c.h.bf16 %v110_v21  ;;  %v452_v31 = vunpack.c.l.bf16 %v110_v21  ;;  %v42_v32 = vld [vmem:[%s4056_s1 + $0x90] sm:$0xff]  ;;  %v449_v35 = vunpack.c.h.bf16 %v108_v27  ;;  %v448_v37 = vunpack.c.l.bf16 %v108_v27  ;;  %v40_v38 = vld [vmem:[%s4056_s1 + $0x80] sm:$0xff] }
   0x8   :  { %932 = vmatpush1.msra.mxu1 %v464_v13  ;;  %862 = vmatprep.subr.mxu0 %v333_v16  ;;  %v106_v33 = vld [vmem:[%s4056_s1 + $0x290] sm:$0xff]  ;;  %v104_v39 = vld [vmem:[%s4056_s1 + $0x280] sm:$0xff]  ;;  %v317_v40 = vunpack.c.h.bf16 %v42_v32  ;;  %v316_v42 = vunpack.c.l.bf16 %v42_v32  ;;  %v313_v46 = vunpack.c.h.bf16 %v40_v38  ;;  %v312_v48 = vunpack.c.l.bf16 %v40_v38 }
   0x9   :  { %933 = vmatprep.subr.mxu1 %v461_v17  ;;  %863 = vmatpush1.msra.mxu0 %v332_v18  ;;  %v445_v41 = vunpack.c.h.bf16 %v106_v33  ;;  %v444_v43 = vunpack.c.l.bf16 %v106_v33  ;;  %v38_v44 = vld [vmem:[%s4056_s1 + $0x70] sm:$0xff]  ;;  %v441_v47 = vunpack.c.h.bf16 %v104_v39  ;;  %v440_v49 = vunpack.c.l.bf16 %v104_v39  ;;  %v36_v50 = vld [vmem:[%s4056_s1 + $0x60] sm:$0xff] }
   0xa   :  { %934 = vmatpush1.msra.mxu1 %v460_v19  ;;  %864 = vmatprep.subr.mxu0 %v329_v22  ;;  %v102_v45 = vld [vmem:[%s4056_s1 + $0x270] sm:$0xff]  ;;  %v100_v51 = vld [vmem:[%s4056_s1 + $0x260] sm:$0xff]  ;;  %v309_v52 = vunpack.c.h.bf16 %v38_v44  ;;  %v308_v54 = vunpack.c.l.bf16 %v38_v44  ;;  %v305_v58 = vunpack.c.h.bf16 %v36_v50  ;;  %v304_v60 = vunpack.c.l.bf16 %v36_v50 }
   0xb   :  { %935 = vmatprep.subr.mxu1 %v457_v23  ;;  %865 = vmatpush1.msra.mxu0 %v328_v24  ;;  %v437_v53 = vunpack.c.h.bf16 %v102_v45  ;;  %v436_v55 = vunpack.c.l.bf16 %v102_v45  ;;  %v34_v56 = vld [vmem:[%s4056_s1 + $0x50] sm:$0xff]  ;;  %v433_v59 = vunpack.c.h.bf16 %v100_v51  ;;  %v432_v61 = vunpack.c.l.bf16 %v100_v51  ;;  %v32_v62 = vld [vmem:[%s4056_s1 + $0x40] sm:$0xff] }
   0xc   :  { %936 = vmatpush1.msra.mxu1 %v456_v25  ;;  %866 = vmatprep.subr.mxu0 %v325_v28  ;;  %v98_v57 = vld [vmem:[%s4056_s1 + $0x250] sm:$0xff]  ;;  %v96_v63 = vld [vmem:[%s4056_s1 + $0x240] sm:$0xff]  ;;  %v301_v0 = vunpack.c.h.bf16 %v34_v56  ;;  %v300_v2 = vunpack.c.l.bf16 %v34_v56  ;;  %v297_v6 = vunpack.c.h.bf16 %v32_v62  ;;  %v296_v8 = vunpack.c.l.bf16 %v32_v62 }
   0xd   :  { %937 = vmatprep.subr.mxu1 %v453_v29  ;;  %867 = vmatpush1.msra.mxu0 %v324_v30  ;;  %v429_v1 = vunpack.c.h.bf16 %v98_v57  ;;  %v428_v3 = vunpack.c.l.bf16 %v98_v57  ;;  %v30_v4 = vld [vmem:[%s4056_s1 + $0x30] sm:$0xff]  ;;  %v425_v7 = vunpack.c.h.bf16 %v96_v63  ;;  %v424_v9 = vunpack.c.l.bf16 %v96_v63  ;;  %v28_v10 = vld [vmem:[%s4056_s1 + $0x20] sm:$0xff] }
   0xe   :  { %938 = vmatpush1.msra.mxu1 %v452_v31  ;;  %868 = vmatprep.subr.mxu0 %v321_v34  ;;  %v94_v5 = vld [vmem:[%s4056_s1 + $0x230] sm:$0xff]  ;;  %v92_v11 = vld [vmem:[%s4056_s1 + $0x220] sm:$0xff]  ;;  %v293_v12 = vunpack.c.h.bf16 %v30_v4  ;;  %v292_v14 = vunpack.c.l.bf16 %v30_v4  ;;  %v289_v18 = vunpack.c.h.bf16 %v28_v10  ;;  %v288_v20 = vunpack.c.l.bf16 %v28_v10 }
   0xf   :  { %939 = vmatprep.subr.mxu1 %v449_v35  ;;  %869 = vmatpush1.msra.mxu0 %v320_v36  ;;  %v421_v13 = vunpack.c.h.bf16 %v94_v5  ;;  %v420_v15 = vunpack.c.l.bf16 %v94_v5  ;;  %v26_v16 = vld [vmem:[%s4056_s1 + $0x10] sm:$0xff]  ;;  %v417_v19 = vunpack.c.h.bf16 %v92_v11  ;;  %v416_v21 = vunpack.c.l.bf16 %v92_v11  ;;  %v24_v22 = vld [vmem:[%s4056_s1] sm:$0xff] }
  0x10   :  { %940 = vmatpush1.msra.mxu1 %v448_v37  ;;  %870 = vmatprep.subr.mxu0 %v317_v40  ;;  %v90_v17 = vld [vmem:[%s4056_s1 + $0x210] sm:$0xff]  ;;  %v88_v23 = vld [vmem:[%s4056_s1 + $0x200] sm:$0xff]  ;;  %v285_v24 = vunpack.c.h.bf16 %v26_v16  ;;  %v284_v26 = vunpack.c.l.bf16 %v26_v16  ;;  %v281_v30 = vunpack.c.h.bf16 %v24_v22  ;;  %v280_v32 = vunpack.c.l.bf16 %v24_v22 }
  0x11   :  { %941 = vmatprep.subr.mxu1 %v445_v41  ;;  %871 = vmatpush1.msra.mxu0 %v316_v42  ;;  %v413_v25 = vunpack.c.h.bf16 %v90_v17  ;;  %v412_v27 = vunpack.c.l.bf16 %v90_v17  ;;  %v86_v28 = vld [vmem:[%s4056_s1 + $0x1f0] sm:$0xff]  ;;  %v409_v31 = vunpack.c.h.bf16 %v88_v23  ;;  %v408_v33 = vunpack.c.l.bf16 %v88_v23  ;;  %v84_v34 = vld [vmem:[%s4056_s1 + $0x1e0] sm:$0xff] }
  0x12   :  { %942 = vmatpush1.msra.mxu1 %v444_v43  ;;  %872 = vmatprep.subr.mxu0 %v313_v46  ;;  %v150_v29 = vld [vmem:[%s4056_s1 + $0x3f0] sm:$0xff]  ;;  %v148_v35 = vld [vmem:[%s4056_s1 + $0x3e0] sm:$0xff]  ;;  %v405_v36 = vunpack.c.h.bf16 %v86_v28  ;;  %v404_v38 = vunpack.c.l.bf16 %v86_v28  ;;  %v401_v42 = vunpack.c.h.bf16 %v84_v34  ;;  %v400_v44 = vunpack.c.l.bf16 %v84_v34 }
  0x13   :  { %943 = vmatprep.subr.mxu1 %v441_v47  ;;  %873 = vmatpush1.msra.mxu0 %v312_v48  ;;  %v533_v37 = vunpack.c.h.bf16 %v150_v29  ;;  %v532_v39 = vunpack.c.l.bf16 %v150_v29  ;;  %v82_v40 = vld [vmem:[%s4056_s1 + $0x1d0] sm:$0xff]  ;;  %v529_v43 = vunpack.c.h.bf16 %v148_v35  ;;  %v528_v45 = vunpack.c.l.bf16 %v148_v35  ;;  %v80_v46 = vld [vmem:[%s4056_s1 + $0x1c0] sm:$0xff] }
  0x14   :  { %944 = vmatpush1.msra.mxu1 %v440_v49  ;;  %874 = vmatprep.subr.mxu0 %v309_v52  ;;  %v146_v41 = vld [vmem:[%s4056_s1 + $0x3d0] sm:$0xff]  ;;  %v144_v47 = vld [vmem:[%s4056_s1 + $0x3c0] sm:$0xff]  ;;  %v397_v48 = vunpack.c.h.bf16 %v82_v40  ;;  %v396_v50 = vunpack.c.l.bf16 %v82_v40  ;;  %v392_v56 = vunpack.c.l.bf16 %v80_v46 }
  0x15   :  { %945 = vmatprep.subr.mxu1 %v437_v53  ;;  %875 = vmatpush1.msra.mxu0 %v308_v54  ;;  %v525_v49 = vunpack.c.h.bf16 %v146_v41  ;;  %v524_v51 = vunpack.c.l.bf16 %v146_v41  ;;  %v78_v52 = vld [vmem:[%s4056_s1 + $0x1b0] sm:$0xff]  ;;  %v393_v54 = vunpack.c.h.bf16 %v80_v46  ;;  %v520_v57 = vunpack.c.l.bf16 %v144_v47  ;;  %v128_v34 = vld [vmem:[%s4056_s1 + $0x340] sm:$0xff] }
  0x16   :  { %946 = vmatpush1.msra.mxu1 %v436_v55  ;;  %876 = vmatprep.subr.mxu0 %v305_v58  ;;  %v142_v53 = vld [vmem:[%s4056_s1 + $0x3b0] sm:$0xff]  ;;  %v521_v55 = vunpack.c.h.bf16 %v144_v47  ;;  %v76_v58 = vld [vmem:[%s4056_s1 + $0x1a0] sm:$0xff]  ;;  %v388_v62 = vunpack.c.l.bf16 %v78_v52  ;;  %v488_v47 = vunpack.c.l.bf16 %v128_v34 }
  0x17   :  { %947 = vmatprep.subr.mxu1 %v433_v59  ;;  %877 = vmatpush1.msra.mxu0 %v304_v60  ;;  %v140_v59 = vld [vmem:[%s4056_s1 + $0x3a0] sm:$0xff]  ;;  %v389_v60 = vunpack.c.h.bf16 %v78_v52  ;;  %v516_v63 = vunpack.c.l.bf16 %v142_v53  ;;  %v384_v4 = vunpack.c.l.bf16 %v76_v58  ;;  %v130_v28 = vld [vmem:[%s4056_s1 + $0x350] sm:$0xff] }
  0x18   :  { %948 = vmatpush1.msra.mxu1 %v432_v61  ;;  %878 = vmatprep.subr.mxu0 %v301_v0  ;;  %v517_v61 = vunpack.c.h.bf16 %v142_v53  ;;  %v74_v0 = vld [vmem:[%s4056_s1 + $0x190] sm:$0xff]  ;;  %v512_v5 = vunpack.c.l.bf16 %v140_v59  ;;  %v492_v40 = vunpack.c.l.bf16 %v130_v28 }
  0x19   :  { %949 = vmatprep.subr.mxu1 %v429_v1  ;;  %879 = vmatpush1.msra.mxu0 %v300_v2  ;;  %v138_v1 = vld [vmem:[%s4056_s1 + $0x390] sm:$0xff]  ;;  %v385_v2 = vunpack.c.h.bf16 %v76_v58  ;;  %v380_v10 = vunpack.c.l.bf16 %v74_v0 }
  0x1a   :  { %950 = vmatpush1.msra.mxu1 %v428_v3  ;;  %880 = vmatprep.subr.mxu0 %v297_v6  ;;  %v513_v3 = vunpack.c.h.bf16 %v140_v59  ;;  %v72_v6 = vld [vmem:[%s4056_s1 + $0x180] sm:$0xff]  ;;  %v508_v11 = vunpack.c.l.bf16 %v138_v1  ;;  %v62_v41 = vld [vmem:[%s4056_s1 + $0x130] sm:$0xff] }
  0x1b   :  { %951 = vmatprep.subr.mxu1 %v425_v7  ;;  %881 = vmatpush1.msra.mxu0 %v296_v8  ;;  %v136_v7 = vld [vmem:[%s4056_s1 + $0x380] sm:$0xff]  ;;  %v381_v8 = vunpack.c.h.bf16 %v74_v0  ;;  %v376_v16 = vunpack.c.l.bf16 %v72_v6  ;;  %v356_v53 = vunpack.c.l.bf16 %v62_v41 }
  0x1c   :  { %952 = vmatpush1.msra.mxu1 %v424_v9  ;;  %882 = vmatprep.subr.mxu0 %v293_v12  ;;  %v509_v9 = vunpack.c.h.bf16 %v138_v1  ;;  %v70_v12 = vld [vmem:[%s4056_s1 + $0x170] sm:$0xff]  ;;  %v504_v17 = vunpack.c.l.bf16 %v136_v7 }
  0x1d   :  { %953 = vmatprep.subr.mxu1 %v421_v13  ;;  %883 = vmatpush1.msra.mxu0 %v292_v14  ;;  %v134_v13 = vld [vmem:[%s4056_s1 + $0x370] sm:$0xff]  ;;  %v377_v14 = vunpack.c.h.bf16 %v72_v6  ;;  %v373_v23 = vunpack.c.h.bf16 %v70_v12 }
  0x1e   :  { %954 = vmatpush1.msra.mxu1 %v420_v15  ;;  %884 = vmatprep.subr.mxu0 %v289_v18  ;;  %v505_v15 = vunpack.c.h.bf16 %v136_v7  ;;  %v68_v18 = vld [vmem:[%s4056_s1 + $0x160] sm:$0xff] }
  0x1f   :  { %955 = vmatprep.subr.mxu1 %v417_v19  ;;  %885 = vmatpush1.msra.mxu0 %v288_v20  ;;  %v132_v19 = vld [vmem:[%s4056_s1 + $0x360] sm:$0xff]  ;;  %v794_v20 = vlaneseq  ;;  %v369_v29 = vunpack.c.h.bf16 %v68_v18 }
  0x20   :  { %956 = vmatpush1.msra.mxu1 %v416_v21  ;;  %886 = vmatprep.subr.mxu0 %v285_v24  ;;  %v2542_v21 = vmov 1983009808   ;;  %v501_v24 = vunpack.c.h.bf16 %v134_v13 }
  0x21   :  { %957 = vmatprep.subr.mxu1 %v413_v25  ;;  %887 = vmatpush1.msra.mxu0 %v284_v26  ;;  %v818_v22 = vunpack.c.l.s4 %v2542_v21  ;;  %v372_v25 = vunpack.c.l.bf16 %v70_v12  ;;  %v500_v26 = vunpack.c.l.bf16 %v134_v13  ;;  %v2746_v35 = vshrl.u32 %v794_v20, 7  ;;  %v178_v20 = vld [vmem:[%s4056_s1 + $0x4d0] sm:$0xff] }
  0x22   :  { %958 = vmatpush1.msra.mxu1 %v412_v27  ;;  %888 = vmatprep.subr.mxu0 %v281_v30  ;;  %v66_v27 = vld [vmem:[%s4056_s1 + $0x150] sm:$0xff]  ;;  %v497_v30 = vunpack.c.h.bf16 %v132_v19 }
  0x23   :  { %959 = vmatprep.subr.mxu1 %v409_v31  ;;  %889 = vmatpush1.msra.mxu0 %v280_v32  ;;  %v368_v31 = vunpack.c.l.bf16 %v68_v18  ;;  %v496_v32 = vunpack.c.l.bf16 %v132_v19  ;;  %v242_v21 = vld [vmem:[%s4056_s1 + $0x6d0] sm:$0xff] }
  0x24   :  { %960 = vmatpush1.msra.mxu1 %v408_v33  ;;  %890 = vmatprep.subr.mxu0 %v405_v36  ;;  %v64_v33 = vld [vmem:[%s4056_s1 + $0x140] sm:$0xff]  ;;  %v819_v36 = vunpack.c.0.s8 %v818_v22 }
  0x25   :  { %961 = vmatprep.subr.mxu1 %v533_v37  ;;  %891 = vmatpush2.msra.mxu0 %v404_v38  ;;  %v365_v37 = vunpack.c.h.bf16 %v66_v27  ;;  %v493_v38 = vunpack.c.h.bf16 %v130_v28  ;;  %v360_v46 = vunpack.c.l.bf16 %v64_v33  ;;  %v589_v28 = vunpack.c.h.bf16 %v178_v20 }
  0x26   :  { %962 = vmatpush2.msra.mxu1 %v532_v39  ;;  %892 = vmatprep.subr.mxu0 %v401_v42  ;;  %v364_v39 = vunpack.c.l.bf16 %v66_v27  ;;  %v126_v42 = vld [vmem:[%s4056_s1 + $0x330] sm:$0xff]  ;;  %v240_v27 = vld [vmem:[%s4056_s1 + $0x6c0] sm:$0xff] }
  0x27   :  { %963 = vmatprep.subr.mxu1 %v529_v43  ;;  %893 = vmatpush2.msra.mxu0 %v400_v44  ;;  %v361_v43 = vunpack.c.h.bf16 %v64_v33  ;;  %v489_v44 = vunpack.c.h.bf16 %v128_v34  ;;  %v485_v52 = vunpack.c.h.bf16 %v126_v42  ;;  %v238_v33 = vld [vmem:[%s4056_s1 + $0x6b0] sm:$0xff] }
  0x28   :  { %964 = vmatpush2.msra.mxu1 %v528_v45  ;;  %894 = vmatprep.subr.mxu0 %v397_v48  ;;  %v22_v45 = vld [vmem:[%s4057_s0] sm:$0xff] }
  0x29   :  { %965 = vmatprep.subr.mxu1 %v525_v49  ;;  %895 = vmatpush2.msra.mxu0 %v396_v50  ;;  %v60_v48 = vld [vmem:[%s4056_s1 + $0x120] sm:$0xff]  ;;  %v2764_v50 = vsub.s32 %v819_v36, %v2746_v35  ;;  %v713_v36 = vunpack.c.h.bf16 %v240_v27 }
  0x2a   :  { %966 = vmatpush2.msra.mxu1 %v524_v51  ;;  %896 = vmatprep.subr.mxu0 %v393_v54  ;;  %v124_v49 = vld [vmem:[%s4056_s1 + $0x320] sm:$0xff]  ;;  %v357_v51 = vunpack.c.h.bf16 %v62_v41  ;;  %v484_v54 = vunpack.c.l.bf16 %v126_v42  ;;  %v353_v58 = vunpack.c.h.bf16 %v60_v48  ;;  %v709_v42 = vunpack.c.h.bf16 %v238_v33 }
  0x2b   :  { %967 = vmatprep.subr.mxu1 %v521_v55  ;;  %897 = vmatpush2.msra.mxu0 %v392_v56  ;;  %v58_v55 = vld [vmem:[%s4056_s1 + $0x110] sm:$0xff]  ;;  %v481_v59 = vunpack.c.h.bf16 %v124_v49  ;;  %v2779_v0 = vrot.slane %v22_v45, %v2764_v50 }
  0x2c   :  { %968 = vmatpush2.msra.mxu1 %v520_v57  ;;  %898 = vmatprep.subr.mxu0 %v389_v60  ;;  %v122_v56 = vld [vmem:[%s4056_s1 + $0x310] sm:$0xff]  ;;  %v816_v57 = vcombine.high %v22_v45, %v22_v45  ;;  %v352_v60 = vunpack.c.l.bf16 %v60_v48  ;;  %v349_v1 = vunpack.c.h.bf16 %v58_v55 }
  0x2d   :  { %969 = vmatprep.subr.mxu1 %v517_v61  ;;  %899 = vmatpush2.msra.mxu0 %v388_v62  ;;  %v480_v61 = vunpack.c.l.bf16 %v124_v49  ;;  %v56_v62 = vld [vmem:[%s4056_s1 + $0x100] sm:$0xff]  ;;  %v170_v45 = vld [vmem:[%s4056_s1 + $0x490] sm:$0xff] }
  0x2e   :  { %970 = vmatpush2.msra.mxu1 %v516_v63  ;;  %900 = vmatprep.subr.mxu0 %v385_v2  ;;  %v120_v63 = vld [vmem:[%s4056_s1 + $0x300] sm:$0xff]  ;;  %v477_v2 = vunpack.c.h.bf16 %v122_v56  ;;  %v345_v6 = vunpack.c.h.bf16 %v56_v62 }
  0x2f   :  { %971 = vmatprep.subr.mxu1 %v513_v3  ;;  %901 = vmatpush2.msra.mxu0 %v384_v4  ;;  %v348_v3 = vunpack.c.l.bf16 %v58_v55  ;;  %v476_v4 = vunpack.c.l.bf16 %v122_v56  ;;  %v473_v7 = vunpack.c.h.bf16 %v120_v63  ;;  %v472_v12 = vunpack.c.l.bf16 %v120_v63 }
  0x30   :  { %972 = vmatpush2.msra.mxu1 %v512_v5  ;;  %902 = vmatprep.subr.mxu0 %v381_v8  ;;  %v2782_v5 = vrot.slane %v816_v57, %v2764_v50  ;;  %v182_v8 = vld [vmem:[%s4056_s1 + $0x4f0] sm:$0xff]  ;;  %v572_v56 = vunpack.c.l.bf16 %v170_v45 }
  0x31   :  { %973 = vmatprep.subr.mxu1 %v509_v9  ;;  %903 = vmatpush2.msra.mxu0 %v380_v10  ;;  %v344_v9 = vunpack.c.l.bf16 %v56_v62  ;;  %v2789_v10 = vcombine.high %v2779_v0, %v2779_v0  ;;  %v596_v18 = vunpack.c.l.bf16 %v182_v8 }
  0x32   :  { %974 = vmatpush2.msra.mxu1 %v508_v11  ;;  %904 = vmatprep.subr.mxu0 %v377_v14  ;;  %v246_v11 = vld [vmem:[%s4056_s1 + $0x6f0] sm:$0xff]  ;;  %v2796_v13 = vcombine.high %v2782_v5, %v2782_v5  ;;  %v597_v14 = vunpack.c.h.bf16 %v182_v8 }
  0x33   :  { %975 = vmatprep.subr.mxu1 %v505_v15  ;;  %905 = vmatpush2.msra.mxu0 %v376_v16  ;;  %v180_v15 = vld [vmem:[%s4056_s1 + $0x4e0] sm:$0xff]  ;;  %v724_v19 = vunpack.c.l.bf16 %v246_v11  ;;  %v162_v8 = vld [vmem:[%s4056_s1 + $0x450] sm:$0xff] }
  0x34   :  { %976 = vmatpush2.msra.mxu1 %v504_v17  ;;  %906 = vmatprep.subr.mxu0 %v373_v23  ;;  %v244_v16 = vld [vmem:[%s4056_s1 + $0x6e0] sm:$0xff]  ;;  %v725_v17 = vunpack.c.h.bf16 %v246_v11  ;;  %v593_v22 = vunpack.c.h.bf16 %v180_v15 }
  0x35   :  { %977 = vmatprep.subr.mxu1 %v501_v24  ;;  %907 = vmatpush2.msra.mxu0 %v372_v25  ;;  %v721_v23 = vunpack.c.h.bf16 %v244_v16  ;;  %v592_v24 = vunpack.c.l.bf16 %v180_v15  ;;  %v720_v25 = vunpack.c.l.bf16 %v244_v16  ;;  %v160_v16 = vld [vmem:[%s4056_s1 + $0x440] sm:$0xff] }
  0x36   :  { %978 = vmatpush2.msra.mxu1 %v500_v26  ;;  %908 = vmatprep.subr.mxu0 %v369_v29  ;;  %v176_v26 = vld [vmem:[%s4056_s1 + $0x4c0] sm:$0xff]  ;;  %v717_v29 = vunpack.c.h.bf16 %v242_v21 }
  0x37   :  { %979 = vmatprep.subr.mxu1 %v497_v30  ;;  %909 = vmatpush2.msra.mxu0 %v368_v31  ;;  %v588_v30 = vunpack.c.l.bf16 %v178_v20  ;;  %v716_v31 = vunpack.c.l.bf16 %v242_v21  ;;  %v585_v34 = vunpack.c.h.bf16 %v176_v26  ;;  %v556_v20 = vunpack.c.l.bf16 %v162_v8 }
  0x38   :  { %980 = vmatpush2.msra.mxu1 %v496_v32  ;;  %910 = vmatprep.subr.mxu0 %v365_v37  ;;  %v174_v32 = vld [vmem:[%s4056_s1 + $0x4b0] sm:$0xff]  ;;  %v584_v37 = vunpack.c.l.bf16 %v176_v26  ;;  %v552_v26 = vunpack.c.l.bf16 %v160_v16 }
  0x39   :  { %981 = vmatprep.subr.mxu1 %v493_v38  ;;  %911 = vmatpush2.msra.mxu0 %v364_v39  ;;  %v712_v38 = vunpack.c.l.bf16 %v240_v27  ;;  %v172_v39 = vld [vmem:[%s4056_s1 + $0x4a0] sm:$0xff]  ;;  %v581_v41 = vunpack.c.h.bf16 %v174_v32 }
  0x3a   :  { %982 = vmatpush2.msra.mxu1 %v492_v40  ;;  %912 = vmatprep.subr.mxu0 %v361_v43  ;;  %v236_v40 = vld [vmem:[%s4056_s1 + $0x6a0] sm:$0xff]  ;;  %v580_v43 = vunpack.c.l.bf16 %v174_v32  ;;  %v576_v49 = vunpack.c.l.bf16 %v172_v39 }
  0x3b   :  { %983 = vmatprep.subr.mxu1 %v489_v44  ;;  %913 = vmatpush2.msra.mxu0 %v360_v46  ;;  %v708_v44 = vunpack.c.l.bf16 %v238_v33  ;;  %v234_v46 = vld [vmem:[%s4056_s1 + $0x690] sm:$0xff]  ;;  %v705_v48 = vunpack.c.h.bf16 %v236_v40 }
  0x3c   :  { %984 = vmatpush2.msra.mxu1 %v488_v47  ;;  %914 = vmatprep.subr.mxu0 %v357_v51  ;;  %v577_v47 = vunpack.c.h.bf16 %v172_v39  ;;  %v704_v51 = vunpack.c.l.bf16 %v236_v40  ;;  %v701_v55 = vunpack.c.h.bf16 %v234_v46  ;;  %v700_v57 = vunpack.c.l.bf16 %v234_v46 }
  0x3d   :  { %985 = vmatprep.subr.mxu1 %v485_v52  ;;  %915 = vmatpush2.msra.mxu0 %v356_v53  ;;  %v168_v52 = vld [vmem:[%s4056_s1 + $0x480] sm:$0xff] }
  0x3e   :  { %986 = vmatpush2.msra.mxu1 %v484_v54  ;;  %916 = vmatprep.subr.mxu0 %v353_v58  ;;  %v232_v53 = vld [vmem:[%s4056_s1 + $0x680] sm:$0xff]  ;;  %v573_v54 = vunpack.c.h.bf16 %v170_v45  ;;  %v166_v58 = vld [vmem:[%s4056_s1 + $0x470] sm:$0xff]  ;;  %v568_v62 = vunpack.c.l.bf16 %v168_v52 }
  0x3f   :  { %987 = vmatprep.subr.mxu1 %v481_v59  ;;  %917 = vmatpush2.msra.mxu0 %v352_v60  ;;  %v230_v59 = vld [vmem:[%s4056_s1 + $0x670] sm:$0xff]  ;;  %v569_v60 = vunpack.c.h.bf16 %v168_v52  ;;  %v696_v63 = vunpack.c.l.bf16 %v232_v53 }
  0x40   :  { %988 = vmatpush2.msra.mxu1 %v480_v61  ;;  %918 = vmatprep.subr.mxu0 %v349_v1  ;;  %v697_v61 = vunpack.c.h.bf16 %v232_v53  ;;  %v164_v1 = vld [vmem:[%s4056_s1 + $0x460] sm:$0xff] }
  0x41   :  { %989 = vmatprep.subr.mxu1 %v477_v2  ;;  %919 = vmatpush2.msra.mxu0 %v348_v3  ;;  %v228_v2 = vld [vmem:[%s4056_s1 + $0x660] sm:$0xff]  ;;  %v565_v3 = vunpack.c.h.bf16 %v166_v58  ;;  %v561_v11 = vunpack.c.h.bf16 %v164_v1 }
  0x42   :  { %990 = vmatpush2.msra.mxu1 %v476_v4  ;;  %920 = vmatprep.subr.mxu0 %v345_v6  ;;  %v693_v4 = vunpack.c.h.bf16 %v230_v59  ;;  %v564_v6 = vunpack.c.l.bf16 %v166_v58  ;;  %v688_v15 = vunpack.c.l.bf16 %v228_v2 }
  0x43   :  { %991 = vmatprep.subr.mxu1 %v473_v7  ;;  %921 = vmatpush2.msra.mxu0 %v344_v9  ;;  %v692_v7 = vunpack.c.l.bf16 %v230_v59  ;;  %v226_v9 = vld [vmem:[%s4056_s1 + $0x650] sm:$0xff] }
  0x44   :  { %922 = vmatprep.mubr.f32.mxu0 %v2789_v10  ;;  %992 = vmatpush2.msra.mxu1 %v472_v12  ;;  %v689_v12 = vunpack.c.h.bf16 %v228_v2  ;;  %v684_v21 = vunpack.c.l.bf16 %v226_v9 }
  0x45   :  { %923 = vmatmul.mubr.f32.vlgmr.msra.gmra.mxu0 %v2779_v0  ;;  %993 = vmatprep.mubr.f32.mxu1 %v2796_v13 }
  0x46   :  { %1000 = vmatprep.subr.mxu0 %v597_v14  ;;  %1071 = vmatprep.subr.mxu1 %v725_v17  ;;  %v560_v14 = vunpack.c.l.bf16 %v164_v1  ;;  %v224_v17 = vld [vmem:[%s4056_s1 + $0x640] sm:$0xff] }
  0x47   :  { %994 = vmatmul.mubr.f32.vlgmr.msra.gmra.mxu1 %v2782_v5  ;;  %1001 = vmatpush1.msra.mxu0 %v596_v18  ;;  %v557_v18 = vunpack.c.h.bf16 %v162_v8  ;;  %v680_v27 = vunpack.c.l.bf16 %v224_v17 }
  0x48   :  { %1072 = vmatpush1.msra.mxu1 %v724_v19  ;;  %1002 = vmatprep.subr.mxu0 %v593_v22  ;;  %v685_v19 = vunpack.c.h.bf16 %v226_v9  ;;  %v158_v22 = vld [vmem:[%s4056_s1 + $0x430] sm:$0xff] }
  0x49   :  { %1073 = vmatprep.subr.mxu1 %v721_v23  ;;  %1003 = vmatpush1.msra.mxu0 %v592_v24  ;;  %v222_v23 = vld [vmem:[%s4056_s1 + $0x630] sm:$0xff]  ;;  %v553_v24 = vunpack.c.h.bf16 %v160_v16  ;;  %v548_v32 = vunpack.c.l.bf16 %v158_v22 }
  0x4a   :  { %1074 = vmatpush1.msra.mxu1 %v720_v25  ;;  %1004 = vmatprep.subr.mxu0 %v589_v28  ;;  %v681_v25 = vunpack.c.h.bf16 %v224_v17  ;;  %v156_v28 = vld [vmem:[%s4056_s1 + $0x420] sm:$0xff]  ;;  %v676_v33 = vunpack.c.l.bf16 %v222_v23 }
  0x4b   :  { %1075 = vmatprep.subr.mxu1 %v717_v29  ;;  %1005 = vmatpush1.msra.mxu0 %v588_v30  ;;  %v220_v29 = vld [vmem:[%s4056_s1 + $0x620] sm:$0xff]  ;;  %v549_v30 = vunpack.c.h.bf16 %v158_v22  ;;  %v544_v39 = vunpack.c.l.bf16 %v156_v28 }
  0x4c   :  { %1076 = vmatpush1.msra.mxu1 %v716_v31  ;;  %1006 = vmatprep.subr.mxu0 %v585_v34  ;;  %v677_v31 = vunpack.c.h.bf16 %v222_v23  ;;  %v154_v34 = vld [vmem:[%s4056_s1 + $0x410] sm:$0xff]  ;;  %v672_v40 = vunpack.c.l.bf16 %v220_v29 }
  0x4d   :  { %1077 = vmatprep.subr.mxu1 %v713_v36  ;;  %1007 = vmatpush1.msra.mxu0 %v584_v37  ;;  %v218_v36 = vld [vmem:[%s4056_s1 + $0x610] sm:$0xff]  ;;  %v545_v37 = vunpack.c.h.bf16 %v156_v28  ;;  %v540_v45 = vunpack.c.l.bf16 %v154_v34 }
  0x4e   :  { %1078 = vmatpush1.msra.mxu1 %v712_v38  ;;  %1008 = vmatprep.subr.mxu0 %v581_v41  ;;  %v673_v38 = vunpack.c.h.bf16 %v220_v29  ;;  %v152_v41 = vld [vmem:[%s4056_s1 + $0x400] sm:$0xff]  ;;  %v668_v46 = vunpack.c.l.bf16 %v218_v36 }
  0x4f   :  { %1079 = vmatprep.subr.mxu1 %v709_v42  ;;  %1009 = vmatpush1.msra.mxu0 %v580_v43  ;;  %v216_v42 = vld [vmem:[%s4056_s1 + $0x600] sm:$0xff]  ;;  %v541_v43 = vunpack.c.h.bf16 %v154_v34  ;;  %v536_v52 = vunpack.c.l.bf16 %v152_v41 }
  0x50   :  { %1080 = vmatpush1.msra.mxu1 %v708_v44  ;;  %1010 = vmatprep.subr.mxu0 %v577_v47  ;;  %v669_v44 = vunpack.c.h.bf16 %v218_v36  ;;  %v214_v47 = vld [vmem:[%s4056_s1 + $0x5f0] sm:$0xff]  ;;  %v664_v53 = vunpack.c.l.bf16 %v216_v42 }
  0x51   :  { %1081 = vmatprep.subr.mxu1 %v705_v48  ;;  %1011 = vmatpush1.msra.mxu0 %v576_v49  ;;  %v278_v48 = vld [vmem:[%s4056_s1 + $0x7f0] sm:$0xff]  ;;  %v537_v49 = vunpack.c.h.bf16 %v152_v41  ;;  %v660_v58 = vunpack.c.l.bf16 %v214_v47 }
  0x52   :  { %1082 = vmatpush1.msra.mxu1 %v704_v51  ;;  %1012 = vmatprep.subr.mxu0 %v573_v54  ;;  %v665_v51 = vunpack.c.h.bf16 %v216_v42  ;;  %v212_v54 = vld [vmem:[%s4056_s1 + $0x5e0] sm:$0xff]  ;;  %v788_v59 = vunpack.c.l.bf16 %v278_v48 }
  0x53   :  { %1083 = vmatprep.subr.mxu1 %v701_v55  ;;  %1013 = vmatpush1.msra.mxu0 %v572_v56  ;;  %v276_v55 = vld [vmem:[%s4056_s1 + $0x7e0] sm:$0xff]  ;;  %v661_v56 = vunpack.c.h.bf16 %v214_v47  ;;  %v656_v1 = vunpack.c.l.bf16 %v212_v54 }
  0x54   :  { %1084 = vmatpush1.msra.mxu1 %v700_v57  ;;  %1014 = vmatprep.subr.mxu0 %v569_v60  ;;  %v789_v57 = vunpack.c.h.bf16 %v278_v48  ;;  %v210_v60 = vld [vmem:[%s4056_s1 + $0x5d0] sm:$0xff]  ;;  %v784_v2 = vunpack.c.l.bf16 %v276_v55 }
  0x55   :  { %1085 = vmatprep.subr.mxu1 %v697_v61  ;;  %1015 = vmatpush1.msra.mxu0 %v568_v62  ;;  %v274_v61 = vld [vmem:[%s4056_s1 + $0x7d0] sm:$0xff]  ;;  %v657_v62 = vunpack.c.h.bf16 %v212_v54  ;;  %v652_v8 = vunpack.c.l.bf16 %v210_v60 }
  0x56   :  { %1086 = vmatpush1.msra.mxu1 %v696_v63  ;;  %1016 = vmatprep.subr.mxu0 %v565_v3  ;;  %v785_v63 = vunpack.c.h.bf16 %v276_v55  ;;  %v208_v3 = vld [vmem:[%s4056_s1 + $0x5c0] sm:$0xff]  ;;  %v780_v9 = vunpack.c.l.bf16 %v274_v61 }
  0x57   :  { %1087 = vmatprep.subr.mxu1 %v693_v4  ;;  %1017 = vmatpush1.msra.mxu0 %v564_v6  ;;  %v272_v4 = vld [vmem:[%s4056_s1 + $0x7c0] sm:$0xff]  ;;  %v653_v6 = vunpack.c.h.bf16 %v210_v60  ;;  %v648_v16 = vunpack.c.l.bf16 %v208_v3 }
  0x58   :  { %1088 = vmatpush1.msra.mxu1 %v692_v7  ;;  %1018 = vmatprep.subr.mxu0 %v561_v11  ;;  %v781_v7 = vunpack.c.h.bf16 %v274_v61  ;;  %v206_v11 = vld [vmem:[%s4056_s1 + $0x5b0] sm:$0xff]  ;;  %v776_v17 = vunpack.c.l.bf16 %v272_v4 }
  0x59   :  { %1089 = vmatprep.subr.mxu1 %v689_v12  ;;  %1019 = vmatpush1.msra.mxu0 %v560_v14  ;;  %v270_v12 = vld [vmem:[%s4056_s1 + $0x7b0] sm:$0xff]  ;;  %v649_v14 = vunpack.c.h.bf16 %v208_v3  ;;  %v644_v22 = vunpack.c.l.bf16 %v206_v11 }
  0x5a   :  { %1090 = vmatpush1.msra.mxu1 %v688_v15  ;;  %1020 = vmatprep.subr.mxu0 %v557_v18  ;;  %v777_v15 = vunpack.c.h.bf16 %v272_v4  ;;  %v204_v18 = vld [vmem:[%s4056_s1 + $0x5a0] sm:$0xff]  ;;  %v772_v23 = vunpack.c.l.bf16 %v270_v12 }
  0x5b   :  { %1091 = vmatprep.subr.mxu1 %v685_v19  ;;  %1021 = vmatpush1.msra.mxu0 %v556_v20  ;;  %v268_v19 = vld [vmem:[%s4056_s1 + $0x7a0] sm:$0xff]  ;;  %v645_v20 = vunpack.c.h.bf16 %v206_v11  ;;  %v640_v28 = vunpack.c.l.bf16 %v204_v18 }
  0x5c   :  { %1092 = vmatpush1.msra.mxu1 %v684_v21  ;;  %1022 = vmatprep.subr.mxu0 %v553_v24  ;;  %v773_v21 = vunpack.c.h.bf16 %v270_v12  ;;  %v202_v24 = vld [vmem:[%s4056_s1 + $0x590] sm:$0xff]  ;;  %v768_v29 = vunpack.c.l.bf16 %v268_v19 }
  0x5d   :  { %1093 = vmatprep.subr.mxu1 %v681_v25  ;;  %1023 = vmatpush1.msra.mxu0 %v552_v26  ;;  %v266_v25 = vld [vmem:[%s4056_s1 + $0x790] sm:$0xff]  ;;  %v641_v26 = vunpack.c.h.bf16 %v204_v18  ;;  %v636_v34 = vunpack.c.l.bf16 %v202_v24 }
  0x5e   :  { %1094 = vmatpush1.msra.mxu1 %v680_v27  ;;  %1024 = vmatprep.subr.mxu0 %v549_v30  ;;  %v769_v27 = vunpack.c.h.bf16 %v268_v19  ;;  %v200_v30 = vld [vmem:[%s4056_s1 + $0x580] sm:$0xff]  ;;  %v764_v36 = vunpack.c.l.bf16 %v266_v25 }
  0x5f   :  { %1095 = vmatprep.subr.mxu1 %v677_v31  ;;  %1025 = vmatpush1.msra.mxu0 %v548_v32  ;;  %v264_v31 = vld [vmem:[%s4056_s1 + $0x780] sm:$0xff]  ;;  %v637_v32 = vunpack.c.h.bf16 %v202_v24  ;;  %v632_v41 = vunpack.c.l.bf16 %v200_v30 }
  0x60   :  { %1096 = vmatpush1.msra.mxu1 %v676_v33  ;;  %1026 = vmatprep.subr.mxu0 %v545_v37  ;;  %v765_v33 = vunpack.c.h.bf16 %v266_v25  ;;  %v198_v37 = vld [vmem:[%s4056_s1 + $0x570] sm:$0xff]  ;;  %v760_v42 = vunpack.c.l.bf16 %v264_v31 }
  0x61   :  { %1097 = vmatprep.subr.mxu1 %v673_v38  ;;  %1027 = vmatpush1.msra.mxu0 %v544_v39  ;;  %v262_v38 = vld [vmem:[%s4056_s1 + $0x770] sm:$0xff]  ;;  %v633_v39 = vunpack.c.h.bf16 %v200_v30  ;;  %v628_v47 = vunpack.c.l.bf16 %v198_v37 }
  0x62   :  { %1098 = vmatpush1.msra.mxu1 %v672_v40  ;;  %1028 = vmatprep.subr.mxu0 %v541_v43  ;;  %v761_v40 = vunpack.c.h.bf16 %v264_v31  ;;  %v196_v43 = vld [vmem:[%s4056_s1 + $0x560] sm:$0xff]  ;;  %v756_v48 = vunpack.c.l.bf16 %v262_v38 }
  0x63   :  { %1099 = vmatprep.subr.mxu1 %v669_v44  ;;  %1029 = vmatpush1.msra.mxu0 %v540_v45  ;;  %v260_v44 = vld [vmem:[%s4056_s1 + $0x760] sm:$0xff]  ;;  %v629_v45 = vunpack.c.h.bf16 %v198_v37  ;;  %v624_v54 = vunpack.c.l.bf16 %v196_v43 }
  0x64   :  { %1100 = vmatpush1.msra.mxu1 %v668_v46  ;;  %1030 = vmatprep.subr.mxu0 %v537_v49  ;;  %v757_v46 = vunpack.c.h.bf16 %v262_v38  ;;  %v194_v49 = vld [vmem:[%s4056_s1 + $0x550] sm:$0xff]  ;;  %v752_v55 = vunpack.c.l.bf16 %v260_v44 }
  0x65   :  { %1101 = vmatprep.subr.mxu1 %v665_v51  ;;  %1031 = vmatpush1.msra.mxu0 %v536_v52  ;;  %v258_v51 = vld [vmem:[%s4056_s1 + $0x750] sm:$0xff]  ;;  %v625_v52 = vunpack.c.h.bf16 %v196_v43  ;;  %v620_v60 = vunpack.c.l.bf16 %v194_v49 }
  0x66   :  { %1102 = vmatpush1.msra.mxu1 %v664_v53  ;;  %1032 = vmatprep.subr.mxu0 %v661_v56  ;;  %v753_v53 = vunpack.c.h.bf16 %v260_v44  ;;  %v192_v56 = vld [vmem:[%s4056_s1 + $0x540] sm:$0xff]  ;;  %v748_v61 = vunpack.c.l.bf16 %v258_v51 }
  0x67   :  { %1103 = vmatprep.subr.mxu1 %v789_v57  ;;  %1033 = vmatpush2.msra.mxu0 %v660_v58  ;;  %v256_v57 = vld [vmem:[%s4056_s1 + $0x740] sm:$0xff]  ;;  %v621_v58 = vunpack.c.h.bf16 %v194_v49  ;;  %v616_v4 = vunpack.c.l.bf16 %v192_v56 }
  0x68   :  { %1104 = vmatpush2.msra.mxu1 %v788_v59  ;;  %1034 = vmatprep.subr.mxu0 %v657_v62  ;;  %v749_v59 = vunpack.c.h.bf16 %v258_v51  ;;  %v190_v62 = vld [vmem:[%s4056_s1 + $0x530] sm:$0xff]  ;;  %v745_v3 = vunpack.c.h.bf16 %v256_v57 }
  0x69   :  { %1105 = vmatprep.subr.mxu1 %v785_v63  ;;  %1035 = vmatpush2.msra.mxu0 %v656_v1  ;;  %v254_v63 = vld [vmem:[%s4056_s1 + $0x730] sm:$0xff]  ;;  %v23_v1 = vld [vmem:[%s4057_s0 + $0x8] sm:$0xff] }
  0x6a   :  { %1106 = vmatpush2.msra.mxu1 %v784_v2  ;;  %1036 = vmatprep.subr.mxu0 %v653_v6  ;;  %v617_v2 = vunpack.c.h.bf16 %v192_v56  ;;  %v744_v6 = vunpack.c.l.bf16 %v256_v57  ;;  %v741_v11 = vunpack.c.h.bf16 %v254_v63  ;;  %v833_v12 = vcombine.high %v23_v1, %v23_v1 }
  0x6b   :  { %1107 = vmatprep.subr.mxu1 %v781_v7  ;;  %1037 = vmatpush2.msra.mxu0 %v652_v8  ;;  %v188_v7 = vld [vmem:[%s4056_s1 + $0x520] sm:$0xff]  ;;  %v2992_v24 = vrot.slane %v23_v1, %v2764_v50  ;;  %v45_v1 = vld [vmem:[%s4056_s1 + $0xa8] sm:$0xff] }
  0x6c   :  { %1108 = vmatpush2.msra.mxu1 %v780_v9  ;;  %1038 = vmatprep.subr.mxu0 %v649_v14  ;;  %v252_v8 = vld [vmem:[%s4056_s1 + $0x720] sm:$0xff]  ;;  %v613_v9 = vunpack.c.h.bf16 %v190_v62  ;;  %v612_v14 = vunpack.c.l.bf16 %v190_v62  ;;  %v609_v18 = vunpack.c.h.bf16 %v188_v7 }
  0x6d   :  { %1109 = vmatprep.subr.mxu1 %v777_v15  ;;  %1039 = vmatpush2.msra.mxu0 %v648_v16  ;;  %v740_v15 = vunpack.c.l.bf16 %v254_v63  ;;  %v186_v16 = vld [vmem:[%s4056_s1 + $0x510] sm:$0xff]  ;;  %v737_v19 = vunpack.c.h.bf16 %v252_v8 }
  0x6e   :  { %1110 = vmatpush2.msra.mxu1 %v776_v17  ;;  %1040 = vmatprep.subr.mxu0 %v645_v20  ;;  %v250_v17 = vld [vmem:[%s4056_s1 + $0x710] sm:$0xff]  ;;  %v608_v20 = vunpack.c.l.bf16 %v188_v7  ;;  %v605_v25 = vunpack.c.h.bf16 %v186_v16 }
  0x6f   :  { %1111 = vmatprep.subr.mxu1 %v773_v21  ;;  %1041 = vmatpush2.msra.mxu0 %v644_v22  ;;  %v736_v21 = vunpack.c.l.bf16 %v252_v8  ;;  %v184_v22 = vld [vmem:[%s4056_s1 + $0x500] sm:$0xff]  ;;  %v43_v8 = vld [vmem:[%s4056_s1 + $0x98] sm:$0xff] }
  0x70   :  { %1112 = vmatpush2.msra.mxu1 %v772_v23  ;;  %1042 = vmatprep.subr.mxu0 %v641_v26  ;;  %v248_v23 = vld [vmem:[%s4056_s1 + $0x700] sm:$0xff]  ;;  %v733_v26 = vunpack.c.h.bf16 %v250_v17  ;;  %v601_v30 = vunpack.c.h.bf16 %v184_v22 }
  0x71   :  { %1113 = vmatprep.subr.mxu1 %v769_v27  ;;  %1043 = vmatpush2.msra.mxu0 %v640_v28  ;;  %v604_v27 = vunpack.c.l.bf16 %v186_v16  ;;  %v732_v28 = vunpack.c.l.bf16 %v250_v17  ;;  %v729_v31 = vunpack.c.h.bf16 %v248_v23  ;;  %v728_v37 = vunpack.c.l.bf16 %v248_v23  ;;  %v41_v16 = vld [vmem:[%s4056_s1 + $0x88] sm:$0xff]  ;;  %v103_v23 = vld [vmem:[%s4056_s1 + $0x278] sm:$0xff] }
  0x72   :  { %1114 = vmatpush2.msra.mxu1 %v768_v29  ;;  %1044 = vmatprep.subr.mxu0 %v637_v32  ;;  %v2995_v29 = vrot.slane %v833_v12, %v2764_v50  ;;  %v55_v32 = vld [vmem:[%s4056_s1 + $0xf8] sm:$0xff]  ;;  %v105_v17 = vld [vmem:[%s4056_s1 + $0x288] sm:$0xff] }
  0x73   :  { %1115 = vmatprep.subr.mxu1 %v765_v33  ;;  %1045 = vmatpush2.msra.mxu0 %v636_v34  ;;  %v600_v33 = vunpack.c.l.bf16 %v184_v22  ;;  %v3002_v34 = vcombine.high %v2992_v24, %v2992_v24  ;;  %v342_v43 = vunpack.c.l.bf16 %v55_v32  ;;  %v39_v22 = vld [vmem:[%s4056_s1 + $0x78] sm:$0xff] }
  0x74   :  { %1116 = vmatpush2.msra.mxu1 %v764_v36  ;;  %1046 = vmatprep.subr.mxu0 %v633_v39  ;;  %v119_v36 = vld [vmem:[%s4056_s1 + $0x2f8] sm:$0xff]  ;;  %v3009_v38 = vcombine.high %v2995_v29, %v2995_v29  ;;  %v343_v39 = vunpack.c.h.bf16 %v55_v32  ;;  %v311_v32 = vunpack.c.h.bf16 %v39_v22 }
  0x75   :  { %1117 = vmatprep.subr.mxu1 %v761_v40  ;;  %1047 = vmatpush2.msra.mxu0 %v632_v41  ;;  %v53_v40 = vld [vmem:[%s4056_s1 + $0xe8] sm:$0xff]  ;;  %v470_v44 = vunpack.c.l.bf16 %v119_v36 }
  0x76   :  { %1118 = vmatpush2.msra.mxu1 %v760_v42  ;;  %1048 = vmatprep.subr.mxu0 %v629_v45  ;;  %v117_v41 = vld [vmem:[%s4056_s1 + $0x2e8] sm:$0xff]  ;;  %v471_v42 = vunpack.c.h.bf16 %v119_v36  ;;  %v51_v45 = vld [vmem:[%s4056_s1 + $0xd8] sm:$0xff]  ;;  %v338_v49 = vunpack.c.l.bf16 %v53_v40  ;;  %v310_v36 = vunpack.c.l.bf16 %v39_v22 }
  0x77   :  { %1119 = vmatprep.subr.mxu1 %v757_v46  ;;  %1049 = vmatpush2.msra.mxu0 %v628_v47  ;;  %v115_v46 = vld [vmem:[%s4056_s1 + $0x2d8] sm:$0xff]  ;;  %v339_v47 = vunpack.c.h.bf16 %v53_v40  ;;  %v466_v51 = vunpack.c.l.bf16 %v117_v41  ;;  %v334_v56 = vunpack.c.l.bf16 %v51_v45  ;;  %v85_v22 = vld [vmem:[%s4056_s1 + $0x1e8] sm:$0xff] }
  0x78   :  { %1120 = vmatpush2.msra.mxu1 %v756_v48  ;;  %1050 = vmatprep.subr.mxu0 %v625_v52  ;;  %v467_v48 = vunpack.c.h.bf16 %v117_v41  ;;  %v49_v52 = vld [vmem:[%s4056_s1 + $0xc8] sm:$0xff]  ;;  %v462_v57 = vunpack.c.l.bf16 %v115_v46  ;;  %v99_v40 = vld [vmem:[%s4056_s1 + $0x258] sm:$0xff] }
  0x79   :  { %1121 = vmatprep.subr.mxu1 %v753_v53  ;;  %1051 = vmatpush2.msra.mxu0 %v624_v54  ;;  %v113_v53 = vld [vmem:[%s4056_s1 + $0x2c8] sm:$0xff]  ;;  %v335_v54 = vunpack.c.h.bf16 %v51_v45  ;;  %v330_v62 = vunpack.c.l.bf16 %v49_v52 }
  0x7a   :  { %1122 = vmatpush2.msra.mxu1 %v752_v55  ;;  %1052 = vmatprep.subr.mxu0 %v621_v58  ;;  %v463_v55 = vunpack.c.h.bf16 %v115_v46  ;;  %v47_v58 = vld [vmem:[%s4056_s1 + $0xb8] sm:$0xff]  ;;  %v458_v63 = vunpack.c.l.bf16 %v113_v53  ;;  %v33_v45 = vld [vmem:[%s4056_s1 + $0x48] sm:$0xff] }
  0x7b   :  { %1123 = vmatprep.subr.mxu1 %v749_v59  ;;  %1053 = vmatpush2.msra.mxu0 %v620_v60  ;;  %v111_v59 = vld [vmem:[%s4056_s1 + $0x2b8] sm:$0xff]  ;;  %v331_v60 = vunpack.c.h.bf16 %v49_v52  ;;  %v97_v46 = vld [vmem:[%s4056_s1 + $0x248] sm:$0xff] }
  0x7c   :  { %1124 = vmatpush2.msra.mxu1 %v748_v61  ;;  %1054 = vmatprep.subr.mxu0 %v617_v2  ;;  %v459_v61 = vunpack.c.h.bf16 %v113_v53  ;;  %v109_v2 = vld [vmem:[%s4056_s1 + $0x2a8] sm:$0xff]  ;;  %v454_v7 = vunpack.c.l.bf16 %v111_v59  ;;  %v31_v52 = vld [vmem:[%s4056_s1 + $0x38] sm:$0xff] }
  0x7d   :  { %1125 = vmatprep.subr.mxu1 %v745_v3  ;;  %1055 = vmatpush2.msra.mxu0 %v616_v4  ;;  %v327_v3 = vunpack.c.h.bf16 %v47_v58  ;;  %v455_v4 = vunpack.c.h.bf16 %v111_v59  ;;  %v451_v12 = vunpack.c.h.bf16 %v109_v2  ;;  %v95_v53 = vld [vmem:[%s4056_s1 + $0x238] sm:$0xff]  ;;  %v93_v59 = vld [vmem:[%s4056_s1 + $0x228] sm:$0xff] }
  0x7e   :  { %1126 = vmatpush2.msra.mxu1 %v744_v6  ;;  %1056 = vmatprep.subr.mxu0 %v613_v9  ;;  %v326_v6 = vunpack.c.l.bf16 %v47_v58  ;;  %v107_v9 = vld [vmem:[%s4056_s1 + $0x298] sm:$0xff]  ;;  %v29_v58 = vld [vmem:[%s4056_s1 + $0x28] sm:$0xff] }
  0x7f   :  { %1127 = vmatprep.subr.mxu1 %v741_v11  ;;  %1057 = vmatpush2.msra.mxu0 %v612_v14  ;;  %v323_v11 = vunpack.c.h.bf16 %v45_v1  ;;  %v322_v14 = vunpack.c.l.bf16 %v45_v1  ;;  %v27_v1 = vld [vmem:[%s4056_s1 + $0x18] sm:$0xff] }
  0x80   :  { %1128 = vmatpush2.msra.mxu1 %v740_v15  ;;  %1058 = vmatprep.subr.mxu0 %v609_v18  ;;  %v450_v15 = vunpack.c.l.bf16 %v109_v2  ;;  %v319_v18 = vunpack.c.h.bf16 %v43_v8  ;;  %v91_v2 = vld [vmem:[%s4056_s1 + $0x218] sm:$0xff] }
  0x81   :  { %1129 = vmatprep.subr.mxu1 %v737_v19  ;;  %1059 = vmatpush2.msra.mxu0 %v608_v20  ;;  %v447_v19 = vunpack.c.h.bf16 %v107_v9  ;;  %v318_v20 = vunpack.c.l.bf16 %v43_v8  ;;  %v25_v8 = vld [vmem:[%s4056_s1 + $0x8] sm:$0xff] }
  0x82   :  { %1130 = vmatpush2.msra.mxu1 %v736_v21  ;;  %1060 = vmatprep.subr.mxu0 %v605_v25  ;;  %v446_v21 = vunpack.c.l.bf16 %v107_v9  ;;  %v315_v25 = vunpack.c.h.bf16 %v41_v16  ;;  %v89_v9 = vld [vmem:[%s4056_s1 + $0x208] sm:$0xff] }
  0x83   :  { %1131 = vmatprep.subr.mxu1 %v733_v26  ;;  %1061 = vmatpush2.msra.mxu0 %v604_v27  ;;  %v443_v26 = vunpack.c.h.bf16 %v105_v17  ;;  %v314_v27 = vunpack.c.l.bf16 %v41_v16  ;;  %v87_v16 = vld [vmem:[%s4056_s1 + $0x1f8] sm:$0xff] }
  0x84   :  { %1132 = vmatpush2.msra.mxu1 %v732_v28  ;;  %1062 = vmatprep.subr.mxu0 %v601_v30  ;;  %v442_v28 = vunpack.c.l.bf16 %v105_v17  ;;  %v37_v30 = vld [vmem:[%s4056_s1 + $0x68] sm:$0xff]  ;;  %v151_v17 = vld [vmem:[%s4056_s1 + $0x3f8] sm:$0xff] }
  0x85   :  { %1133 = vmatprep.subr.mxu1 %v729_v31  ;;  %1063 = vmatpush2.msra.mxu0 %v600_v33  ;;  %v101_v31 = vld [vmem:[%s4056_s1 + $0x268] sm:$0xff]  ;;  %v439_v33 = vunpack.c.h.bf16 %v103_v23  ;;  %v307_v41 = vunpack.c.h.bf16 %v37_v30 }
  0x86   :  { %1064 = vmatprep.mubr.f32.mxu0 %v3002_v34  ;;  %1134 = vmatpush2.msra.mxu1 %v728_v37  ;;  %v438_v37 = vunpack.c.l.bf16 %v103_v23  ;;  %v149_v23 = vld [vmem:[%s4056_s1 + $0x3e8] sm:$0xff] }
  0x87   :  { %1065 = vmatmul.mubr.f32.vlgmr.msra.gmra.mxu0 %v2992_v24  ;;  %1135 = vmatprep.mubr.f32.mxu1 %v3009_v38 }
  0x88   :  { %1142 = vmatprep.subr.mxu0 %v343_v39  ;;  %1213 = vmatprep.subr.mxu1 %v471_v42  ;;  %v35_v39 = vld [vmem:[%s4056_s1 + $0x58] sm:$0xff]  ;;  %v435_v42 = vunpack.c.h.bf16 %v101_v31 }
  0x89   :  { %1136 = vmatmul.mubr.f32.vlgmr.msra.gmra.mxu1 %v2995_v29  ;;  %1143 = vmatpush1.msra.mxu0 %v342_v43  ;;  %v306_v43 = vunpack.c.l.bf16 %v37_v30  ;;  %v83_v30 = vld [vmem:[%s4056_s1 + $0x1d8] sm:$0xff] }
  0x8a   :  { %1214 = vmatpush1.msra.mxu1 %v470_v44  ;;  %1144 = vmatprep.subr.mxu0 %v339_v47  ;;  %v434_v44 = vunpack.c.l.bf16 %v101_v31  ;;  %v303_v47 = vunpack.c.h.bf16 %v35_v39  ;;  %v147_v31 = vld [vmem:[%s4056_s1 + $0x3d8] sm:$0xff] }
  0x8b   :  { %1215 = vmatprep.subr.mxu1 %v467_v48  ;;  %1145 = vmatpush1.msra.mxu0 %v338_v49  ;;  %v431_v48 = vunpack.c.h.bf16 %v99_v40  ;;  %v302_v49 = vunpack.c.l.bf16 %v35_v39  ;;  %v81_v39 = vld [vmem:[%s4056_s1 + $0x1c8] sm:$0xff] }
  0x8c   :  { %1216 = vmatpush1.msra.mxu1 %v466_v51  ;;  %1146 = vmatprep.subr.mxu0 %v335_v54  ;;  %v430_v51 = vunpack.c.l.bf16 %v99_v40  ;;  %v299_v54 = vunpack.c.h.bf16 %v33_v45  ;;  %v145_v40 = vld [vmem:[%s4056_s1 + $0x3c8] sm:$0xff] }
  0x8d   :  { %1217 = vmatprep.subr.mxu1 %v463_v55  ;;  %1147 = vmatpush1.msra.mxu0 %v334_v56  ;;  %v427_v55 = vunpack.c.h.bf16 %v97_v46  ;;  %v298_v56 = vunpack.c.l.bf16 %v33_v45  ;;  %v79_v45 = vld [vmem:[%s4056_s1 + $0x1b8] sm:$0xff] }
  0x8e   :  { %1218 = vmatpush1.msra.mxu1 %v462_v57  ;;  %1148 = vmatprep.subr.mxu0 %v331_v60  ;;  %v426_v57 = vunpack.c.l.bf16 %v97_v46  ;;  %v295_v60 = vunpack.c.h.bf16 %v31_v52  ;;  %v143_v46 = vld [vmem:[%s4056_s1 + $0x3b8] sm:$0xff] }
  0x8f   :  { %1219 = vmatprep.subr.mxu1 %v459_v61  ;;  %1149 = vmatpush1.msra.mxu0 %v330_v62  ;;  %v423_v61 = vunpack.c.h.bf16 %v95_v53  ;;  %v294_v62 = vunpack.c.l.bf16 %v31_v52  ;;  %v77_v52 = vld [vmem:[%s4056_s1 + $0x1a8] sm:$0xff] }
  0x90   :  { %1220 = vmatpush1.msra.mxu1 %v458_v63  ;;  %1150 = vmatprep.subr.mxu0 %v327_v3  ;;  %v422_v63 = vunpack.c.l.bf16 %v95_v53  ;;  %v291_v3 = vunpack.c.h.bf16 %v29_v58  ;;  %v141_v53 = vld [vmem:[%s4056_s1 + $0x3a8] sm:$0xff] }
  0x91   :  { %1221 = vmatprep.subr.mxu1 %v455_v4  ;;  %1151 = vmatpush1.msra.mxu0 %v326_v6  ;;  %v419_v4 = vunpack.c.h.bf16 %v93_v59  ;;  %v290_v6 = vunpack.c.l.bf16 %v29_v58  ;;  %v75_v58 = vld [vmem:[%s4056_s1 + $0x198] sm:$0xff] }
  0x92   :  { %1222 = vmatpush1.msra.mxu1 %v454_v7  ;;  %1152 = vmatprep.subr.mxu0 %v323_v11  ;;  %v418_v7 = vunpack.c.l.bf16 %v93_v59  ;;  %v287_v11 = vunpack.c.h.bf16 %v27_v1  ;;  %v139_v59 = vld [vmem:[%s4056_s1 + $0x398] sm:$0xff] }
  0x93   :  { %1223 = vmatprep.subr.mxu1 %v451_v12  ;;  %1153 = vmatpush1.msra.mxu0 %v322_v14  ;;  %v415_v12 = vunpack.c.h.bf16 %v91_v2  ;;  %v286_v14 = vunpack.c.l.bf16 %v27_v1  ;;  %v73_v1 = vld [vmem:[%s4056_s1 + $0x188] sm:$0xff] }
  0x94   :  { %1224 = vmatpush1.msra.mxu1 %v450_v15  ;;  %1154 = vmatprep.subr.mxu0 %v319_v18  ;;  %v414_v15 = vunpack.c.l.bf16 %v91_v2  ;;  %v283_v18 = vunpack.c.h.bf16 %v25_v8  ;;  %v137_v2 = vld [vmem:[%s4056_s1 + $0x388] sm:$0xff] }
  0x95   :  { %1225 = vmatprep.subr.mxu1 %v447_v19  ;;  %1155 = vmatpush1.msra.mxu0 %v318_v20  ;;  %v411_v19 = vunpack.c.h.bf16 %v89_v9  ;;  %v282_v20 = vunpack.c.l.bf16 %v25_v8  ;;  %v71_v8 = vld [vmem:[%s4056_s1 + $0x178] sm:$0xff] }
  0x96   :  { %1226 = vmatpush1.msra.mxu1 %v446_v21  ;;  %1156 = vmatprep.subr.mxu0 %v315_v25  ;;  %v410_v21 = vunpack.c.l.bf16 %v89_v9  ;;  %v407_v25 = vunpack.c.h.bf16 %v87_v16  ;;  %v135_v9 = vld [vmem:[%s4056_s1 + $0x378] sm:$0xff] }
  0x97   :  { %1227 = vmatprep.subr.mxu1 %v443_v26  ;;  %1157 = vmatpush1.msra.mxu0 %v314_v27  ;;  %v535_v26 = vunpack.c.h.bf16 %v151_v17  ;;  %v406_v27 = vunpack.c.l.bf16 %v87_v16  ;;  %v69_v16 = vld [vmem:[%s4056_s1 + $0x168] sm:$0xff] }
  0x98   :  { %1228 = vmatpush1.msra.mxu1 %v442_v28  ;;  %1158 = vmatprep.subr.mxu0 %v311_v32  ;;  %v534_v28 = vunpack.c.l.bf16 %v151_v17  ;;  %v403_v32 = vunpack.c.h.bf16 %v85_v22  ;;  %v133_v17 = vld [vmem:[%s4056_s1 + $0x368] sm:$0xff] }
  0x99   :  { %1229 = vmatprep.subr.mxu1 %v439_v33  ;;  %1159 = vmatpush1.msra.mxu0 %v310_v36  ;;  %v531_v33 = vunpack.c.h.bf16 %v149_v23  ;;  %v402_v36 = vunpack.c.l.bf16 %v85_v22  ;;  %v67_v22 = vld [vmem:[%s4056_s1 + $0x158] sm:$0xff] }
  0x9a   :  { %1230 = vmatpush1.msra.mxu1 %v438_v37  ;;  %1160 = vmatprep.subr.mxu0 %v307_v41  ;;  %v530_v37 = vunpack.c.l.bf16 %v149_v23  ;;  %v399_v41 = vunpack.c.h.bf16 %v83_v30  ;;  %v131_v23 = vld [vmem:[%s4056_s1 + $0x358] sm:$0xff] }
  0x9b   :  { %1231 = vmatprep.subr.mxu1 %v435_v42  ;;  %1161 = vmatpush1.msra.mxu0 %v306_v43  ;;  %v527_v42 = vunpack.c.h.bf16 %v147_v31  ;;  %v398_v43 = vunpack.c.l.bf16 %v83_v30  ;;  %v65_v30 = vld [vmem:[%s4056_s1 + $0x148] sm:$0xff] }
  0x9c   :  { %1232 = vmatpush1.msra.mxu1 %v434_v44  ;;  %1162 = vmatprep.subr.mxu0 %v303_v47  ;;  %v526_v44 = vunpack.c.l.bf16 %v147_v31  ;;  %v395_v47 = vunpack.c.h.bf16 %v81_v39  ;;  %v129_v31 = vld [vmem:[%s4056_s1 + $0x348] sm:$0xff] }
  0x9d   :  { %1233 = vmatprep.subr.mxu1 %v431_v48  ;;  %1163 = vmatpush1.msra.mxu0 %v302_v49  ;;  %v523_v48 = vunpack.c.h.bf16 %v145_v40  ;;  %v394_v49 = vunpack.c.l.bf16 %v81_v39  ;;  %v63_v39 = vld [vmem:[%s4056_s1 + $0x138] sm:$0xff] }
  0x9e   :  { %1234 = vmatpush1.msra.mxu1 %v430_v51  ;;  %1164 = vmatprep.subr.mxu0 %v299_v54  ;;  %v522_v51 = vunpack.c.l.bf16 %v145_v40  ;;  %v391_v54 = vunpack.c.h.bf16 %v79_v45  ;;  %v127_v40 = vld [vmem:[%s4056_s1 + $0x338] sm:$0xff] }
  0x9f   :  { %1235 = vmatprep.subr.mxu1 %v427_v55  ;;  %1165 = vmatpush1.msra.mxu0 %v298_v56  ;;  %v519_v55 = vunpack.c.h.bf16 %v143_v46  ;;  %v390_v56 = vunpack.c.l.bf16 %v79_v45  ;;  %v61_v45 = vld [vmem:[%s4056_s1 + $0x128] sm:$0xff] }
  0xa0   :  { %1236 = vmatpush1.msra.mxu1 %v426_v57  ;;  %1166 = vmatprep.subr.mxu0 %v295_v60  ;;  %v518_v57 = vunpack.c.l.bf16 %v143_v46  ;;  %v387_v60 = vunpack.c.h.bf16 %v77_v52  ;;  %v125_v46 = vld [vmem:[%s4056_s1 + $0x328] sm:$0xff] }
  0xa1   :  { %1237 = vmatprep.subr.mxu1 %v423_v61  ;;  %1167 = vmatpush1.msra.mxu0 %v294_v62  ;;  %v515_v61 = vunpack.c.h.bf16 %v141_v53  ;;  %v386_v62 = vunpack.c.l.bf16 %v77_v52  ;;  %v59_v52 = vld [vmem:[%s4056_s1 + $0x118] sm:$0xff] }
  0xa2   :  { %1238 = vmatpush1.msra.mxu1 %v422_v63  ;;  %1168 = vmatprep.subr.mxu0 %v291_v3  ;;  %v514_v63 = vunpack.c.l.bf16 %v141_v53  ;;  %v383_v3 = vunpack.c.h.bf16 %v75_v58  ;;  %v123_v53 = vld [vmem:[%s4056_s1 + $0x318] sm:$0xff] }
  0xa3   :  { %1239 = vmatprep.subr.mxu1 %v419_v4  ;;  %1169 = vmatpush1.msra.mxu0 %v290_v6  ;;  %v511_v4 = vunpack.c.h.bf16 %v139_v59  ;;  %v382_v6 = vunpack.c.l.bf16 %v75_v58  ;;  %v57_v58 = vld [vmem:[%s4056_s1 + $0x108] sm:$0xff] }
  0xa4   :  { %1240 = vmatpush1.msra.mxu1 %v418_v7  ;;  %1170 = vmatprep.subr.mxu0 %v287_v11  ;;  %v510_v7 = vunpack.c.l.bf16 %v139_v59  ;;  %v379_v11 = vunpack.c.h.bf16 %v73_v1  ;;  %v121_v59 = vld [vmem:[%s4056_s1 + $0x308] sm:$0xff] }
  0xa5   :  { %1241 = vmatprep.subr.mxu1 %v415_v12  ;;  %1171 = vmatpush1.msra.mxu0 %v286_v14  ;;  %v507_v12 = vunpack.c.h.bf16 %v137_v2  ;;  %v378_v14 = vunpack.c.l.bf16 %v73_v1  ;;  %v347_v1 = vunpack.c.h.bf16 %v57_v58 }
  0xa6   :  { %1242 = vmatpush1.msra.mxu1 %v414_v15  ;;  %1172 = vmatprep.subr.mxu0 %v283_v18  ;;  %v506_v15 = vunpack.c.l.bf16 %v137_v2  ;;  %v375_v18 = vunpack.c.h.bf16 %v71_v8  ;;  %v475_v2 = vunpack.c.h.bf16 %v121_v59 }
  0xa7   :  { %1243 = vmatprep.subr.mxu1 %v411_v19  ;;  %1173 = vmatpush1.msra.mxu0 %v282_v20  ;;  %v503_v19 = vunpack.c.h.bf16 %v135_v9  ;;  %v374_v20 = vunpack.c.l.bf16 %v71_v8 }
  0xa8   :  { %1244 = vmatpush1.msra.mxu1 %v410_v21  ;;  %1174 = vmatprep.subr.mxu0 %v407_v25  ;;  %v502_v21 = vunpack.c.l.bf16 %v135_v9  ;;  %v371_v25 = vunpack.c.h.bf16 %v69_v16  ;;  %v181_v9 = vld [vmem:[%s4056_s1 + $0x4e8] sm:$0xff] }
  0xa9   :  { %1245 = vmatprep.subr.mxu1 %v535_v26  ;;  %1175 = vmatpush2.msra.mxu0 %v406_v27  ;;  %v499_v26 = vunpack.c.h.bf16 %v133_v17  ;;  %v370_v27 = vunpack.c.l.bf16 %v69_v16  ;;  %v179_v16 = vld [vmem:[%s4056_s1 + $0x4d8] sm:$0xff] }
  0xaa   :  { %1246 = vmatpush2.msra.mxu1 %v534_v28  ;;  %1176 = vmatprep.subr.mxu0 %v403_v32  ;;  %v498_v28 = vunpack.c.l.bf16 %v133_v17  ;;  %v367_v32 = vunpack.c.h.bf16 %v67_v22  ;;  %v243_v17 = vld [vmem:[%s4056_s1 + $0x6d8] sm:$0xff] }
  0xab   :  { %1247 = vmatprep.subr.mxu1 %v531_v33  ;;  %1177 = vmatpush2.msra.mxu0 %v402_v36  ;;  %v495_v33 = vunpack.c.h.bf16 %v131_v23  ;;  %v366_v36 = vunpack.c.l.bf16 %v67_v22  ;;  %v241_v22 = vld [vmem:[%s4056_s1 + $0x6c8] sm:$0xff] }
  0xac   :  { %1248 = vmatpush2.msra.mxu1 %v530_v37  ;;  %1178 = vmatprep.subr.mxu0 %v399_v41  ;;  %v494_v37 = vunpack.c.l.bf16 %v131_v23  ;;  %v363_v41 = vunpack.c.h.bf16 %v65_v30  ;;  %v591_v23 = vunpack.c.h.bf16 %v179_v16 }
  0xad   :  { %1249 = vmatprep.subr.mxu1 %v527_v42  ;;  %1179 = vmatpush2.msra.mxu0 %v398_v43  ;;  %v491_v42 = vunpack.c.h.bf16 %v129_v31  ;;  %v362_v43 = vunpack.c.l.bf16 %v65_v30  ;;  %v715_v30 = vunpack.c.h.bf16 %v241_v22 }
  0xae   :  { %1250 = vmatpush2.msra.mxu1 %v526_v44  ;;  %1180 = vmatprep.subr.mxu0 %v395_v47  ;;  %v490_v44 = vunpack.c.l.bf16 %v129_v31  ;;  %v359_v47 = vunpack.c.h.bf16 %v63_v39  ;;  %v714_v31 = vunpack.c.l.bf16 %v241_v22 }
  0xaf   :  { %1251 = vmatprep.subr.mxu1 %v523_v48  ;;  %1181 = vmatpush2.msra.mxu0 %v394_v49  ;;  %v487_v48 = vunpack.c.h.bf16 %v127_v40  ;;  %v358_v49 = vunpack.c.l.bf16 %v63_v39 }
  0xb0   :  { %1252 = vmatpush2.msra.mxu1 %v522_v51  ;;  %1182 = vmatprep.subr.mxu0 %v391_v54  ;;  %v486_v51 = vunpack.c.l.bf16 %v127_v40  ;;  %v355_v54 = vunpack.c.h.bf16 %v61_v45 }
  0xb1   :  { %1253 = vmatprep.subr.mxu1 %v519_v55  ;;  %1183 = vmatpush2.msra.mxu0 %v390_v56  ;;  %v483_v55 = vunpack.c.h.bf16 %v125_v46  ;;  %v354_v56 = vunpack.c.l.bf16 %v61_v45 }
  0xb2   :  { %1254 = vmatpush2.msra.mxu1 %v518_v57  ;;  %1184 = vmatprep.subr.mxu0 %v387_v60  ;;  %v482_v57 = vunpack.c.l.bf16 %v125_v46  ;;  %v351_v60 = vunpack.c.h.bf16 %v59_v52 }
  0xb3   :  { %1255 = vmatprep.subr.mxu1 %v515_v61  ;;  %1185 = vmatpush2.msra.mxu0 %v386_v62  ;;  %v479_v61 = vunpack.c.h.bf16 %v123_v53  ;;  %v350_v62 = vunpack.c.l.bf16 %v59_v52 }
  0xb4   :  { %1256 = vmatpush2.msra.mxu1 %v514_v63  ;;  %1186 = vmatprep.subr.mxu0 %v383_v3  ;;  %v478_v63 = vunpack.c.l.bf16 %v123_v53  ;;  %v183_v3 = vld [vmem:[%s4056_s1 + $0x4f8] sm:$0xff] }
  0xb5   :  { %1257 = vmatprep.subr.mxu1 %v511_v4  ;;  %1187 = vmatpush2.msra.mxu0 %v382_v6  ;;  %v346_v4 = vunpack.c.l.bf16 %v57_v58  ;;  %v247_v6 = vld [vmem:[%s4056_s1 + $0x6f8] sm:$0xff]  ;;  %v599_v8 = vunpack.c.h.bf16 %v183_v3 }
  0xb6   :  { %1258 = vmatpush2.msra.mxu1 %v510_v7  ;;  %1188 = vmatprep.subr.mxu0 %v379_v11  ;;  %v474_v7 = vunpack.c.l.bf16 %v121_v59  ;;  %v245_v11 = vld [vmem:[%s4056_s1 + $0x6e8] sm:$0xff] }
  0xb7   :  { %1259 = vmatprep.subr.mxu1 %v507_v12  ;;  %1189 = vmatpush2.msra.mxu0 %v378_v14  ;;  %v727_v12 = vunpack.c.h.bf16 %v247_v6  ;;  %v598_v14 = vunpack.c.l.bf16 %v183_v3  ;;  %v163_v3 = vld [vmem:[%s4056_s1 + $0x458] sm:$0xff] }
  0xb8   :  { %1260 = vmatpush2.msra.mxu1 %v506_v15  ;;  %1190 = vmatprep.subr.mxu0 %v375_v18  ;;  %v726_v15 = vunpack.c.l.bf16 %v247_v6  ;;  %v595_v18 = vunpack.c.h.bf16 %v181_v9 }
  0xb9   :  { %1261 = vmatprep.subr.mxu1 %v503_v19  ;;  %1191 = vmatpush2.msra.mxu0 %v374_v20  ;;  %v723_v19 = vunpack.c.h.bf16 %v245_v11  ;;  %v594_v20 = vunpack.c.l.bf16 %v181_v9 }
  0xba   :  { %1262 = vmatpush2.msra.mxu1 %v502_v21  ;;  %1192 = vmatprep.subr.mxu0 %v371_v25  ;;  %v177_v21 = vld [vmem:[%s4056_s1 + $0x4c8] sm:$0xff]  ;;  %v590_v25 = vunpack.c.l.bf16 %v179_v16  ;;  %v558_v16 = vunpack.c.l.bf16 %v163_v3 }
  0xbb   :  { %1263 = vmatprep.subr.mxu1 %v499_v26  ;;  %1193 = vmatpush2.msra.mxu0 %v370_v27  ;;  %v175_v26 = vld [vmem:[%s4056_s1 + $0x4b8] sm:$0xff] }
  0xbc   :  { %1264 = vmatpush2.msra.mxu1 %v498_v28  ;;  %1194 = vmatprep.subr.mxu0 %v367_v32  ;;  %v239_v27 = vld [vmem:[%s4056_s1 + $0x6b8] sm:$0xff]  ;;  %v587_v28 = vunpack.c.h.bf16 %v177_v21  ;;  %v173_v32 = vld [vmem:[%s4056_s1 + $0x4a8] sm:$0xff]  ;;  %v582_v39 = vunpack.c.l.bf16 %v175_v26 }
  0xbd   :  { %1265 = vmatprep.subr.mxu1 %v495_v33  ;;  %1195 = vmatpush2.msra.mxu0 %v366_v36  ;;  %v237_v33 = vld [vmem:[%s4056_s1 + $0x6a8] sm:$0xff]  ;;  %v583_v36 = vunpack.c.h.bf16 %v175_v26  ;;  %v710_v40 = vunpack.c.l.bf16 %v239_v27  ;;  %v578_v45 = vunpack.c.l.bf16 %v173_v32 }
  0xbe   :  { %1266 = vmatpush2.msra.mxu1 %v494_v37  ;;  %1196 = vmatprep.subr.mxu0 %v363_v41  ;;  %v711_v37 = vunpack.c.h.bf16 %v239_v27  ;;  %v171_v41 = vld [vmem:[%s4056_s1 + $0x498] sm:$0xff]  ;;  %v706_v46 = vunpack.c.l.bf16 %v237_v33 }
  0xbf   :  { %1267 = vmatprep.subr.mxu1 %v491_v42  ;;  %1197 = vmatpush2.msra.mxu0 %v362_v43  ;;  %v235_v42 = vld [vmem:[%s4056_s1 + $0x698] sm:$0xff]  ;;  %v579_v43 = vunpack.c.h.bf16 %v173_v32  ;;  %v574_v52 = vunpack.c.l.bf16 %v171_v41 }
  0xc0   :  { %1268 = vmatpush2.msra.mxu1 %v490_v44  ;;  %1198 = vmatprep.subr.mxu0 %v359_v47  ;;  %v707_v44 = vunpack.c.h.bf16 %v237_v33  ;;  %v169_v47 = vld [vmem:[%s4056_s1 + $0x488] sm:$0xff]  ;;  %v702_v53 = vunpack.c.l.bf16 %v235_v42 }
  0xc1   :  { %1269 = vmatprep.subr.mxu1 %v487_v48  ;;  %1199 = vmatpush2.msra.mxu0 %v358_v49  ;;  %v233_v48 = vld [vmem:[%s4056_s1 + $0x688] sm:$0xff]  ;;  %v575_v49 = vunpack.c.h.bf16 %v171_v41  ;;  %v570_v58 = vunpack.c.l.bf16 %v169_v47 }
  0xc2   :  { %1270 = vmatpush2.msra.mxu1 %v486_v51  ;;  %1200 = vmatprep.subr.mxu0 %v355_v54  ;;  %v703_v51 = vunpack.c.h.bf16 %v235_v42  ;;  %v167_v54 = vld [vmem:[%s4056_s1 + $0x478] sm:$0xff]  ;;  %v698_v59 = vunpack.c.l.bf16 %v233_v48 }
  0xc3   :  { %1271 = vmatprep.subr.mxu1 %v483_v55  ;;  %1201 = vmatpush2.msra.mxu0 %v354_v56  ;;  %v231_v55 = vld [vmem:[%s4056_s1 + $0x678] sm:$0xff]  ;;  %v571_v56 = vunpack.c.h.bf16 %v169_v47 }
  0xc4   :  { %1272 = vmatpush2.msra.mxu1 %v482_v57  ;;  %1202 = vmatprep.subr.mxu0 %v351_v60  ;;  %v699_v57 = vunpack.c.h.bf16 %v233_v48  ;;  %v165_v60 = vld [vmem:[%s4056_s1 + $0x468] sm:$0xff] }
  0xc5   :  { %1273 = vmatprep.subr.mxu1 %v479_v61  ;;  %1203 = vmatpush2.msra.mxu0 %v350_v62  ;;  %v229_v61 = vld [vmem:[%s4056_s1 + $0x668] sm:$0xff]  ;;  %v567_v62 = vunpack.c.h.bf16 %v167_v54  ;;  %v563_v6 = vunpack.c.h.bf16 %v165_v60 }
  0xc6   :  { %1274 = vmatpush2.msra.mxu1 %v478_v63  ;;  %1204 = vmatprep.subr.mxu0 %v347_v1  ;;  %v695_v63 = vunpack.c.h.bf16 %v231_v55  ;;  %v566_v1 = vunpack.c.l.bf16 %v167_v54  ;;  %v690_v9 = vunpack.c.l.bf16 %v229_v61 }
  0xc7   :  { %1275 = vmatprep.subr.mxu1 %v475_v2  ;;  %1205 = vmatpush2.msra.mxu0 %v346_v4  ;;  %v694_v2 = vunpack.c.l.bf16 %v231_v55  ;;  %v227_v4 = vld [vmem:[%s4056_s1 + $0x658] sm:$0xff] }
  0xc8   :  { %1206 = vmatprep.mubr.f32.mxu0 %v2789_v10  ;;  %1276 = vmatpush2.msra.mxu1 %v474_v7  ;;  %v722_v10 = vunpack.c.l.bf16 %v245_v11  ;;  %v691_v7 = vunpack.c.h.bf16 %v229_v61  ;;  %v161_v11 = vld [vmem:[%s4056_s1 + $0x448] sm:$0xff] }
  0xc9   :  { %1207 = vmatmul.mubr.f32.vlgmr.msra.gmra.mxu0 %v2779_v0  ;;  %1277 = vmatprep.mubr.f32.mxu1 %v2796_v13  ;;  %v719_v0 = vunpack.c.h.bf16 %v243_v17  ;;  %v718_v13 = vunpack.c.l.bf16 %v243_v17  ;;  %v686_v17 = vunpack.c.l.bf16 %v227_v4 }
  0xca   :  { %1284 = vmatprep.subr.mxu0 %v599_v8  ;;  %1355 = vmatprep.subr.mxu1 %v727_v12  ;;  %v562_v8 = vunpack.c.l.bf16 %v165_v60  ;;  %v225_v12 = vld [vmem:[%s4056_s1 + $0x648] sm:$0xff] }
  0xcb   :  { %1278 = vmatmul.mubr.f32.vlgmr.msra.gmra.mxu1 %v2782_v5  ;;  %1285 = vmatpush1.msra.mxu0 %v598_v14  ;;  %v586_v5 = vunpack.c.l.bf16 %v177_v21  ;;  %v559_v14 = vunpack.c.h.bf16 %v163_v3  ;;  %v554_v21 = vunpack.c.l.bf16 %v161_v11  ;;  %v682_v22 = vunpack.c.l.bf16 %v225_v12 }
  0xcc   :  { %1356 = vmatpush1.msra.mxu1 %v726_v15  ;;  %1286 = vmatprep.subr.mxu0 %v595_v18  ;;  %v687_v15 = vunpack.c.h.bf16 %v227_v4  ;;  %v159_v18 = vld [vmem:[%s4056_s1 + $0x438] sm:$0xff] }
  0xcd   :  { %1357 = vmatprep.subr.mxu1 %v723_v19  ;;  %1287 = vmatpush1.msra.mxu0 %v594_v20  ;;  %v223_v19 = vld [vmem:[%s4056_s1 + $0x638] sm:$0xff]  ;;  %v555_v20 = vunpack.c.h.bf16 %v161_v11  ;;  %v550_v26 = vunpack.c.l.bf16 %v159_v18 }
  0xce   :  { %1358 = vmatpush1.msra.mxu1 %v722_v10  ;;  %1288 = vmatprep.subr.mxu0 %v591_v23  ;;  %v683_v10 = vunpack.c.h.bf16 %v225_v12  ;;  %v157_v23 = vld [vmem:[%s4056_s1 + $0x428] sm:$0xff]  ;;  %v678_v27 = vunpack.c.l.bf16 %v223_v19 }
  0xcf   :  { %1359 = vmatprep.subr.mxu1 %v719_v0  ;;  %1289 = vmatpush1.msra.mxu0 %v590_v25  ;;  %v221_v0 = vld [vmem:[%s4056_s1 + $0x628] sm:$0xff]  ;;  %v551_v25 = vunpack.c.h.bf16 %v159_v18  ;;  %v546_v32 = vunpack.c.l.bf16 %v157_v23 }
  0xd0   :  { %1360 = vmatpush1.msra.mxu1 %v718_v13  ;;  %1290 = vmatprep.subr.mxu0 %v587_v28  ;;  %v679_v13 = vunpack.c.h.bf16 %v223_v19  ;;  %v155_v28 = vld [vmem:[%s4056_s1 + $0x418] sm:$0xff]  ;;  %v674_v33 = vunpack.c.l.bf16 %v221_v0 }
  0xd1   :  { %1361 = vmatprep.subr.mxu1 %v715_v30  ;;  %1291 = vmatpush1.msra.mxu0 %v586_v5  ;;  %v219_v30 = vld [vmem:[%s4056_s1 + $0x618] sm:$0xff]  ;;  %v547_v5 = vunpack.c.h.bf16 %v157_v23  ;;  %v542_v41 = vunpack.c.l.bf16 %v155_v28 }
  0xd2   :  { %1362 = vmatpush1.msra.mxu1 %v714_v31  ;;  %1292 = vmatprep.subr.mxu0 %v583_v36  ;;  %v675_v31 = vunpack.c.h.bf16 %v221_v0  ;;  %v153_v36 = vld [vmem:[%s4056_s1 + $0x408] sm:$0xff]  ;;  %v670_v42 = vunpack.c.l.bf16 %v219_v30 }
  0xd3   :  { %1363 = vmatprep.subr.mxu1 %v711_v37  ;;  %1293 = vmatpush1.msra.mxu0 %v582_v39  ;;  %v217_v37 = vld [vmem:[%s4056_s1 + $0x608] sm:$0xff]  ;;  %v543_v39 = vunpack.c.h.bf16 %v155_v28  ;;  %v538_v47 = vunpack.c.l.bf16 %v153_v36 }
  0xd4   :  { %1364 = vmatpush1.msra.mxu1 %v710_v40  ;;  %1294 = vmatprep.subr.mxu0 %v579_v43  ;;  %v671_v40 = vunpack.c.h.bf16 %v219_v30  ;;  %v215_v43 = vld [vmem:[%s4056_s1 + $0x5f8] sm:$0xff]  ;;  %v666_v48 = vunpack.c.l.bf16 %v217_v37 }
  0xd5   :  { %1365 = vmatprep.subr.mxu1 %v707_v44  ;;  %1295 = vmatpush1.msra.mxu0 %v578_v45  ;;  %v279_v44 = vld [vmem:[%s4056_s1 + $0x7f8] sm:$0xff]  ;;  %v539_v45 = vunpack.c.h.bf16 %v153_v36  ;;  %v662_v54 = vunpack.c.l.bf16 %v215_v43 }
  0xd6   :  { %1366 = vmatpush1.msra.mxu1 %v706_v46  ;;  %1296 = vmatprep.subr.mxu0 %v575_v49  ;;  %v667_v46 = vunpack.c.h.bf16 %v217_v37  ;;  %v213_v49 = vld [vmem:[%s4056_s1 + $0x5e8] sm:$0xff]  ;;  %v790_v55 = vunpack.c.l.bf16 %v279_v44 }
  0xd7   :  { %1367 = vmatprep.subr.mxu1 %v703_v51  ;;  %1297 = vmatpush1.msra.mxu0 %v574_v52  ;;  %v277_v51 = vld [vmem:[%s4056_s1 + $0x7e8] sm:$0xff]  ;;  %v663_v52 = vunpack.c.h.bf16 %v215_v43  ;;  %v658_v60 = vunpack.c.l.bf16 %v213_v49 }
  0xd8   :  { %1368 = vmatpush1.msra.mxu1 %v702_v53  ;;  %1298 = vmatprep.subr.mxu0 %v571_v56  ;;  %v791_v53 = vunpack.c.h.bf16 %v279_v44  ;;  %v211_v56 = vld [vmem:[%s4056_s1 + $0x5d8] sm:$0xff]  ;;  %v786_v61 = vunpack.c.l.bf16 %v277_v51 }
  0xd9   :  { %1369 = vmatprep.subr.mxu1 %v699_v57  ;;  %1299 = vmatpush1.msra.mxu0 %v570_v58  ;;  %v275_v57 = vld [vmem:[%s4056_s1 + $0x7d8] sm:$0xff]  ;;  %v659_v58 = vunpack.c.h.bf16 %v213_v49  ;;  %v654_v3 = vunpack.c.l.bf16 %v211_v56 }
  0xda   :  { %1370 = vmatpush1.msra.mxu1 %v698_v59  ;;  %1300 = vmatprep.subr.mxu0 %v567_v62  ;;  %v787_v59 = vunpack.c.h.bf16 %v277_v51  ;;  %v209_v62 = vld [vmem:[%s4056_s1 + $0x5c8] sm:$0xff]  ;;  %v782_v4 = vunpack.c.l.bf16 %v275_v57 }
  0xdb   :  { %1371 = vmatprep.subr.mxu1 %v695_v63  ;;  %1301 = vmatpush1.msra.mxu0 %v566_v1  ;;  %v273_v63 = vld [vmem:[%s4056_s1 + $0x7c8] sm:$0xff]  ;;  %v655_v1 = vunpack.c.h.bf16 %v211_v56  ;;  %v650_v11 = vunpack.c.l.bf16 %v209_v62 }
  0xdc   :  { %1372 = vmatpush1.msra.mxu1 %v694_v2  ;;  %1302 = vmatprep.subr.mxu0 %v563_v6  ;;  %v783_v2 = vunpack.c.h.bf16 %v275_v57  ;;  %v207_v6 = vld [vmem:[%s4056_s1 + $0x5b8] sm:$0xff]  ;;  %v778_v12 = vunpack.c.l.bf16 %v273_v63 }
  0xdd   :  { %1373 = vmatprep.subr.mxu1 %v691_v7  ;;  %1303 = vmatpush1.msra.mxu0 %v562_v8  ;;  %v271_v7 = vld [vmem:[%s4056_s1 + $0x7b8] sm:$0xff]  ;;  %v651_v8 = vunpack.c.h.bf16 %v209_v62  ;;  %v646_v18 = vunpack.c.l.bf16 %v207_v6 }
  0xde   :  { %1374 = vmatpush1.msra.mxu1 %v690_v9  ;;  %1304 = vmatprep.subr.mxu0 %v559_v14  ;;  %v779_v9 = vunpack.c.h.bf16 %v273_v63  ;;  %v205_v14 = vld [vmem:[%s4056_s1 + $0x5a8] sm:$0xff]  ;;  %v774_v19 = vunpack.c.l.bf16 %v271_v7 }
  0xdf   :  { %1375 = vmatprep.subr.mxu1 %v687_v15  ;;  %1305 = vmatpush1.msra.mxu0 %v558_v16  ;;  %v269_v15 = vld [vmem:[%s4056_s1 + $0x7a8] sm:$0xff]  ;;  %v647_v16 = vunpack.c.h.bf16 %v207_v6  ;;  %v642_v23 = vunpack.c.l.bf16 %v205_v14 }
  0xe0   :  { %1376 = vmatpush1.msra.mxu1 %v686_v17  ;;  %1306 = vmatprep.subr.mxu0 %v555_v20  ;;  %v775_v17 = vunpack.c.h.bf16 %v271_v7  ;;  %v203_v20 = vld [vmem:[%s4056_s1 + $0x598] sm:$0xff]  ;;  %v770_v0 = vunpack.c.l.bf16 %v269_v15 }
  0xe1   :  { %1377 = vmatprep.subr.mxu1 %v683_v10  ;;  %1307 = vmatpush1.msra.mxu0 %v554_v21  ;;  %v267_v10 = vld [vmem:[%s4056_s1 + $0x798] sm:$0xff]  ;;  %v643_v21 = vunpack.c.h.bf16 %v205_v14  ;;  %v638_v28 = vunpack.c.l.bf16 %v203_v20 }
  0xe2   :  { %1378 = vmatpush1.msra.mxu1 %v682_v22  ;;  %1308 = vmatprep.subr.mxu0 %v551_v25  ;;  %v771_v22 = vunpack.c.h.bf16 %v269_v15  ;;  %v201_v25 = vld [vmem:[%s4056_s1 + $0x588] sm:$0xff]  ;;  %v766_v30 = vunpack.c.l.bf16 %v267_v10 }
  0xe3   :  { %1379 = vmatprep.subr.mxu1 %v679_v13  ;;  %1309 = vmatpush1.msra.mxu0 %v550_v26  ;;  %v265_v13 = vld [vmem:[%s4056_s1 + $0x788] sm:$0xff]  ;;  %v639_v26 = vunpack.c.h.bf16 %v203_v20  ;;  %v634_v36 = vunpack.c.l.bf16 %v201_v25 }
  0xe4   :  { %1380 = vmatpush1.msra.mxu1 %v678_v27  ;;  %1310 = vmatprep.subr.mxu0 %v547_v5  ;;  %v767_v27 = vunpack.c.h.bf16 %v267_v10  ;;  %v199_v5 = vld [vmem:[%s4056_s1 + $0x578] sm:$0xff]  ;;  %v762_v37 = vunpack.c.l.bf16 %v265_v13 }
  0xe5   :  { %1381 = vmatprep.subr.mxu1 %v675_v31  ;;  %1311 = vmatpush1.msra.mxu0 %v546_v32  ;;  %v263_v31 = vld [vmem:[%s4056_s1 + $0x778] sm:$0xff]  ;;  %v635_v32 = vunpack.c.h.bf16 %v201_v25  ;;  %v630_v43 = vunpack.c.l.bf16 %v199_v5 }
  0xe6   :  { %1382 = vmatpush1.msra.mxu1 %v674_v33  ;;  %1312 = vmatprep.subr.mxu0 %v543_v39  ;;  %v763_v33 = vunpack.c.h.bf16 %v265_v13  ;;  %v197_v39 = vld [vmem:[%s4056_s1 + $0x568] sm:$0xff]  ;;  %v758_v44 = vunpack.c.l.bf16 %v263_v31  ;;  %v1495_v13 = vld [vmem:[%s4058_s3 + $0x150] sm:$0xff] }
  0xe7   :  { %1383 = vmatprep.subr.mxu1 %v671_v40  ;;  %1313 = vmatpush1.msra.mxu0 %v542_v41  ;;  %v261_v40 = vld [vmem:[%s4056_s1 + $0x768] sm:$0xff]  ;;  %v631_v41 = vunpack.c.h.bf16 %v199_v5  ;;  %v626_v49 = vunpack.c.l.bf16 %v197_v39  ;;  %v1729_v5 = vunpack.c.l.bf16 %v1495_v13 }
  0xe8   :  { %1384 = vmatpush1.msra.mxu1 %v670_v42  ;;  %1314 = vmatprep.subr.mxu0 %v539_v45  ;;  %v759_v42 = vunpack.c.h.bf16 %v263_v31  ;;  %v195_v45 = vld [vmem:[%s4056_s1 + $0x558] sm:$0xff]  ;;  %v754_v51 = vunpack.c.l.bf16 %v261_v40  ;;  %v1489_v31 = vld [vmem:[%s4058_s3 + $0x120] sm:$0xff] }
  0xe9   :  { %1385 = vmatprep.subr.mxu1 %v667_v46  ;;  %1315 = vmatpush1.msra.mxu0 %v538_v47  ;;  %v259_v46 = vld [vmem:[%s4056_s1 + $0x758] sm:$0xff]  ;;  %v627_v47 = vunpack.c.h.bf16 %v197_v39  ;;  %v622_v56 = vunpack.c.l.bf16 %v195_v45 }
  0xea   :  { %1386 = vmatpush1.msra.mxu1 %v666_v48  ;;  %1316 = vmatprep.subr.mxu0 %v663_v52  ;;  %v755_v48 = vunpack.c.h.bf16 %v261_v40  ;;  %v193_v52 = vld [vmem:[%s4056_s1 + $0x548] sm:$0xff]  ;;  %v750_v57 = vunpack.c.l.bf16 %v259_v46  ;;  %v1480_v39 = vld [vmem:[%s4058_s3 + $0xd8] sm:$0xff] }
  0xeb   :  { %1387 = vmatprep.subr.mxu1 %v791_v53  ;;  %1317 = vmatpush2.msra.mxu0 %v662_v54  ;;  %v257_v53 = vld [vmem:[%s4056_s1 + $0x748] sm:$0xff]  ;;  %v623_v54 = vunpack.c.h.bf16 %v195_v45  ;;  %v618_v62 = vunpack.c.l.bf16 %v193_v52 }
  0xec   :  { %1388 = vmatpush2.msra.mxu1 %v790_v55  ;;  %1318 = vmatprep.subr.mxu0 %v659_v58  ;;  %v751_v55 = vunpack.c.h.bf16 %v259_v46  ;;  %v191_v58 = vld [vmem:[%s4056_s1 + $0x538] sm:$0xff]  ;;  %v746_v63 = vunpack.c.l.bf16 %v257_v53  ;;  %v1474_v45 = vld [vmem:[%s4058_s3 + $0xa8] sm:$0xff] }
  0xed   :  { %1389 = vmatprep.subr.mxu1 %v787_v59  ;;  %1319 = vmatpush2.msra.mxu0 %v658_v60  ;;  %v255_v59 = vld [vmem:[%s4056_s1 + $0x738] sm:$0xff]  ;;  %v619_v60 = vunpack.c.h.bf16 %v193_v52  ;;  %v614_v6 = vunpack.c.l.bf16 %v191_v58 }
  0xee   :  { %1390 = vmatpush2.msra.mxu1 %v786_v61  ;;  %1320 = vmatprep.subr.mxu0 %v655_v1  ;;  %v747_v61 = vunpack.c.h.bf16 %v257_v53  ;;  %v189_v1 = vld [vmem:[%s4056_s1 + $0x528] sm:$0xff]  ;;  %v742_v7 = vunpack.c.l.bf16 %v255_v59  ;;  %v1468_v52 = vld [vmem:[%s4058_s3 + $0x78] sm:$0xff] }
  0xef   :  { %1391 = vmatprep.subr.mxu1 %v783_v2  ;;  %1321 = vmatpush2.msra.mxu0 %v654_v3  ;;  %v253_v2 = vld [vmem:[%s4056_s1 + $0x728] sm:$0xff]  ;;  %v615_v3 = vunpack.c.h.bf16 %v191_v58  ;;  %v610_v14 = vunpack.c.l.bf16 %v189_v1 }
  0xf0   :  { %1392 = vmatpush2.msra.mxu1 %v782_v4  ;;  %1322 = vmatprep.subr.mxu0 %v651_v8  ;;  %v743_v4 = vunpack.c.h.bf16 %v255_v59  ;;  %v187_v8 = vld [vmem:[%s4056_s1 + $0x518] sm:$0xff]  ;;  %v738_v15 = vunpack.c.l.bf16 %v253_v2 }
  0xf1   :  { %1393 = vmatprep.subr.mxu1 %v779_v9  ;;  %1323 = vmatpush2.msra.mxu0 %v650_v11  ;;  %v251_v9 = vld [vmem:[%s4056_s1 + $0x718] sm:$0xff]  ;;  %v611_v11 = vunpack.c.h.bf16 %v189_v1  ;;  %v606_v20 = vunpack.c.l.bf16 %v187_v8 }
  0xf2   :  { %1394 = vmatpush2.msra.mxu1 %v778_v12  ;;  %1324 = vmatprep.subr.mxu0 %v647_v16  ;;  %v739_v12 = vunpack.c.h.bf16 %v253_v2  ;;  %v185_v16 = vld [vmem:[%s4056_s1 + $0x508] sm:$0xff]  ;;  %v734_v10 = vunpack.c.l.bf16 %v251_v9 }
  0xf3   :  { %1395 = vmatprep.subr.mxu1 %v775_v17  ;;  %1325 = vmatpush2.msra.mxu0 %v646_v18  ;;  %v249_v17 = vld [vmem:[%s4056_s1 + $0x708] sm:$0xff]  ;;  %v607_v18 = vunpack.c.h.bf16 %v187_v8 }
  0xf4   :  { %1396 = vmatpush2.msra.mxu1 %v774_v19  ;;  %1326 = vmatprep.subr.mxu0 %v643_v21  ;;  %v735_v19 = vunpack.c.h.bf16 %v251_v9  ;;  %v603_v21 = vunpack.c.h.bf16 %v185_v16  ;;  %v730_v25 = vunpack.c.l.bf16 %v249_v17 }
  0xf5   :  { %1397 = vmatprep.subr.mxu1 %v771_v22  ;;  %1327 = vmatpush2.msra.mxu0 %v642_v23  ;;  %v731_v22 = vunpack.c.h.bf16 %v249_v17  ;;  %v602_v23 = vunpack.c.l.bf16 %v185_v16 }
  0xf6   :  { %1398 = vmatpush2.msra.mxu1 %v770_v0  ;;  %1328 = vmatprep.subr.mxu0 %v639_v26  ;;  %v1498_v0 = vld [vmem:[%s4058_s3 + $0x168] sm:$0xff] }
  0xf7   :  { %1399 = vmatprep.subr.mxu1 %v767_v27  ;;  %1329 = vmatpush2.msra.mxu0 %v638_v28  ;;  %v1736_v26 = vunpack.c.h.bf16 %v1498_v0  ;;  %v1735_v27 = vunpack.c.l.bf16 %v1498_v0  ;;  %v1492_v28 = vld [vmem:[%s4058_s3 + $0x138] sm:$0xff]  ;;  %v1546_v0 = vld [vmem:[%s4058_s3 + $0x2e8] sm:$0xff] }
  0xf8   :  { %1400 = vmatpush2.msra.mxu1 %v766_v30  ;;  %1330 = vmatprep.subr.mxu0 %v635_v32  ;;  %v1730_v30 = vunpack.c.h.bf16 %v1495_v13  ;;  %v1723_v32 = vunpack.c.l.bf16 %v1492_v28 }
  0xf9   :  { %1401 = vmatprep.subr.mxu1 %v763_v33  ;;  %1331 = vmatpush2.msra.mxu0 %v634_v36  ;;  %v1486_v33 = vld [vmem:[%s4058_s3 + $0x108] sm:$0xff]  ;;  %v1717_v36 = vunpack.c.l.bf16 %v1489_v31 }
  0xfa   :  { %1402 = vmatpush2.msra.mxu1 %v762_v37  ;;  %1332 = vmatprep.subr.mxu0 %v631_v41  ;;  %v1711_v37 = vunpack.c.l.bf16 %v1486_v33 }
  0xfb   :  { %1403 = vmatprep.subr.mxu1 %v759_v42  ;;  %1333 = vmatpush2.msra.mxu0 %v630_v43  ;;  %v1477_v42 = vld [vmem:[%s4058_s3 + $0xc0] sm:$0xff]  ;;  %v1700_v43 = vunpack.c.h.bf16 %v1480_v39 }
  0xfc   :  { %1404 = vmatpush2.msra.mxu1 %v758_v44  ;;  %1334 = vmatprep.subr.mxu0 %v627_v47  ;;  %v1699_v44 = vunpack.c.l.bf16 %v1480_v39  ;;  %v1694_v46 = vunpack.c.h.bf16 %v1477_v42  ;;  %v1693_v47 = vunpack.c.l.bf16 %v1477_v42 }
  0xfd   :  { %1405 = vmatprep.subr.mxu1 %v755_v48  ;;  %1335 = vmatpush2.msra.mxu0 %v626_v49  ;;  %v1471_v48 = vld [vmem:[%s4058_s3 + $0x90] sm:$0xff]  ;;  %v1688_v49 = vunpack.c.h.bf16 %v1474_v45 }
  0xfe   :  { %1406 = vmatpush2.msra.mxu1 %v754_v51  ;;  %1336 = vmatprep.subr.mxu0 %v623_v54  ;;  %v1687_v51 = vunpack.c.l.bf16 %v1474_v45  ;;  %v1682_v53 = vunpack.c.h.bf16 %v1471_v48  ;;  %v1681_v54 = vunpack.c.l.bf16 %v1471_v48 }
  0xff   :  { %1407 = vmatprep.subr.mxu1 %v751_v55  ;;  %1337 = vmatpush2.msra.mxu0 %v622_v56  ;;  %v1465_v55 = vld [vmem:[%s4058_s3 + $0x60] sm:$0xff]  ;;  %v1594_v56 = vld [vmem:[%s4058_s3 + $0x468] sm:$0xff] }
 0x100   :  { %1408 = vmatpush2.msra.mxu1 %v750_v57  ;;  %1338 = vmatprep.subr.mxu0 %v619_v60  ;;  %v1676_v57 = vunpack.c.h.bf16 %v1468_v52  ;;  %v1927_v58 = vunpack.c.l.bf16 %v1594_v56  ;;  %v1928_v59 = vunpack.c.h.bf16 %v1594_v56  ;;  %v1675_v60 = vunpack.c.l.bf16 %v1468_v52 }
 0x101   :  { %1409 = vmatprep.subr.mxu1 %v747_v61  ;;  %1339 = vmatpush2.msra.mxu0 %v618_v62  ;;  %v1462_v61 = vld [vmem:[%s4058_s3 + $0x48] sm:$0xff]  ;;  %v1591_v62 = vld [vmem:[%s4058_s3 + $0x450] sm:$0xff] }
 0x102   :  { %1410 = vmatpush2.msra.mxu1 %v746_v63  ;;  %1340 = vmatprep.subr.mxu0 %v615_v3  ;;  %v1670_v63 = vunpack.c.h.bf16 %v1465_v55  ;;  %v1921_v1 = vunpack.c.l.bf16 %v1591_v62  ;;  %v1922_v2 = vunpack.c.h.bf16 %v1591_v62  ;;  %v1669_v3 = vunpack.c.l.bf16 %v1465_v55 }
 0x103   :  { %1411 = vmatprep.subr.mxu1 %v743_v4  ;;  %1341 = vmatpush2.msra.mxu0 %v614_v6  ;;  %v1459_v4 = vld [vmem:[%s4058_s3 + $0x30] sm:$0xff]  ;;  %v1588_v6 = vld [vmem:[%s4058_s3 + $0x438] sm:$0xff] }
 0x104   :  { %1412 = vmatpush2.msra.mxu1 %v742_v7  ;;  %1342 = vmatprep.subr.mxu0 %v611_v11  ;;  %v1664_v7 = vunpack.c.h.bf16 %v1462_v61  ;;  %v1915_v8 = vunpack.c.l.bf16 %v1588_v6  ;;  %v1916_v9 = vunpack.c.h.bf16 %v1588_v6  ;;  %v1663_v11 = vunpack.c.l.bf16 %v1462_v61 }
 0x105   :  { %1413 = vmatprep.subr.mxu1 %v739_v12  ;;  %1343 = vmatpush2.msra.mxu0 %v610_v14  ;;  %v1456_v12 = vld [vmem:[%s4058_s3 + $0x18] sm:$0xff]  ;;  %v1585_v14 = vld [vmem:[%s4058_s3 + $0x420] sm:$0xff] }
 0x106   :  { %1414 = vmatpush2.msra.mxu1 %v738_v15  ;;  %1344 = vmatprep.subr.mxu0 %v607_v18  ;;  %v1658_v15 = vunpack.c.h.bf16 %v1459_v4  ;;  %v1909_v16 = vunpack.c.l.bf16 %v1585_v14  ;;  %v1910_v17 = vunpack.c.h.bf16 %v1585_v14  ;;  %v1657_v18 = vunpack.c.l.bf16 %v1459_v4 }
 0x107   :  { %1415 = vmatprep.subr.mxu1 %v735_v19  ;;  %1345 = vmatpush2.msra.mxu0 %v606_v20  ;;  %v1453_v19 = vld [vmem:[%s4058_s3] sm:$0xff]  ;;  %v1582_v20 = vld [vmem:[%s4058_s3 + $0x408] sm:$0xff] }
 0x108   :  { %1416 = vmatpush2.msra.mxu1 %v734_v10  ;;  %1346 = vmatprep.subr.mxu0 %v603_v21  ;;  %v1652_v10 = vunpack.c.h.bf16 %v1456_v12  ;;  %v1903_v21 = vunpack.c.l.bf16 %v1582_v20  ;;  %v1646_v13 = vunpack.c.h.bf16 %v1453_v19 }
 0x109   :  { %1417 = vmatprep.subr.mxu1 %v731_v22  ;;  %1347 = vmatpush2.msra.mxu0 %v602_v23  ;;  %v1904_v22 = vunpack.c.h.bf16 %v1582_v20  ;;  %v1651_v23 = vunpack.c.l.bf16 %v1456_v12 }
 0x10a   :  { %1348 = vmatprep.mubr.f32.mxu0 %v3002_v34  ;;  %1418 = vmatpush2.msra.mxu1 %v730_v25  ;;  %v1724_v34 = vunpack.c.h.bf16 %v1492_v28  ;;  %v1579_v25 = vld [vmem:[%s4058_s3 + $0x3f0] sm:$0xff]  ;;  %v1645_v28 = vunpack.c.l.bf16 %v1453_v19 }
 0x10b   :  { %1419 = vmatprep.mubr.f32.mxu1 %v3009_v38  ;;  %1349 = vmatmul.mubr.f32.vlgmr.msra.gmra.mxu0 %v2992_v24  ;;  %v1718_v38 = vunpack.c.h.bf16 %v1489_v31  ;;  %v1483_v24 = vld [vmem:[%s4058_s3 + $0xf0] sm:$0xff]  ;;  %v1832_v31 = vunpack.c.h.bf16 %v1546_v0 }
 0x10c   :  { %1420 = vmatmul.mubr.f32.vlgmr.msra.gmra.mxu1 %v2995_v29  ;;  %2061 = vmatprep.subr.mxu0 %v1736_v26  ;;  %v1712_v29 = vunpack.c.h.bf16 %v1486_v33  ;;  %v1706_v40 = vunpack.c.h.bf16 %v1483_v24  ;;  %v1705_v41 = vunpack.c.l.bf16 %v1483_v24  ;;  %v1897_v26 = vunpack.c.l.bf16 %v1579_v25 }
 0x10d   :  { %2062 = vmatpush1.msra.mxu0 %v1735_v27  ;;  %2132 = vmatprep.subr.mxu1 %v1928_v59  ;;  %v1898_v27 = vunpack.c.h.bf16 %v1579_v25  ;;  %v1831_v33 = vunpack.c.l.bf16 %v1546_v0  ;;  %v1528_v59 = vld [vmem:[%s4058_s3 + $0x258] sm:$0xff]  ;;  %v1549_v0 = vld [vmem:[%s4058_s3 + $0x300] sm:$0xff] }
 0x10e   :  { %2063 = vmatprep.subr.mxu0 %v1730_v30  ;;  %2133 = vmatpush1.msra.mxu1 %v1927_v58  ;;  %v1543_v30 = vld [vmem:[%s4058_s3 + $0x2d0] sm:$0xff]  ;;  %v1796_v4 = vunpack.c.h.bf16 %v1528_v59  ;;  %v3534_v25 = vld [vmem:[%s4059_s2] sm:$0xf] }
 0x10f   :  { %2064 = vmatpush1.msra.mxu0 %v1729_v5  ;;  %2134 = vmatprep.subr.mxu1 %v1922_v2  ;;  %v1576_v5 = vld [vmem:[%s4058_s3 + $0x3d8] sm:$0xff]  ;;  %v1826_v24 = vunpack.c.h.bf16 %v1543_v30  ;;  %v1825_v39 = vunpack.c.l.bf16 %v1543_v30  ;;  %v1525_v2 = vld [vmem:[%s4058_s3 + $0x240] sm:$0xff] }
 0x110   :  { %2065 = vmatprep.subr.mxu0 %v1724_v34  ;;  %2135 = vmatpush1.msra.mxu1 %v1921_v1  ;;  %v1891_v34 = vunpack.c.l.bf16 %v1576_v5  ;;  %v1790_v12 = vunpack.c.h.bf16 %v1525_v2 }
 0x111   :  { %2066 = vmatpush1.msra.mxu0 %v1723_v32  ;;  %2136 = vmatprep.subr.mxu1 %v1916_v9  ;;  %v1892_v32 = vunpack.c.h.bf16 %v1576_v5  ;;  %v1522_v9 = vld [vmem:[%s4058_s3 + $0x228] sm:$0xff]  ;;  %v1513_v5 = vld [vmem:[%s4058_s3 + $0x1e0] sm:$0xff] }
 0x112   :  { %2067 = vmatprep.subr.mxu0 %v1718_v38  ;;  %2137 = vmatpush1.msra.mxu1 %v1915_v8  ;;  %v1540_v38 = vld [vmem:[%s4058_s3 + $0x2b8] sm:$0xff]  ;;  %v1795_v8 = vunpack.c.l.bf16 %v1528_v59  ;;  %v1784_v19 = vunpack.c.h.bf16 %v1522_v9 }
 0x113   :  { %2068 = vmatpush1.msra.mxu0 %v1717_v36  ;;  %2138 = vmatprep.subr.mxu1 %v1910_v17  ;;  %v1573_v36 = vld [vmem:[%s4058_s3 + $0x3c0] sm:$0xff]  ;;  %v1820_v42 = vunpack.c.h.bf16 %v1540_v38  ;;  %v1819_v45 = vunpack.c.l.bf16 %v1540_v38  ;;  %v1519_v17 = vld [vmem:[%s4058_s3 + $0x210] sm:$0xff] }
 0x114   :  { %2069 = vmatprep.subr.mxu0 %v1712_v29  ;;  %2139 = vmatpush1.msra.mxu1 %v1909_v16  ;;  %v1885_v29 = vunpack.c.l.bf16 %v1573_v36  ;;  %v1789_v16 = vunpack.c.l.bf16 %v1525_v2  ;;  %v1777_v30 = vunpack.c.l.bf16 %v1519_v17 }
 0x115   :  { %2070 = vmatpush1.msra.mxu0 %v1711_v37  ;;  %2140 = vmatprep.subr.mxu1 %v1904_v22  ;;  %v1886_v37 = vunpack.c.h.bf16 %v1573_v36  ;;  %v1783_v22 = vunpack.c.l.bf16 %v1522_v9 }
 0x116   :  { %2071 = vmatprep.subr.mxu0 %v1706_v40  ;;  %2141 = vmatpush1.msra.mxu1 %v1903_v21  ;;  %v1537_v40 = vld [vmem:[%s4058_s3 + $0x2a0] sm:$0xff]  ;;  %v796_v21 = vsub.s32 0, %v2746_v35 }
 0x117   :  { %2072 = vmatpush1.msra.mxu0 %v1705_v41  ;;  %2142 = vmatprep.subr.mxu1 %v1898_v27  ;;  %v1570_v41 = vld [vmem:[%s4058_s3 + $0x3a8] sm:$0xff]  ;;  %v1814_v48 = vunpack.c.h.bf16 %v1537_v40  ;;  %v1813_v52 = vunpack.c.l.bf16 %v1537_v40  ;;  %v1838_v27 = vunpack.c.h.bf16 %v1549_v0 }
 0x118   :  { %2073 = vmatprep.subr.mxu0 %v1700_v43  ;;  %2143 = vmatpush1.msra.mxu1 %v1897_v26  ;;  %v1879_v43 = vunpack.c.l.bf16 %v1570_v41  ;;  %v1837_v26 = vunpack.c.l.bf16 %v1549_v0  ;;  %v797_v36 = vrot.slane %v3534_v25, %v796_v21 }
 0x119   :  { %2074 = vmatpush1.msra.mxu0 %v1699_v44  ;;  %2144 = vmatprep.subr.mxu1 %v1892_v32  ;;  %v1880_v44 = vunpack.c.h.bf16 %v1570_v41 }
 0x11a   :  { %2075 = vmatprep.subr.mxu0 %v1694_v46  ;;  %2145 = vmatpush1.msra.mxu1 %v1891_v34  ;;  %v1534_v46 = vld [vmem:[%s4058_s3 + $0x288] sm:$0xff]  ;;  %v924_v34 = vpop.f32.mrf.mxu0 }
 0x11b   :  { %2076 = vmatpush1.msra.mxu0 %v1693_v47  ;;  %2146 = vmatprep.subr.mxu1 %v1886_v37  ;;  %v1567_v47 = vld [vmem:[%s4058_s3 + $0x390] sm:$0xff]  ;;  %v1808_v55 = vunpack.c.h.bf16 %v1534_v46  ;;  %v1807_v58 = vunpack.c.l.bf16 %v1534_v46  ;;  %v995_v46 = vpop.f32.mrf.mxu1 }
 0x11c   :  { %2077 = vmatprep.subr.mxu0 %v1688_v49  ;;  %2147 = vmatpush1.msra.mxu1 %v1885_v29  ;;  %v1873_v49 = vunpack.c.l.bf16 %v1567_v47  ;;  %v1510_v29 = vld [vmem:[%s4058_s3 + $0x1c8] sm:$0xff]  ;;  %v1639_v37 = vld [vmem:[%s4058_s3 + $0x5d0] sm:$0xff] }
 0x11d   :  { %2078 = vmatpush1.msra.mxu0 %v1687_v51  ;;  %2148 = vmatprep.subr.mxu1 %v1880_v44  ;;  %v1874_v51 = vunpack.c.h.bf16 %v1567_v47  ;;  %v2017_v40 = vunpack.c.l.bf16 %v1639_v37  ;;  %v2018_v41 = vunpack.c.h.bf16 %v1639_v37  ;;  %v1507_v44 = vld [vmem:[%s4058_s3 + $0x1b0] sm:$0xff]  ;;  %v926_v47 = vpop.f32.mrf.mxu0 }
 0x11e   :  { %2079 = vmatprep.subr.mxu0 %v1682_v53  ;;  %v1531_v53 = vld [vmem:[%s4058_s3 + $0x270] sm:$0xff]  ;;  %2149 = vmatpush1.msra.mxu1 %v1879_v43  ;;  %v1765_v43 = vunpack.c.l.bf16 %v1513_v5 }
 0x11f   :  { %2080 = vmatpush1.msra.mxu0 %v1681_v54  ;;  %v1564_v54 = vld [vmem:[%s4058_s3 + $0x378] sm:$0xff]  ;;  %2150 = vmatprep.subr.mxu1 %v1874_v51  ;;  %v1802_v61 = vunpack.c.h.bf16 %v1531_v53  ;;  %v1801_v1 = vunpack.c.l.bf16 %v1531_v53  ;;  %v1759_v53 = vunpack.c.l.bf16 %v1510_v29 }
 0x120   :  { %2081 = vmatprep.subr.mxu0 %v1676_v57  ;;  %v1867_v56 = vunpack.c.l.bf16 %v1564_v54  ;;  %v1868_v57 = vunpack.c.h.bf16 %v1564_v54  ;;  %2151 = vmatpush1.msra.mxu1 %v1873_v49  ;;  %v1504_v54 = vld [vmem:[%s4058_s3 + $0x198] sm:$0xff] }
 0x121   :  { %2082 = vmatpush1.msra.mxu0 %v1675_v60  ;;  %v1561_v60 = vld [vmem:[%s4058_s3 + $0x360] sm:$0xff] }
 0x122   :  { %2083 = vmatprep.subr.mxu0 %v1670_v63  ;;  %2152 = vmatprep.subr.mxu1 %v1868_v57  ;;  %v1861_v62 = vunpack.c.l.bf16 %v1561_v60  ;;  %v1862_v63 = vunpack.c.h.bf16 %v1561_v60  ;;  %v1753_v60 = vunpack.c.l.bf16 %v1507_v44 }
 0x123   :  { %2084 = vmatpush1.msra.mxu0 %v1669_v3  ;;  %2153 = vmatpush1.msra.mxu1 %v1867_v56  ;;  %v1558_v3 = vld [vmem:[%s4058_s3 + $0x348] sm:$0xff]  ;;  %v1754_v56 = vunpack.c.h.bf16 %v1507_v44 }
 0x124   :  { %2085 = vmatprep.subr.mxu0 %v1664_v7  ;;  %2154 = vmatprep.subr.mxu1 %v1862_v63  ;;  %v1855_v6 = vunpack.c.l.bf16 %v1558_v3  ;;  %v1856_v7 = vunpack.c.h.bf16 %v1558_v3  ;;  %v997_v63 = vpop.f32.mrf.mxu1 }
 0x125   :  { %2086 = vmatpush1.msra.mxu0 %v1663_v11  ;;  %2155 = vmatpush1.msra.mxu1 %v1861_v62  ;;  %v1555_v11 = vld [vmem:[%s4058_s3 + $0x330] sm:$0xff]  ;;  %v1630_v62 = vld [vmem:[%s4058_s3 + $0x588] sm:$0xff] }
 0x126   :  { %2087 = vmatprep.subr.mxu0 %v1658_v15  ;;  %2156 = vmatprep.subr.mxu1 %v1856_v7  ;;  %v1849_v14 = vunpack.c.l.bf16 %v1555_v11  ;;  %v1850_v15 = vunpack.c.h.bf16 %v1555_v11  ;;  %v1999_v2 = vunpack.c.l.bf16 %v1630_v62  ;;  %v2000_v3 = vunpack.c.h.bf16 %v1630_v62  ;;  %v3576_v7 = vld [vmem:[%s4058_s3 + $0x170] sm:$0xff] }
 0x127   :  { %2088 = vmatpush1.msra.mxu0 %v1657_v18  ;;  %2157 = vmatpush1.msra.mxu1 %v1855_v6  ;;  %v1552_v18 = vld [vmem:[%s4058_s3 + $0x318] sm:$0xff]  ;;  %v1747_v6 = vunpack.c.l.bf16 %v1504_v54 }
 0x128   :  { %2089 = vmatprep.subr.mxu0 %v1652_v10  ;;  %2158 = vmatprep.subr.mxu1 %v1850_v15  ;;  %v1843_v20 = vunpack.c.l.bf16 %v1552_v18  ;;  %v1844_v10 = vunpack.c.h.bf16 %v1552_v18 }
 0x129   :  { %2090 = vmatpush1.msra.mxu0 %v1651_v23  ;;  %v1516_v23 = vld [vmem:[%s4058_s3 + $0x1f8] sm:$0xff]  ;;  %2159 = vmatpush1.msra.mxu1 %v1849_v14 }
 0x12a   :  { %2091 = vmatprep.subr.mxu0 %v1646_v13  ;;  %v1778_v13 = vunpack.c.h.bf16 %v1519_v17  ;;  %2160 = vmatprep.subr.mxu1 %v1844_v10  ;;  %v1772_v32 = vunpack.c.h.bf16 %v1516_v23 }
 0x12b   :  { %2092 = vmatpush1.msra.mxu0 %v1645_v28  ;;  %v800_v28 = vsub.s32 1, %v2746_v35  ;;  %2161 = vmatpush1.msra.mxu1 %v1843_v20  ;;  %v1738_v20 = vunpack.c.h.bf16 %v3576_v7 }
 0x12c   :  { %2093 = vmatprep.subr.mxu0 %v1832_v31  ;;  %v1642_v31 = vld [vmem:[%s4058_s3 + $0x5e8] sm:$0xff]  ;;  %2162 = vmatprep.subr.mxu1 %v1838_v27 }
 0x12d   :  { %2094 = vmatpush2.msra.mxu0 %v1831_v33  ;;  %v2023_v33 = vunpack.c.l.bf16 %v1642_v31  ;;  %v2024_v38 = vunpack.c.h.bf16 %v1642_v31  ;;  %2163 = vmatpush1.msra.mxu1 %v1837_v26 }
 0x12e   :  { %2095 = vmatprep.subr.mxu0 %v1826_v24  ;;  %v1771_v24 = vunpack.c.l.bf16 %v1516_v23 }
 0x12f   :  { %2096 = vmatpush2.msra.mxu0 %v1825_v39  ;;  %v1766_v39 = vunpack.c.h.bf16 %v1513_v5  ;;  %2164 = vmatprep.subr.mxu1 %v2024_v38  ;;  %v1615_v38 = vld [vmem:[%s4058_s3 + $0x510] sm:$0xff] }
 0x130   :  { %2097 = vmatprep.subr.mxu0 %v1820_v42  ;;  %v801_v42 = vrot.slane %v3534_v25, %v800_v28  ;;  %2165 = vmatpush2.msra.mxu1 %v2023_v33 }
 0x131   :  { %2098 = vmatpush2.msra.mxu0 %v1819_v45  ;;  %v1636_v45 = vld [vmem:[%s4058_s3 + $0x5b8] sm:$0xff]  ;;  %2166 = vmatprep.subr.mxu1 %v2018_v41 }
 0x132   :  { %2099 = vmatprep.subr.mxu0 %v1814_v48  ;;  %v1760_v48 = vunpack.c.h.bf16 %v1510_v29  ;;  %v2011_v49 = vunpack.c.l.bf16 %v1636_v45  ;;  %v2012_v51 = vunpack.c.h.bf16 %v1636_v45  ;;  %2167 = vmatpush2.msra.mxu1 %v2017_v40  ;;  %v927_v59 = vadd.f32 %v926_v47, %v801_v42  ;;  %v1612_v29 = vld [vmem:[%s4058_s3 + $0x4f8] sm:$0xff]  ;;  %v1609_v40 = vld [vmem:[%s4058_s3 + $0x4e0] sm:$0xff]  ;;  %v1603_v47 = vld [vmem:[%s4058_s3 + $0x4b0] sm:$0xff] }
 0x133   :  { %2100 = vmatpush2.msra.mxu0 %v1813_v52  ;;  %v925_v52 = vadd.f32 %v924_v34, %v797_v36  ;;  %v1618_v34 = vld [vmem:[%s4058_s3 + $0x528] sm:$0xff]  ;;  %v1970_v36 = vunpack.c.h.bf16 %v1615_v38  ;;  %v1964_v37 = vunpack.c.h.bf16 %v1612_v29  ;;  %v1958_v41 = vunpack.c.h.bf16 %v1609_v40  ;;  %v1496_v45 = vld [vmem:[%s4058_s3 + $0x158] sm:$0xff] }
 0x134   :  { %2101 = vmatprep.subr.mxu0 %v1808_v55  ;;  %v1633_v55 = vld [vmem:[%s4058_s3 + $0x5a0] sm:$0xff]  ;;  %2168 = vmatprep.subr.mxu1 %v2012_v51  ;;  %v998_v15 = vadd.f32 %v997_v63, %v927_v59  ;;  %v1975_v33 = vunpack.c.l.bf16 %v1618_v34  ;;  %v1957_v42 = vunpack.c.l.bf16 %v1609_v40  ;;  %v1490_v59 = vld [vmem:[%s4058_s3 + $0x128] sm:$0xff] }
 0x135   :  { %2102 = vmatpush2.msra.mxu0 %v1807_v58  ;;  %v2005_v57 = vunpack.c.l.bf16 %v1633_v55  ;;  %v2006_v58 = vunpack.c.h.bf16 %v1633_v55  ;;  %2169 = vmatpush2.msra.mxu1 %v2011_v49  ;;  %v1737_v49 = vunpack.c.l.bf16 %v3576_v7  ;;  %v1493_v51 = vld [vmem:[%s4058_s3 + $0x140] sm:$0xff]  ;;  %v1732_v55 = vunpack.c.h.bf16 %v1496_v45 }
 0x136   :  { %2103 = vmatprep.subr.mxu0 %v1802_v61  ;;  %v1501_v61 = vld [vmem:[%s4058_s3 + $0x180] sm:$0xff]  ;;  %v1726_v62 = vunpack.c.h.bf16 %v1493_v51 }
 0x137   :  { %2104 = vmatpush2.msra.mxu0 %v1801_v1  ;;  %v1748_v1 = vunpack.c.h.bf16 %v1504_v54  ;;  %2170 = vmatprep.subr.mxu1 %v2006_v58  ;;  %v1742_v11 = vunpack.c.h.bf16 %v1501_v61  ;;  %v1741_v17 = vunpack.c.l.bf16 %v1501_v61  ;;  %v1731_v58 = vunpack.c.l.bf16 %v1496_v45  ;;  %v1597_v61 = vld [vmem:[%s4058_s3 + $0x480] sm:$0xff] }
 0x138   :  { %2105 = vmatprep.subr.mxu0 %v1796_v4  ;;  %v996_v4 = vadd.f32 %v995_v46, %v925_v52  ;;  %2171 = vmatpush2.msra.mxu1 %v2005_v57  ;;  %v1945_v52 = vunpack.c.l.bf16 %v1603_v47  ;;  %v1934_v63 = vunpack.c.h.bf16 %v1597_v61 }
 0x139   :  { %2106 = vmatpush2.msra.mxu0 %v1795_v8  ;;  %v1627_v8 = vld [vmem:[%s4058_s3 + $0x570] sm:$0xff]  ;;  %2172 = vmatprep.subr.mxu1 %v2000_v3  ;;  %v1933_v3 = vunpack.c.l.bf16 %v1597_v61 }
 0x13a   :  { %2107 = vmatprep.subr.mxu0 %v1790_v12  ;;  %v1993_v12 = vunpack.c.l.bf16 %v1627_v8  ;;  %v1994_v14 = vunpack.c.h.bf16 %v1627_v8  ;;  %2173 = vmatpush2.msra.mxu1 %v1999_v2  ;;  %v1487_v2 = vld [vmem:[%s4058_s3 + $0x110] sm:$0xff]  ;;  %v1719_v8 = vunpack.c.l.bf16 %v1490_v59 }
 0x13b   :  { %2108 = vmatpush2.msra.mxu0 %v1789_v16 }
 0x13c   :  { %2109 = vmatprep.subr.mxu0 %v1784_v19  ;;  %2174 = vmatprep.subr.mxu1 %v1994_v14  ;;  %v1481_v14 = vld [vmem:[%s4058_s3 + $0xe0] sm:$0xff] }
 0x13d   :  { %2110 = vmatpush2.msra.mxu0 %v1783_v22  ;;  %2175 = vmatpush2.msra.mxu1 %v1993_v12  ;;  %v1624_v22 = vld [vmem:[%s4058_s3 + $0x558] sm:$0xff]  ;;  %v1713_v12 = vunpack.c.l.bf16 %v1487_v2 }
 0x13e   :  { %2111 = vmatprep.subr.mxu0 %v1778_v13  ;;  %v1988_v13 = vunpack.c.h.bf16 %v1624_v22  ;;  %v1987_v27 = vunpack.c.l.bf16 %v1624_v22 }
 0x13f   :  { %2112 = vmatpush2.msra.mxu0 %v1777_v30  ;;  %v1621_v30 = vld [vmem:[%s4058_s3 + $0x540] sm:$0xff] }
 0x140   :  { %2113 = vmatprep.subr.mxu0 %v1772_v32  ;;  %2176 = vmatprep.subr.mxu1 %v1988_v13  ;;  %v1982_v5 = vunpack.c.h.bf16 %v1621_v30  ;;  %v1981_v31 = vunpack.c.l.bf16 %v1621_v30  ;;  %v1976_v32 = vunpack.c.h.bf16 %v1618_v34 }
 0x141   :  { %2114 = vmatpush2.msra.mxu0 %v1771_v24  ;;  %2177 = vmatpush2.msra.mxu1 %v1987_v27  ;;  %v1969_v24 = vunpack.c.l.bf16 %v1615_v38 }
 0x142   :  { %2115 = vmatprep.subr.mxu0 %v1766_v39  ;;  %2178 = vmatprep.subr.mxu1 %v1982_v5  ;;  %v1963_v39 = vunpack.c.l.bf16 %v1612_v29  ;;  %v1466_v5 = vld [vmem:[%s4058_s3 + $0x68] sm:$0xff] }
 0x143   :  { %2116 = vmatpush2.msra.mxu0 %v1765_v43  ;;  %2179 = vmatpush2.msra.mxu1 %v1981_v31  ;;  %v1606_v43 = vld [vmem:[%s4058_s3 + $0x4c8] sm:$0xff]  ;;  %v1671_v38 = vunpack.c.l.bf16 %v1466_v5 }
 0x144   :  { %2117 = vmatprep.subr.mxu0 %v1760_v48  ;;  %2180 = vmatprep.subr.mxu1 %v1976_v32  ;;  %v1952_v44 = vunpack.c.h.bf16 %v1606_v43  ;;  %v1951_v46 = vunpack.c.l.bf16 %v1606_v43  ;;  %v1946_v48 = vunpack.c.h.bf16 %v1603_v47  ;;  %v1463_v32 = vld [vmem:[%s4058_s3 + $0x50] sm:$0xff]  ;;  %v1544_v47 = vld [vmem:[%s4058_s3 + $0x2d8] sm:$0xff] }
 0x145   :  { %2118 = vmatpush2.msra.mxu0 %v1759_v53  ;;  %2181 = vmatpush2.msra.mxu1 %v1975_v33  ;;  %v1600_v53 = vld [vmem:[%s4058_s3 + $0x498] sm:$0xff]  ;;  %v1672_v33 = vunpack.c.h.bf16 %v1466_v5  ;;  %v1665_v29 = vunpack.c.l.bf16 %v1463_v32 }
 0x146   :  { %2119 = vmatprep.subr.mxu0 %v1754_v56  ;;  %2182 = vmatprep.subr.mxu1 %v1970_v36  ;;  %v1940_v56 = vunpack.c.h.bf16 %v1600_v53  ;;  %v1460_v36 = vld [vmem:[%s4058_s3 + $0x38] sm:$0xff] }
 0x147   :  { %v1066_v9 = vpop.f32.mrf.mxu0  ;;  %2120 = vmatpush2.msra.mxu0 %v1753_v60  ;;  %2183 = vmatpush2.msra.mxu1 %v1969_v24  ;;  %v1939_v60 = vunpack.c.l.bf16 %v1600_v53  ;;  %v1666_v24 = vunpack.c.h.bf16 %v1463_v32  ;;  %v1659_v40 = vunpack.c.l.bf16 %v1460_v36  ;;  %v1827_v53 = vunpack.c.l.bf16 %v1544_v47 }
 0x148   :  { %v1067_v16 = vadd.f32 %v1066_v9, %v996_v4  ;;  %2121 = vmatprep.subr.mxu0 %v1748_v1  ;;  %2184 = vmatprep.subr.mxu1 %v1964_v37  ;;  %v1725_v1 = vunpack.c.l.bf16 %v1493_v51  ;;  %v3635_v4 = vld [vmem:[%s4058_s3 + $0x470] sm:$0xff]  ;;  %v1484_v9 = vld [vmem:[%s4058_s3 + $0xf8] sm:$0xff]  ;;  %v1457_v37 = vld [vmem:[%s4058_s3 + $0x20] sm:$0xff] }
 0x149   :  { %v1137_v18 = vpop.f32.mrf.mxu1  ;;  %v1068_v19 = vpop.f32.mrf.mxu0  ;;  %2122 = vmatpush2.msra.mxu0 %v1747_v6  ;;  %2185 = vmatpush2.msra.mxu1 %v1963_v39  ;;  %v1720_v6 = vunpack.c.h.bf16 %v1490_v59  ;;  %v1930_v7 = vunpack.c.h.bf16 %v3635_v4  ;;  %v1660_v39 = vunpack.c.h.bf16 %v1460_v36  ;;  %v1653_v43 = vunpack.c.l.bf16 %v1457_v37  ;;  %v1541_v51 = vld [vmem:[%s4058_s3 + $0x2c0] sm:$0xff]  ;;  %v1535_v59 = vld [vmem:[%s4058_s3 + $0x290] sm:$0xff] }
 0x14a   :  { %v1069_v10 = vadd.f32 %v1068_v19, %v998_v15  ;;  %v1138_v23 = vadd.f32 %v1137_v18, %v1067_v16  ;;  %2123 = vmatprep.subr.mxu0 %v1742_v11  ;;  %2186 = vmatprep.subr.mxu1 %v1958_v41  ;;  %v1714_v11 = vunpack.c.h.bf16 %v1487_v2  ;;  %v1708_v15 = vunpack.c.h.bf16 %v1484_v9  ;;  %v1454_v41 = vld [vmem:[%s4058_s3 + $0x8] sm:$0xff]  ;;  %v1529_v2 = vld [vmem:[%s4058_s3 + $0x260] sm:$0xff] }
 0x14b   :  { %v1139_v0 = vpop.f32.mrf.mxu1  ;;  %2124 = vmatpush2.msra.mxu0 %v1741_v17  ;;  %2187 = vmatpush2.msra.mxu1 %v1957_v42  ;;  %v1707_v16 = vunpack.c.l.bf16 %v1484_v9  ;;  %v1478_v17 = vld [vmem:[%s4058_s3 + $0xc8] sm:$0xff]  ;;  %v1702_v18 = vunpack.c.h.bf16 %v1481_v14  ;;  %v1701_v19 = vunpack.c.l.bf16 %v1481_v14  ;;  %v1654_v42 = vunpack.c.h.bf16 %v1457_v37 }
 0x14c   :  { %v1140_v26 = vadd.f32 %v1139_v0, %v1069_v10  ;;  %2203 = vmatprep.subr.mxu0 %v1738_v20  ;;  %2188 = vmatprep.subr.mxu1 %v1952_v44  ;;  %v1475_v20 = vld [vmem:[%s4058_s3 + $0xb0] sm:$0xff]  ;;  %v1696_v10 = vunpack.c.h.bf16 %v1478_v17  ;;  %v1695_v22 = vunpack.c.l.bf16 %v1478_v17  ;;  %v1648_v45 = vunpack.c.h.bf16 %v1454_v41 }
 0x14d   :  { %2189 = vmatpush2.msra.mxu1 %v1951_v46  ;;  %v1690_v0 = vunpack.c.h.bf16 %v1475_v20  ;;  %v1689_v13 = vunpack.c.l.bf16 %v1475_v20  ;;  %v1547_v44 = vld [vmem:[%s4058_s3 + $0x2f0] sm:$0xff]  ;;  %v1647_v46 = vunpack.c.l.bf16 %v1454_v41  ;;  %v1797_v9 = vunpack.c.l.bf16 %v1529_v2 }
 0x14e   :  { %2534 = vtanh.f32 %v1140_v26  ;;  %2190 = vmatprep.subr.mxu1 %v1946_v48  ;;  %v1469_v26 = vld [vmem:[%s4058_s3 + $0x80] sm:$0xff]  ;;  %v1834_v48 = vunpack.c.h.bf16 %v1547_v44 }
 0x14f   :  { %2536 = vtanh.f32 %v1138_v23  ;;  %2191 = vmatpush2.msra.mxu1 %v1945_v52  ;;  %v1472_v23 = vld [vmem:[%s4058_s3 + $0x98] sm:$0xff]  ;;  %v1678_v31 = vunpack.c.h.bf16 %v1469_v26  ;;  %v1677_v34 = vunpack.c.l.bf16 %v1469_v26  ;;  %v1828_v52 = vunpack.c.h.bf16 %v1544_v47 }
 0x150   :  { %2192 = vmatprep.subr.mxu1 %v1940_v56  ;;  %v1684_v27 = vunpack.c.h.bf16 %v1472_v23  ;;  %v1683_v30 = vunpack.c.l.bf16 %v1472_v23  ;;  %v1822_v56 = vunpack.c.h.bf16 %v1541_v51 }
 0x151   :  { %2193 = vmatpush2.msra.mxu1 %v1939_v60 }
 0x152   :  { %2194 = vmatprep.subr.mxu1 %v1934_v63  ;;  %v1810_v63 = vunpack.c.h.bf16 %v1535_v59 }
 0x153   :  { %2195 = vmatpush2.msra.mxu1 %v1933_v3 }
 0x154   :  { %2274 = vmatprep.subr.mxu1 %v1930_v7  ;;  %v1526_v7 = vld [vmem:[%s4058_s3 + $0x248] sm:$0xff] }
 0x155   :  { %v1791_v14 = vunpack.c.l.bf16 %v1526_v7 }
 0x15b   :  { %v3616_v54 = vpop.eup %2534 }
 0x15c   :  { %v3618_v57 = vpop.eup %2536  ;;  %2125 = vmatprep.mubr.f32.mxu0 %v3616_v54 }
 0x15d   :  { %2126 = vmatmul.mubr.f32.vlgmr.msra.gmra.mxu0 %v3618_v57 }
 0x15e   :  { %2204 = vmatpush1.msra.mxu0 %v1737_v49  ;;  %2267 = vmatprep.mubr.f32.mxu0 %v3616_v54  ;;  %v1833_v49 = vunpack.c.l.bf16 %v1547_v44 }
 0x15f   :  { %2205 = vmatprep.subr.mxu0 %v1732_v55  ;;  %v1538_v55 = vld [vmem:[%s4058_s3 + $0x2a8] sm:$0xff] }
 0x160   :  { %2206 = vmatpush1.msra.mxu0 %v1731_v58  ;;  %v1821_v58 = vunpack.c.l.bf16 %v1541_v51  ;;  %v1816_v60 = vunpack.c.h.bf16 %v1538_v55  ;;  %v1815_v61 = vunpack.c.l.bf16 %v1538_v55 }
 0x161   :  { %2207 = vmatprep.subr.mxu0 %v1726_v62  ;;  %v1532_v62 = vld [vmem:[%s4058_s3 + $0x278] sm:$0xff] }
 0x162   :  { %2208 = vmatpush1.msra.mxu0 %v1725_v1  ;;  %v1809_v1 = vunpack.c.l.bf16 %v1535_v59  ;;  %v1804_v3 = vunpack.c.h.bf16 %v1532_v62 }
 0x163   :  { %2209 = vmatprep.subr.mxu0 %v1720_v6  ;;  %v1803_v6 = vunpack.c.l.bf16 %v1532_v62 }
 0x164   :  { %2210 = vmatpush1.msra.mxu0 %v1719_v8  ;;  %v1798_v8 = vunpack.c.h.bf16 %v1529_v2 }
 0x165   :  { %2211 = vmatprep.subr.mxu0 %v1714_v11  ;;  %v1523_v11 = vld [vmem:[%s4058_s3 + $0x230] sm:$0xff] }
 0x166   :  { %2212 = vmatpush1.msra.mxu0 %v1713_v12  ;;  %v1792_v12 = vunpack.c.h.bf16 %v1526_v7  ;;  %v1785_v17 = vunpack.c.l.bf16 %v1523_v11 }
 0x167   :  { %2213 = vmatprep.subr.mxu0 %v1708_v15  ;;  %v1520_v15 = vld [vmem:[%s4058_s3 + $0x218] sm:$0xff] }
 0x168   :  { %2214 = vmatpush1.msra.mxu0 %v1707_v16  ;;  %v1786_v16 = vunpack.c.h.bf16 %v1523_v11  ;;  %v1779_v20 = vunpack.c.l.bf16 %v1520_v15 }
 0x169   :  { %2215 = vmatprep.subr.mxu0 %v1702_v18  ;;  %v1517_v18 = vld [vmem:[%s4058_s3 + $0x200] sm:$0xff] }
 0x16a   :  { %2216 = vmatpush1.msra.mxu0 %v1701_v19  ;;  %v1780_v19 = vunpack.c.h.bf16 %v1520_v15  ;;  %v1773_v23 = vunpack.c.l.bf16 %v1517_v18 }
 0x16b   :  { %2217 = vmatprep.subr.mxu0 %v1696_v10  ;;  %v1514_v10 = vld [vmem:[%s4058_s3 + $0x1e8] sm:$0xff] }
 0x16c   :  { %2218 = vmatpush1.msra.mxu0 %v1695_v22  ;;  %v1774_v22 = vunpack.c.h.bf16 %v1517_v18  ;;  %v1767_v26 = vunpack.c.l.bf16 %v1514_v10 }
 0x16d   :  { %2219 = vmatprep.subr.mxu0 %v1690_v0  ;;  %v1511_v0 = vld [vmem:[%s4058_s3 + $0x1d0] sm:$0xff] }
 0x16e   :  { %2220 = vmatpush1.msra.mxu0 %v1689_v13  ;;  %v1768_v13 = vunpack.c.h.bf16 %v1514_v10  ;;  %v1761_v5 = vunpack.c.l.bf16 %v1511_v0 }
 0x16f   :  { %2221 = vmatprep.subr.mxu0 %v1684_v27  ;;  %v1508_v27 = vld [vmem:[%s4058_s3 + $0x1b8] sm:$0xff] }
 0x170   :  { %2222 = vmatpush1.msra.mxu0 %v1683_v30  ;;  %v1762_v30 = vunpack.c.h.bf16 %v1511_v0  ;;  %v1755_v32 = vunpack.c.l.bf16 %v1508_v27 }
 0x171   :  { %2223 = vmatprep.subr.mxu0 %v1678_v31  ;;  %v1505_v31 = vld [vmem:[%s4058_s3 + $0x1a0] sm:$0xff] }
 0x172   :  { %2224 = vmatpush1.msra.mxu0 %v1677_v34  ;;  %v1756_v34 = vunpack.c.h.bf16 %v1508_v27  ;;  %v1749_v36 = vunpack.c.l.bf16 %v1505_v31 }
 0x173   :  { %2225 = vmatprep.subr.mxu0 %v1672_v33  ;;  %v1502_v33 = vld [vmem:[%s4058_s3 + $0x188] sm:$0xff] }
 0x174   :  { %2226 = vmatpush1.msra.mxu0 %v1671_v38  ;;  %v1750_v38 = vunpack.c.h.bf16 %v1505_v31  ;;  %v1743_v37 = vunpack.c.l.bf16 %v1502_v33 }
 0x175   :  { %2227 = vmatprep.subr.mxu0 %v1666_v24  ;;  %v1500_v24 = vld [vmem:[%s4058_s3 + $0x178] sm:$0xff] }
 0x176   :  { %2228 = vmatpush1.msra.mxu0 %v1665_v29  ;;  %v1744_v29 = vunpack.c.h.bf16 %v1502_v33  ;;  %v1739_v41 = vunpack.c.l.bf16 %v1500_v24 }
 0x177   :  { %2229 = vmatprep.subr.mxu0 %v1660_v39  ;;  %v1497_v39 = vld [vmem:[%s4058_s3 + $0x160] sm:$0xff] }
 0x178   :  { %2230 = vmatpush1.msra.mxu0 %v1659_v40  ;;  %v1740_v40 = vunpack.c.h.bf16 %v1500_v24  ;;  %v1733_v44 = vunpack.c.l.bf16 %v1497_v39 }
 0x179   :  { %2231 = vmatprep.subr.mxu0 %v1654_v42  ;;  %v1494_v42 = vld [vmem:[%s4058_s3 + $0x148] sm:$0xff] }
 0x17a   :  { %2232 = vmatpush1.msra.mxu0 %v1653_v43  ;;  %v1734_v43 = vunpack.c.h.bf16 %v1497_v39  ;;  %v1727_v47 = vunpack.c.l.bf16 %v1494_v42 }
 0x17b   :  { %2233 = vmatprep.subr.mxu0 %v1648_v45  ;;  %v1491_v45 = vld [vmem:[%s4058_s3 + $0x130] sm:$0xff] }
 0x17c   :  { %2234 = vmatpush1.msra.mxu0 %v1647_v46  ;;  %v1728_v46 = vunpack.c.h.bf16 %v1494_v42  ;;  %v1721_v51 = vunpack.c.l.bf16 %v1491_v45 }
 0x17d   :  { %2235 = vmatprep.subr.mxu0 %v1834_v48  ;;  %v1488_v48 = vld [vmem:[%s4058_s3 + $0x118] sm:$0xff] }
 0x17e   :  { %2236 = vmatpush2.msra.mxu0 %v1833_v49  ;;  %v1722_v49 = vunpack.c.h.bf16 %v1491_v45  ;;  %v1715_v55 = vunpack.c.l.bf16 %v1488_v48  ;;  %v808_v45 = vsub.s32 3, %v2746_v35 }
 0x17f   :  { %2237 = vmatprep.subr.mxu0 %v1828_v52  ;;  %v1485_v52 = vld [vmem:[%s4058_s3 + $0x100] sm:$0xff] }
 0x180   :  { %2238 = vmatpush2.msra.mxu0 %v1827_v53  ;;  %v1716_v53 = vunpack.c.h.bf16 %v1488_v48  ;;  %v1709_v59 = vunpack.c.l.bf16 %v1485_v52 }
 0x181   :  { %2239 = vmatprep.subr.mxu0 %v1822_v56  ;;  %v1482_v56 = vld [vmem:[%s4058_s3 + $0xe8] sm:$0xff] }
 0x182   :  { %2240 = vmatpush2.msra.mxu0 %v1821_v58  ;;  %v1710_v58 = vunpack.c.h.bf16 %v1485_v52  ;;  %v1703_v62 = vunpack.c.l.bf16 %v1482_v56 }
 0x183   :  { %2241 = vmatprep.subr.mxu0 %v1816_v60  ;;  %v1479_v60 = vld [vmem:[%s4058_s3 + $0xd0] sm:$0xff] }
 0x184   :  { %2242 = vmatpush2.msra.mxu0 %v1815_v61  ;;  %v1704_v61 = vunpack.c.h.bf16 %v1482_v56  ;;  %v1697_v2 = vunpack.c.l.bf16 %v1479_v60  ;;  %v809_v56 = vrot.slane %v3534_v25, %v808_v45 }
 0x185   :  { %2243 = vmatprep.subr.mxu0 %v1810_v63  ;;  %v1476_v63 = vld [vmem:[%s4058_s3 + $0xb8] sm:$0xff] }
 0x186   :  { %2244 = vmatpush2.msra.mxu0 %v1809_v1  ;;  %v1698_v1 = vunpack.c.h.bf16 %v1479_v60  ;;  %v1691_v7 = vunpack.c.l.bf16 %v1476_v63 }
 0x187   :  { %2245 = vmatprep.subr.mxu0 %v1804_v3  ;;  %v1473_v3 = vld [vmem:[%s4058_s3 + $0xa0] sm:$0xff] }
 0x188   :  { %2246 = vmatpush2.msra.mxu0 %v1803_v6  ;;  %v1692_v6 = vunpack.c.h.bf16 %v1476_v63  ;;  %v1685_v11 = vunpack.c.l.bf16 %v1473_v3 }
 0x189   :  { %2247 = vmatprep.subr.mxu0 %v1798_v8  ;;  %v1470_v8 = vld [vmem:[%s4058_s3 + $0x88] sm:$0xff] }
 0x18a   :  { %2248 = vmatpush2.msra.mxu0 %v1797_v9  ;;  %v1686_v9 = vunpack.c.h.bf16 %v1473_v3  ;;  %v1679_v15 = vunpack.c.l.bf16 %v1470_v8  ;;  %v1521_v3 = vld [vmem:[%s4058_s3 + $0x220] sm:$0xff] }
 0x18b   :  { %2249 = vmatprep.subr.mxu0 %v1792_v12  ;;  %v1467_v12 = vld [vmem:[%s4058_s3 + $0x70] sm:$0xff] }
 0x18c   :  { %2250 = vmatpush2.msra.mxu0 %v1791_v14  ;;  %v1680_v14 = vunpack.c.h.bf16 %v1470_v8  ;;  %v1673_v18 = vunpack.c.l.bf16 %v1467_v12 }
 0x18d   :  { %2251 = vmatprep.subr.mxu0 %v1786_v16  ;;  %v1464_v16 = vld [vmem:[%s4058_s3 + $0x58] sm:$0xff] }
 0x18e   :  { %2252 = vmatpush2.msra.mxu0 %v1785_v17  ;;  %v1674_v17 = vunpack.c.h.bf16 %v1467_v12  ;;  %v1667_v10 = vunpack.c.l.bf16 %v1464_v16  ;;  %v1782_v12 = vunpack.c.h.bf16 %v1521_v3 }
 0x18f   :  { %2253 = vmatprep.subr.mxu0 %v1780_v19  ;;  %v1461_v19 = vld [vmem:[%s4058_s3 + $0x40] sm:$0xff] }
 0x190   :  { %2254 = vmatpush2.msra.mxu0 %v1779_v20  ;;  %v1668_v20 = vunpack.c.h.bf16 %v1464_v16  ;;  %v1661_v0 = vunpack.c.l.bf16 %v1461_v19  ;;  %v1781_v16 = vunpack.c.l.bf16 %v1521_v3 }
 0x191   :  { %2255 = vmatprep.subr.mxu0 %v1774_v22  ;;  %v1458_v22 = vld [vmem:[%s4058_s3 + $0x28] sm:$0xff] }
 0x192   :  { %2256 = vmatpush2.msra.mxu0 %v1773_v23  ;;  %v1662_v23 = vunpack.c.h.bf16 %v1461_v19  ;;  %v1655_v27 = vunpack.c.l.bf16 %v1458_v22 }
 0x193   :  { %2257 = vmatprep.subr.mxu0 %v1768_v13  ;;  %v1455_v13 = vld [vmem:[%s4058_s3 + $0x10] sm:$0xff] }
 0x194   :  { %2258 = vmatpush2.msra.mxu0 %v1767_v26  ;;  %v1656_v26 = vunpack.c.h.bf16 %v1458_v22  ;;  %v1649_v31 = vunpack.c.l.bf16 %v1455_v13 }
 0x195   :  { %2259 = vmatprep.subr.mxu0 %v1762_v30  ;;  %v1548_v30 = vld [vmem:[%s4058_s3 + $0x2f8] sm:$0xff] }
 0x196   :  { %2260 = vmatpush2.msra.mxu0 %v1761_v5  ;;  %v1650_v5 = vunpack.c.h.bf16 %v1455_v13  ;;  %v1835_v33 = vunpack.c.l.bf16 %v1548_v30 }
 0x197   :  { %2261 = vmatprep.subr.mxu0 %v1756_v34  ;;  %v1545_v34 = vld [vmem:[%s4058_s3 + $0x2e0] sm:$0xff] }
 0x198   :  { %2262 = vmatpush2.msra.mxu0 %v1755_v32  ;;  %v1836_v32 = vunpack.c.h.bf16 %v1548_v30  ;;  %v1829_v24 = vunpack.c.l.bf16 %v1545_v34 }
 0x199   :  { %2263 = vmatprep.subr.mxu0 %v1750_v38  ;;  %v1542_v38 = vld [vmem:[%s4058_s3 + $0x2c8] sm:$0xff] }
 0x19a   :  { %2264 = vmatpush2.msra.mxu0 %v1749_v36  ;;  %v1830_v36 = vunpack.c.h.bf16 %v1545_v34  ;;  %v1823_v39 = vunpack.c.l.bf16 %v1542_v38 }
 0x19b   :  { %2265 = vmatprep.subr.mxu0 %v1744_v29  ;;  %v1539_v29 = vld [vmem:[%s4058_s3 + $0x2b0] sm:$0xff] }
 0x19c   :  { %2266 = vmatpush2.msra.mxu0 %v1743_v37  ;;  %v1824_v37 = vunpack.c.h.bf16 %v1542_v38  ;;  %v1818_v42 = vunpack.c.h.bf16 %v1539_v29 }
 0x19d   :  { %2268 = vmatmul.mubr.f32.vlgmr.msra.gmra.mxu0 %v3618_v57  ;;  %2345 = vmatprep.subr.mxu0 %v1740_v40  ;;  %v1536_v40 = vld [vmem:[%s4058_s3 + $0x298] sm:$0xff] }
 0x19e   :  { %2346 = vmatpush1.msra.mxu0 %v1739_v41  ;;  %2409 = vmatprep.mubr.f32.mxu0 %v3616_v54  ;;  %v804_v41 = vsub.s32 2, %v2746_v35  ;;  %v1811_v48 = vunpack.c.l.bf16 %v1536_v40 }
 0x19f   :  { %2347 = vmatprep.subr.mxu0 %v1734_v43  ;;  %v1817_v43 = vunpack.c.l.bf16 %v1539_v29 }
 0x1a0   :  { %2348 = vmatpush1.msra.mxu0 %v1733_v44  ;;  %v1533_v44 = vld [vmem:[%s4058_s3 + $0x280] sm:$0xff] }
 0x1a1   :  { %2349 = vmatprep.subr.mxu0 %v1728_v46  ;;  %v1812_v46 = vunpack.c.h.bf16 %v1536_v40  ;;  %v1806_v52 = vunpack.c.h.bf16 %v1533_v44 }
 0x1a2   :  { %2350 = vmatpush1.msra.mxu0 %v1727_v47  ;;  %v1208_v47 = vpop.f32.mrf.mxu0 }
 0x1a3   :  { %2351 = vmatprep.subr.mxu0 %v1722_v49  ;;  %v1530_v49 = vld [vmem:[%s4058_s3 + $0x268] sm:$0xff] }
 0x1a4   :  { %2352 = vmatpush1.msra.mxu0 %v1721_v51  ;;  %v805_v51 = vrot.slane %v3534_v25, %v804_v41  ;;  %v1210_v60 = vpop.f32.mrf.mxu0 }
 0x1a5   :  { %2353 = vmatprep.subr.mxu0 %v1716_v53  ;;  %v1805_v53 = vunpack.c.l.bf16 %v1533_v44  ;;  %v1211_v25 = vadd.f32 %v1210_v60, %v809_v56  ;;  %v1434_v44 = vcombine.low %v3618_v57, %v3616_v54  ;;  %v1583_v56 = vld [vmem:[%s4058_s3 + $0x410] sm:$0xff] }
 0x1a6   :  { %2354 = vmatpush1.msra.mxu0 %v1715_v55  ;;  %v1527_v55 = vld [vmem:[%s4058_s3 + $0x250] sm:$0xff]  ;;  %v1209_v63 = vadd.f32 %v1208_v47, %v805_v51  ;;  %v1589_v47 = vld [vmem:[%s4058_s3 + $0x440] sm:$0xff] }
 0x1a7   :  { %2355 = vmatprep.subr.mxu0 %v1710_v58  ;;  %v1800_v58 = vunpack.c.h.bf16 %v1530_v49  ;;  %v1918_v54 = vunpack.c.h.bf16 %v1589_v47 }
 0x1a8   :  { %2356 = vmatpush1.msra.mxu0 %v1709_v59  ;;  %v1279_v59 = vpop.f32.mrf.mxu1 }
 0x1a9   :  { %2357 = vmatprep.subr.mxu0 %v1704_v61  ;;  %v1799_v61 = vunpack.c.l.bf16 %v1530_v49 }
 0x1aa   :  { %2358 = vmatpush1.msra.mxu0 %v1703_v62  ;;  %v1524_v62 = vld [vmem:[%s4058_s3 + $0x238] sm:$0xff] }
 0x1ab   :  { %2359 = vmatprep.subr.mxu0 %v1698_v1  ;;  %v1794_v1 = vunpack.c.h.bf16 %v1527_v55  ;;  %v1787_v8 = vunpack.c.l.bf16 %v1524_v62 }
 0x1ac   :  { %2360 = vmatpush1.msra.mxu0 %v1697_v2  ;;  %v1793_v2 = vunpack.c.l.bf16 %v1527_v55  ;;  %v1917_v55 = vunpack.c.l.bf16 %v1589_v47 }
 0x1ad   :  { %2361 = vmatprep.subr.mxu0 %v1692_v6  ;;  %v1788_v6 = vunpack.c.h.bf16 %v1524_v62  ;;  %v1906_v62 = vunpack.c.h.bf16 %v1583_v56 }
 0x1ae   :  { %2362 = vmatpush1.msra.mxu0 %v1691_v7  ;;  %v1281_v7 = vpop.f32.mrf.mxu1 }
 0x1af   :  { %2363 = vmatprep.subr.mxu0 %v1686_v9  ;;  %v1518_v9 = vld [vmem:[%s4058_s3 + $0x208] sm:$0xff] }
 0x1b0   :  { %2364 = vmatpush1.msra.mxu0 %v1685_v11  ;;  %v1280_v11 = vadd.f32 %v1279_v59, %v1209_v63  ;;  %v1775_v22 = vunpack.c.l.bf16 %v1518_v9  ;;  %v1905_v63 = vunpack.c.l.bf16 %v1583_v56 }
 0x1b1   :  { %2365 = vmatprep.subr.mxu0 %v1680_v14 }
 0x1b2   :  { %2366 = vmatpush1.msra.mxu0 %v1679_v15 }
 0x1b3   :  { %2367 = vmatprep.subr.mxu0 %v1674_v17  ;;  %v1515_v17 = vld [vmem:[%s4058_s3 + $0x1f0] sm:$0xff] }
 0x1b4   :  { %2368 = vmatpush1.msra.mxu0 %v1673_v18  ;;  %v1282_v18 = vadd.f32 %v1281_v7, %v1211_v25  ;;  %v1769_v30 = vunpack.c.l.bf16 %v1515_v17  ;;  %v1574_v25 = vld [vmem:[%s4058_s3 + $0x3c8] sm:$0xff] }
 0x1b5   :  { %2369 = vmatprep.subr.mxu0 %v1668_v20  ;;  %v1776_v20 = vunpack.c.h.bf16 %v1518_v9  ;;  %v1888_v9 = vunpack.c.h.bf16 %v1574_v25 }
 0x1b6   :  { %2370 = vmatpush1.msra.mxu0 %v1667_v10 }
 0x1b7   :  { %2371 = vmatprep.subr.mxu0 %v1662_v23  ;;  %v1512_v23 = vld [vmem:[%s4058_s3 + $0x1d8] sm:$0xff] }
 0x1b8   :  { %2372 = vmatpush1.msra.mxu0 %v1661_v0  ;;  %v1764_v34 = vunpack.c.h.bf16 %v1512_v23 }
 0x1b9   :  { %2373 = vmatprep.subr.mxu0 %v1656_v26  ;;  %v1770_v26 = vunpack.c.h.bf16 %v1515_v17 }
 0x1ba   :  { %2374 = vmatpush1.msra.mxu0 %v1655_v27 }
 0x1bb   :  { %2375 = vmatprep.subr.mxu0 %v1650_v5  ;;  %v1509_v5 = vld [vmem:[%s4058_s3 + $0x1c0] sm:$0xff] }
 0x1bc   :  { %2376 = vmatpush1.msra.mxu0 %v1649_v31  ;;  %v1758_v38 = vunpack.c.h.bf16 %v1509_v5 }
 0x1bd   :  { %2377 = vmatprep.subr.mxu0 %v1836_v32  ;;  %v1763_v32 = vunpack.c.l.bf16 %v1512_v23 }
 0x1be   :  { %2378 = vmatpush2.msra.mxu0 %v1835_v33  ;;  %v1506_v33 = vld [vmem:[%s4058_s3 + $0x1a8] sm:$0xff] }
 0x1bf   :  { %2379 = vmatprep.subr.mxu0 %v1830_v36  ;;  %v1757_v36 = vunpack.c.l.bf16 %v1509_v5  ;;  %v1752_v29 = vunpack.c.h.bf16 %v1506_v33 }
 0x1c0   :  { %2380 = vmatpush2.msra.mxu0 %v1829_v24  ;;  %v1503_v24 = vld [vmem:[%s4058_s3 + $0x190] sm:$0xff] }
 0x1c1   :  { %2381 = vmatprep.subr.mxu0 %v1824_v37  ;;  %v1751_v37 = vunpack.c.l.bf16 %v1506_v33  ;;  %v1745_v40 = vunpack.c.l.bf16 %v1503_v24 }
 0x1c2   :  { %2382 = vmatpush2.msra.mxu0 %v1823_v39  ;;  %v1746_v39 = vunpack.c.h.bf16 %v1503_v24 }
 0x1c3   :  { %2383 = vmatprep.subr.mxu0 %v1818_v42  ;;  %v1592_v42 = vld [vmem:[%s4058_s3 + $0x458] sm:$0xff] }
 0x1c4   :  { %2384 = vmatpush2.msra.mxu0 %v1817_v43  ;;  %v1924_v49 = vunpack.c.h.bf16 %v1592_v42 }
 0x1c5   :  { %2385 = vmatprep.subr.mxu0 %v1812_v46  ;;  %v1929_v46 = vunpack.c.l.bf16 %v3635_v4 }
 0x1c6   :  { %2386 = vmatpush2.msra.mxu0 %v1811_v48 }
 0x1c7   :  { %2387 = vmatprep.subr.mxu0 %v1806_v52  ;;  %v1923_v52 = vunpack.c.l.bf16 %v1592_v42 }
 0x1c8   :  { %2388 = vmatpush2.msra.mxu0 %v1805_v53  ;;  %v1586_v53 = vld [vmem:[%s4058_s3 + $0x428] sm:$0xff] }
 0x1c9   :  { %2389 = vmatprep.subr.mxu0 %v1800_v58  ;;  %v1912_v58 = vunpack.c.h.bf16 %v1586_v53  ;;  %v1911_v60 = vunpack.c.l.bf16 %v1586_v53 }
 0x1ca   :  { %2390 = vmatpush2.msra.mxu0 %v1799_v61  ;;  %v1580_v61 = vld [vmem:[%s4058_s3 + $0x3f8] sm:$0xff] }
 0x1cb   :  { %2391 = vmatprep.subr.mxu0 %v1794_v1  ;;  %v1350_v14 = vpop.f32.mrf.mxu0  ;;  %v1577_v1 = vld [vmem:[%s4058_s3 + $0x3e0] sm:$0xff]  ;;  %v1899_v3 = vunpack.c.l.bf16 %v1580_v61 }
 0x1cc   :  { %v1421_v15 = vpop.f32.mrf.mxu1  ;;  %2392 = vmatpush2.msra.mxu0 %v1793_v2  ;;  %v1351_v19 = vadd.f32 %v1350_v14, %v1280_v11  ;;  %v1900_v2 = vunpack.c.h.bf16 %v1580_v61  ;;  %v1893_v7 = vunpack.c.l.bf16 %v1577_v1  ;;  %v1887_v11 = vunpack.c.l.bf16 %v1574_v25 }
 0x1cd   :  { %2393 = vmatprep.subr.mxu0 %v1788_v6  ;;  %v1352_v10 = vpop.f32.mrf.mxu0  ;;  %v1894_v6 = vunpack.c.h.bf16 %v1577_v1 }
 0x1ce   :  { %2394 = vmatpush2.msra.mxu0 %v1787_v8  ;;  %v1422_v0 = vadd.f32 %v1421_v15, %v1351_v19  ;;  %v1353_v13 = vadd.f32 %v1352_v10, %v1282_v18  ;;  %v1423_v27 = vpop.f32.mrf.mxu1  ;;  %v1571_v8 = vld [vmem:[%s4058_s3 + $0x3b0] sm:$0xff]  ;;  %v1562_v19 = vld [vmem:[%s4058_s3 + $0x368] sm:$0xff] }
 0x1cf   :  { %2395 = vmatprep.subr.mxu0 %v1782_v12  ;;  %v1568_v12 = vld [vmem:[%s4058_s3 + $0x398] sm:$0xff]  ;;  %v1882_v14 = vunpack.c.h.bf16 %v1571_v8  ;;  %v1881_v15 = vunpack.c.l.bf16 %v1571_v8  ;;  %v1864_v23 = vunpack.c.h.bf16 %v1562_v19 }
 0x1d0   :  { %2396 = vmatpush2.msra.mxu0 %v1781_v16  ;;  %v1424_v31 = vadd.f32 %v1423_v27, %v1353_v13  ;;  %2538 = vtanh.f32 %v1422_v0  ;;  %v1565_v16 = vld [vmem:[%s4058_s3 + $0x380] sm:$0xff]  ;;  %v1876_v17 = vunpack.c.h.bf16 %v1568_v12  ;;  %v1875_v18 = vunpack.c.l.bf16 %v1568_v12  ;;  %v1556_v13 = vld [vmem:[%s4058_s3 + $0x338] sm:$0xff] }
 0x1d1   :  { %2397 = vmatprep.subr.mxu0 %v1776_v20  ;;  %v1870_v20 = vunpack.c.h.bf16 %v1565_v16  ;;  %v1869_v10 = vunpack.c.l.bf16 %v1565_v16  ;;  %v1863_v0 = vunpack.c.l.bf16 %v1562_v19  ;;  %v1852_v5 = vunpack.c.h.bf16 %v1556_v13 }
 0x1d2   :  { %2398 = vmatpush2.msra.mxu0 %v1775_v22  ;;  %2540 = vtanh.f32 %v1424_v31  ;;  %v1559_v22 = vld [vmem:[%s4058_s3 + $0x350] sm:$0xff]  ;;  %v1851_v31 = vunpack.c.l.bf16 %v1556_v13 }
 0x1d3   :  { %2399 = vmatprep.subr.mxu0 %v1770_v26  ;;  %v1858_v26 = vunpack.c.h.bf16 %v1559_v22  ;;  %v1857_v27 = vunpack.c.l.bf16 %v1559_v22 }
 0x1d4   :  { %2400 = vmatpush2.msra.mxu0 %v1769_v30  ;;  %v1553_v30 = vld [vmem:[%s4058_s3 + $0x320] sm:$0xff] }
 0x1d5   :  { %2401 = vmatprep.subr.mxu0 %v1764_v34  ;;  %v1550_v34 = vld [vmem:[%s4058_s3 + $0x308] sm:$0xff]  ;;  %v1845_v33 = vunpack.c.l.bf16 %v1553_v30 }
 0x1d6   :  { %2402 = vmatpush2.msra.mxu0 %v1763_v32  ;;  %v1846_v32 = vunpack.c.h.bf16 %v1553_v30  ;;  %v1839_v24 = vunpack.c.l.bf16 %v1550_v34 }
 0x1d7   :  { %2403 = vmatprep.subr.mxu0 %v1758_v38  ;;  %v1643_v38 = vld [vmem:[%s4058_s3 + $0x5f0] sm:$0xff] }
 0x1d8   :  { %2404 = vmatpush2.msra.mxu0 %v1757_v36  ;;  %v1840_v36 = vunpack.c.h.bf16 %v1550_v34 }
 0x1d9   :  { %2405 = vmatprep.subr.mxu0 %v1752_v29  ;;  %v1640_v29 = vld [vmem:[%s4058_s3 + $0x5d8] sm:$0xff] }
 0x1da   :  { %2406 = vmatpush2.msra.mxu0 %v1751_v37  ;;  %v2026_v37 = vunpack.c.h.bf16 %v1643_v38  ;;  %v2020_v42 = vunpack.c.h.bf16 %v1640_v29 }
 0x1db   :  { %2407 = vmatprep.subr.mxu0 %v1746_v39  ;;  %v2025_v39 = vunpack.c.l.bf16 %v1643_v38 }
 0x1dc   :  { %2408 = vmatpush2.msra.mxu0 %v1745_v40  ;;  %v1637_v40 = vld [vmem:[%s4058_s3 + $0x5c0] sm:$0xff] }
 0x1dd   :  { %2410 = vmatmul.mubr.f32.vlgmr.msra.gmra.mxu0 %v3618_v57  ;;  %v3829_v43 = vpop.eup %2538  ;;  %v1442_v57 = vrot.slane %v1434_v44, %v2764_v50  ;;  %v2019_v44 = vunpack.c.l.bf16 %v1640_v29  ;;  %v2014_v47 = vunpack.c.h.bf16 %v1637_v40 }
 0x1df   :  { %v3837_v48 = vpop.eup %2540 }
 0x1e0   :  { %v1435_v51 = vcombine.low %v3829_v43, %v3837_v48  ;;  %2196 = vmatprep.mubr.f32.mxu1 %v3837_v48 }
 0x1e1   :  { %2197 = vmatmul.mubr.f32.vlgmr.msra.gmra.mxu1 %v3829_v43 }
 0x1e2   :  { %v1449_v4 = vrot.slane %v1435_v51, %v2764_v50  ;;  %2275 = vmatpush1.msra.mxu1 %v1929_v46  ;;  %2338 = vmatprep.mubr.f32.mxu1 %v3837_v48  ;;  %v1634_v46 = vld [vmem:[%s4058_s3 + $0x5a8] sm:$0xff]  ;;  %v1631_v51 = vld [vmem:[%s4058_s3 + $0x590] sm:$0xff] }
 0x1e3   :  { %2276 = vmatprep.subr.mxu1 %v1924_v49  ;;  %v2013_v49 = vunpack.c.l.bf16 %v1637_v40  ;;  %v2007_v53 = vunpack.c.l.bf16 %v1634_v46 }
 0x1e4   :  { %v1450_v59 = vcombine.low %v1442_v57, %v1449_v4  ;;  %2277 = vmatpush1.msra.mxu1 %v1923_v52  ;;  %v2008_v52 = vunpack.c.h.bf16 %v1634_v46  ;;  %v2002_v57 = vunpack.c.h.bf16 %v1631_v51  ;;  %v2001_v4 = vunpack.c.l.bf16 %v1631_v51  ;;  %v1575_v51 = vld [vmem:[%s4058_s3 + $0x3d0] sm:$0xff] }
 0x1e5   :  { %2278 = vmatprep.subr.mxu1 %v1918_v54  ;;  %v1628_v54 = vld [vmem:[%s4058_s3 + $0x578] sm:$0xff] }
 0x1e6   :  { %1452 = vst [vmem:[%s4060_s6] sm:$0xff] %v1450_v59  ;;  %2279 = vmatpush1.msra.mxu1 %v1917_v55  ;;  %v1625_v55 = vld [vmem:[%s4058_s3 + $0x560] sm:$0xff]  ;;  %v1996_v56 = vunpack.c.h.bf16 %v1628_v54  ;;  %v1622_v59 = vld [vmem:[%s4058_s3 + $0x548] sm:$0xff] }
 0x1e7   :  { %2280 = vmatprep.subr.mxu1 %v1912_v58  ;;  %v1995_v58 = vunpack.c.l.bf16 %v1628_v54  ;;  %v1989_v61 = vunpack.c.l.bf16 %v1625_v55  ;;  %v1983_v1 = vunpack.c.l.bf16 %v1622_v59  ;;  %v1572_v54 = vld [vmem:[%s4058_s3 + $0x3b8] sm:$0xff] }
 0x1e8   :  { %2281 = vmatpush1.msra.mxu1 %v1911_v60  ;;  %v1990_v60 = vunpack.c.h.bf16 %v1625_v55  ;;  %v1569_v55 = vld [vmem:[%s4058_s3 + $0x3a0] sm:$0xff] }
 0x1e9   :  { %2282 = vmatprep.subr.mxu1 %v1906_v62  ;;  %v1619_v62 = vld [vmem:[%s4058_s3 + $0x530] sm:$0xff] }
 0x1ea   :  { %2283 = vmatpush1.msra.mxu1 %v1905_v63  ;;  %v1984_v63 = vunpack.c.h.bf16 %v1622_v59  ;;  %v1977_v25 = vunpack.c.l.bf16 %v1619_v62  ;;  %v1566_v59 = vld [vmem:[%s4058_s3 + $0x388] sm:$0xff] }
 0x1eb   :  { %2284 = vmatprep.subr.mxu1 %v1900_v2  ;;  %v1616_v2 = vld [vmem:[%s4058_s3 + $0x518] sm:$0xff] }
 0x1ec   :  { %2285 = vmatpush1.msra.mxu1 %v1899_v3  ;;  %v1978_v3 = vunpack.c.h.bf16 %v1619_v62  ;;  %v1971_v8 = vunpack.c.l.bf16 %v1616_v2  ;;  %v1563_v62 = vld [vmem:[%s4058_s3 + $0x370] sm:$0xff] }
 0x1ed   :  { %2286 = vmatprep.subr.mxu1 %v1894_v6  ;;  %v1613_v6 = vld [vmem:[%s4058_s3 + $0x500] sm:$0xff] }
 0x1ee   :  { %2287 = vmatpush1.msra.mxu1 %v1893_v7  ;;  %v1972_v7 = vunpack.c.h.bf16 %v1616_v2  ;;  %v1965_v12 = vunpack.c.l.bf16 %v1613_v6  ;;  %v1560_v2 = vld [vmem:[%s4058_s3 + $0x358] sm:$0xff] }
 0x1ef   :  { %2288 = vmatprep.subr.mxu1 %v1888_v9  ;;  %v1610_v9 = vld [vmem:[%s4058_s3 + $0x4e8] sm:$0xff] }
 0x1f0   :  { %2289 = vmatpush1.msra.mxu1 %v1887_v11  ;;  %v1966_v11 = vunpack.c.h.bf16 %v1613_v6  ;;  %v1959_v16 = vunpack.c.l.bf16 %v1610_v9  ;;  %v1557_v6 = vld [vmem:[%s4058_s3 + $0x340] sm:$0xff] }
 0x1f1   :  { %2290 = vmatprep.subr.mxu1 %v1882_v14  ;;  %v1607_v14 = vld [vmem:[%s4058_s3 + $0x4d0] sm:$0xff] }
 0x1f2   :  { %2291 = vmatpush1.msra.mxu1 %v1881_v15  ;;  %v1960_v15 = vunpack.c.h.bf16 %v1610_v9  ;;  %v1953_v19 = vunpack.c.l.bf16 %v1607_v14  ;;  %v1554_v9 = vld [vmem:[%s4058_s3 + $0x328] sm:$0xff] }
 0x1f3   :  { %2292 = vmatprep.subr.mxu1 %v1876_v17  ;;  %v1604_v17 = vld [vmem:[%s4058_s3 + $0x4b8] sm:$0xff] }
 0x1f4   :  { %2293 = vmatpush1.msra.mxu1 %v1875_v18  ;;  %v1954_v18 = vunpack.c.h.bf16 %v1607_v14  ;;  %v1947_v22 = vunpack.c.l.bf16 %v1604_v17  ;;  %v1551_v14 = vld [vmem:[%s4058_s3 + $0x310] sm:$0xff] }
 0x1f5   :  { %2294 = vmatprep.subr.mxu1 %v1870_v20  ;;  %v1601_v20 = vld [vmem:[%s4058_s3 + $0x4a0] sm:$0xff] }
 0x1f6   :  { %2295 = vmatpush1.msra.mxu1 %v1869_v10  ;;  %v1948_v10 = vunpack.c.h.bf16 %v1604_v17  ;;  %v1941_v13 = vunpack.c.l.bf16 %v1601_v20  ;;  %v1644_v17 = vld [vmem:[%s4058_s3 + $0x5f8] sm:$0xff] }
 0x1f7   :  { %2296 = vmatprep.subr.mxu1 %v1864_v23  ;;  %v1598_v23 = vld [vmem:[%s4058_s3 + $0x488] sm:$0xff] }
 0x1f8   :  { %2297 = vmatpush1.msra.mxu1 %v1863_v0  ;;  %v1942_v0 = vunpack.c.h.bf16 %v1601_v20  ;;  %v1935_v30 = vunpack.c.l.bf16 %v1598_v23  ;;  %v1641_v20 = vld [vmem:[%s4058_s3 + $0x5e0] sm:$0xff] }
 0x1f9   :  { %2298 = vmatprep.subr.mxu1 %v1858_v26  ;;  %v1596_v26 = vld [vmem:[%s4058_s3 + $0x478] sm:$0xff] }
 0x1fa   :  { %2299 = vmatpush1.msra.mxu1 %v1857_v27  ;;  %v1936_v27 = vunpack.c.h.bf16 %v1598_v23  ;;  %v1931_v34 = vunpack.c.l.bf16 %v1596_v26  ;;  %v1638_v23 = vld [vmem:[%s4058_s3 + $0x5c8] sm:$0xff] }
 0x1fb   :  { %2300 = vmatprep.subr.mxu1 %v1852_v5  ;;  %v1593_v5 = vld [vmem:[%s4058_s3 + $0x460] sm:$0xff] }
 0x1fc   :  { %2301 = vmatpush1.msra.mxu1 %v1851_v31  ;;  %v1932_v31 = vunpack.c.h.bf16 %v1596_v26  ;;  %v1925_v38 = vunpack.c.l.bf16 %v1593_v5  ;;  %v1635_v26 = vld [vmem:[%s4058_s3 + $0x5b0] sm:$0xff] }
 0x1fd   :  { %2302 = vmatprep.subr.mxu1 %v1846_v32  ;;  %v1590_v32 = vld [vmem:[%s4058_s3 + $0x448] sm:$0xff] }
 0x1fe   :  { %2303 = vmatpush1.msra.mxu1 %v1845_v33  ;;  %v1926_v33 = vunpack.c.h.bf16 %v1593_v5  ;;  %v1919_v29 = vunpack.c.l.bf16 %v1590_v32  ;;  %v1632_v5 = vld [vmem:[%s4058_s3 + $0x598] sm:$0xff] }
 0x1ff   :  { %2304 = vmatprep.subr.mxu1 %v1840_v36  ;;  %v1587_v36 = vld [vmem:[%s4058_s3 + $0x430] sm:$0xff] }
 0x200   :  { %2305 = vmatpush1.msra.mxu1 %v1839_v24  ;;  %v1920_v24 = vunpack.c.h.bf16 %v1590_v32  ;;  %v1913_v40 = vunpack.c.l.bf16 %v1587_v36  ;;  %v1629_v32 = vld [vmem:[%s4058_s3 + $0x580] sm:$0xff] }
 0x201   :  { %2306 = vmatprep.subr.mxu1 %v2026_v37  ;;  %v1584_v37 = vld [vmem:[%s4058_s3 + $0x418] sm:$0xff] }
 0x202   :  { %2307 = vmatpush2.msra.mxu1 %v2025_v39  ;;  %v1914_v39 = vunpack.c.h.bf16 %v1587_v36  ;;  %v1907_v46 = vunpack.c.l.bf16 %v1584_v37  ;;  %v1626_v36 = vld [vmem:[%s4058_s3 + $0x568] sm:$0xff] }
 0x203   :  { %2308 = vmatprep.subr.mxu1 %v2020_v42  ;;  %v1581_v42 = vld [vmem:[%s4058_s3 + $0x400] sm:$0xff] }
 0x204   :  { %2309 = vmatpush2.msra.mxu1 %v2019_v44  ;;  %v1908_v44 = vunpack.c.h.bf16 %v1584_v37  ;;  %v1623_v37 = vld [vmem:[%s4058_s3 + $0x550] sm:$0xff] }
 0x205   :  { %2310 = vmatprep.subr.mxu1 %v2014_v47  ;;  %v1902_v47 = vunpack.c.h.bf16 %v1581_v42 }
 0x206   :  { %2311 = vmatpush2.msra.mxu1 %v2013_v49  ;;  %v1901_v49 = vunpack.c.l.bf16 %v1581_v42  ;;  %v1620_v42 = vld [vmem:[%s4058_s3 + $0x538] sm:$0xff] }
 0x207   :  { %2312 = vmatprep.subr.mxu1 %v2008_v52 }
 0x208   :  { %2313 = vmatpush2.msra.mxu1 %v2007_v53 }
 0x209   :  { %2314 = vmatprep.subr.mxu1 %v2002_v57  ;;  %v1890_v57 = vunpack.c.h.bf16 %v1575_v51 }
 0x20a   :  { %2315 = vmatpush2.msra.mxu1 %v2001_v4  ;;  %v1889_v4 = vunpack.c.l.bf16 %v1575_v51  ;;  %v1614_v51 = vld [vmem:[%s4058_s3 + $0x508] sm:$0xff] }
 0x20b   :  { %2316 = vmatprep.subr.mxu1 %v1996_v56  ;;  %v1884_v56 = vunpack.c.h.bf16 %v1572_v54 }
 0x20c   :  { %2317 = vmatpush2.msra.mxu1 %v1995_v58  ;;  %v1883_v58 = vunpack.c.l.bf16 %v1572_v54  ;;  %v1611_v54 = vld [vmem:[%s4058_s3 + $0x4f0] sm:$0xff] }
 0x20d   :  { %2318 = vmatprep.subr.mxu1 %v1990_v60  ;;  %v1878_v60 = vunpack.c.h.bf16 %v1569_v55 }
 0x20e   :  { %2319 = vmatpush2.msra.mxu1 %v1989_v61  ;;  %v1877_v61 = vunpack.c.l.bf16 %v1569_v55  ;;  %v1608_v55 = vld [vmem:[%s4058_s3 + $0x4d8] sm:$0xff] }
 0x20f   :  { %2320 = vmatprep.subr.mxu1 %v1984_v63  ;;  %v1872_v63 = vunpack.c.h.bf16 %v1566_v59 }
 0x210   :  { %2321 = vmatpush2.msra.mxu1 %v1983_v1  ;;  %v1871_v1 = vunpack.c.l.bf16 %v1566_v59  ;;  %v1605_v59 = vld [vmem:[%s4058_s3 + $0x4c0] sm:$0xff] }
 0x211   :  { %2322 = vmatprep.subr.mxu1 %v1978_v3  ;;  %v1866_v3 = vunpack.c.h.bf16 %v1563_v62 }
 0x212   :  { %2323 = vmatpush2.msra.mxu1 %v1977_v25  ;;  %v1865_v25 = vunpack.c.l.bf16 %v1563_v62  ;;  %v1602_v62 = vld [vmem:[%s4058_s3 + $0x4a8] sm:$0xff] }
 0x213   :  { %2324 = vmatprep.subr.mxu1 %v1972_v7  ;;  %v1860_v7 = vunpack.c.h.bf16 %v1560_v2 }
 0x214   :  { %2325 = vmatpush2.msra.mxu1 %v1971_v8  ;;  %v1859_v8 = vunpack.c.l.bf16 %v1560_v2  ;;  %v1599_v2 = vld [vmem:[%s4058_s3 + $0x490] sm:$0xff] }
 0x215   :  { %2326 = vmatprep.subr.mxu1 %v1966_v11  ;;  %v1854_v11 = vunpack.c.h.bf16 %v1557_v6 }
 0x216   :  { %2327 = vmatpush2.msra.mxu1 %v1965_v12  ;;  %v1853_v12 = vunpack.c.l.bf16 %v1557_v6  ;;  %v1938_v6 = vunpack.c.h.bf16 %v1599_v2 }
 0x217   :  { %2328 = vmatprep.subr.mxu1 %v1960_v15  ;;  %v1848_v15 = vunpack.c.h.bf16 %v1554_v9 }
 0x218   :  { %2329 = vmatpush2.msra.mxu1 %v1959_v16  ;;  %v1847_v16 = vunpack.c.l.bf16 %v1554_v9  ;;  %v2029_v9 = vld [vmem:[%s4061_s4] sm:$0x3f] }
 0x219   :  { %2330 = vmatprep.subr.mxu1 %v1954_v18  ;;  %v1842_v18 = vunpack.c.h.bf16 %v1551_v14 }
 0x21a   :  { %2331 = vmatpush2.msra.mxu1 %v1953_v19  ;;  %v1841_v19 = vunpack.c.l.bf16 %v1551_v14  ;;  %v2038_v14 = vrot.slane %v2029_v9, %v800_v28 }
 0x21b   :  { %2332 = vmatprep.subr.mxu1 %v1948_v10  ;;  %v2028_v10 = vunpack.c.h.bf16 %v1644_v17 }
 0x21c   :  { %2333 = vmatpush2.msra.mxu1 %v1947_v22  ;;  %v2027_v22 = vunpack.c.l.bf16 %v1644_v17 }
 0x21d   :  { %2334 = vmatprep.subr.mxu1 %v1942_v0  ;;  %v2022_v0 = vunpack.c.h.bf16 %v1641_v20 }
 0x21e   :  { %2335 = vmatpush2.msra.mxu1 %v1941_v13  ;;  %v2021_v13 = vunpack.c.l.bf16 %v1641_v20 }
 0x21f   :  { %2336 = vmatprep.subr.mxu1 %v1936_v27  ;;  %v2016_v27 = vunpack.c.h.bf16 %v1638_v23 }
 0x220   :  { %2337 = vmatpush2.msra.mxu1 %v1935_v30  ;;  %v2015_v30 = vunpack.c.l.bf16 %v1638_v23 }
 0x221   :  { %2339 = vmatmul.mubr.f32.vlgmr.msra.gmra.mxu1 %v3829_v43  ;;  %2416 = vmatprep.subr.mxu1 %v1932_v31  ;;  %v2010_v31 = vunpack.c.h.bf16 %v1635_v26 }
 0x222   :  { %2417 = vmatpush1.msra.mxu1 %v1931_v34  ;;  %2480 = vmatprep.mubr.f32.mxu1 %v3837_v48  ;;  %v1578_v48 = vld [vmem:[%s4058_s3 + $0x3e8] sm:$0xff]  ;;  %v2009_v34 = vunpack.c.l.bf16 %v1635_v26 }
 0x223   :  { %2418 = vmatprep.subr.mxu1 %v1926_v33  ;;  %v1896_v52 = vunpack.c.h.bf16 %v1578_v48  ;;  %v1895_v53 = vunpack.c.l.bf16 %v1578_v48  ;;  %v2004_v33 = vunpack.c.h.bf16 %v1632_v5  ;;  %v1617_v48 = vld [vmem:[%s4058_s3 + $0x520] sm:$0xff] }
 0x224   :  { %2419 = vmatpush1.msra.mxu1 %v1925_v38  ;;  %v2003_v38 = vunpack.c.l.bf16 %v1632_v5 }
 0x225   :  { %2420 = vmatprep.subr.mxu1 %v1920_v24  ;;  %v1998_v24 = vunpack.c.h.bf16 %v1629_v32 }
 0x226   :  { %2421 = vmatpush1.msra.mxu1 %v1919_v29  ;;  %v1997_v29 = vunpack.c.l.bf16 %v1629_v32  ;;  %v2053_v32 = vsub.s32 5, %v2746_v35 }
 0x227   :  { %2422 = vmatprep.subr.mxu1 %v1914_v39  ;;  %v1992_v39 = vunpack.c.h.bf16 %v1626_v36 }
 0x228   :  { %2423 = vmatpush1.msra.mxu1 %v1913_v40  ;;  %v1991_v40 = vunpack.c.l.bf16 %v1626_v36  ;;  %v2054_v36 = vrot.slane %v2029_v9, %v2053_v32 }
 0x229   :  { %2424 = vmatprep.subr.mxu1 %v1908_v44  ;;  %v1986_v44 = vunpack.c.h.bf16 %v1623_v37 }
 0x22a   :  { %2425 = vmatpush1.msra.mxu1 %v1907_v46  ;;  %v1985_v46 = vunpack.c.l.bf16 %v1623_v37 }
 0x22b   :  { %2426 = vmatprep.subr.mxu1 %v1902_v47  ;;  %v1980_v47 = vunpack.c.h.bf16 %v1620_v42 }
 0x22c   :  { %2427 = vmatpush1.msra.mxu1 %v1901_v49  ;;  %v1979_v49 = vunpack.c.l.bf16 %v1620_v42 }
 0x22d   :  { %2428 = vmatprep.subr.mxu1 %v1896_v52  ;;  %v1974_v52 = vunpack.c.h.bf16 %v1617_v48 }
 0x22e   :  { %2429 = vmatpush1.msra.mxu1 %v1895_v53  ;;  %v1973_v53 = vunpack.c.l.bf16 %v1617_v48 }
 0x22f   :  { %2430 = vmatprep.subr.mxu1 %v1890_v57  ;;  %v1968_v57 = vunpack.c.h.bf16 %v1614_v51 }
 0x230   :  { %2431 = vmatpush1.msra.mxu1 %v1889_v4  ;;  %v1967_v4 = vunpack.c.l.bf16 %v1614_v51 }
 0x231   :  { %2432 = vmatprep.subr.mxu1 %v1884_v56  ;;  %v1962_v56 = vunpack.c.h.bf16 %v1611_v54 }
 0x232   :  { %2433 = vmatpush1.msra.mxu1 %v1883_v58  ;;  %v1961_v58 = vunpack.c.l.bf16 %v1611_v54 }
 0x233   :  { %2434 = vmatprep.subr.mxu1 %v1878_v60  ;;  %v1956_v60 = vunpack.c.h.bf16 %v1608_v55 }
 0x234   :  { %2435 = vmatpush1.msra.mxu1 %v1877_v61  ;;  %v1955_v61 = vunpack.c.l.bf16 %v1608_v55 }
 0x235   :  { %2436 = vmatprep.subr.mxu1 %v1872_v63  ;;  %v1950_v63 = vunpack.c.h.bf16 %v1605_v59 }
 0x236   :  { %2437 = vmatpush1.msra.mxu1 %v1871_v1  ;;  %v1949_v1 = vunpack.c.l.bf16 %v1605_v59 }
 0x237   :  { %2438 = vmatprep.subr.mxu1 %v1866_v3  ;;  %v1944_v3 = vunpack.c.h.bf16 %v1602_v62 }
 0x238   :  { %2439 = vmatpush1.msra.mxu1 %v1865_v25  ;;  %v1943_v25 = vunpack.c.l.bf16 %v1602_v62 }
 0x239   :  { %2440 = vmatprep.subr.mxu1 %v1860_v7  ;;  %v1937_v7 = vunpack.c.l.bf16 %v1599_v2 }
 0x23a   :  { %2441 = vmatpush1.msra.mxu1 %v1859_v8  ;;  %v2127_v8 = vpop.f32.mrf.mxu0 }
 0x23b   :  { %2442 = vmatprep.subr.mxu1 %v1854_v11 }
 0x23c   :  { %2443 = vmatpush1.msra.mxu1 %v1853_v12  ;;  %v2129_v11 = vpop.f32.mrf.mxu0 }
 0x23d   :  { %2444 = vmatprep.subr.mxu1 %v1848_v15 }
 0x23e   :  { %2445 = vmatpush1.msra.mxu1 %v1847_v16  ;;  %v2034_v16 = vrot.slane %v2029_v9, %v796_v21 }
 0x23f   :  { %2446 = vmatprep.subr.mxu1 %v1842_v18  ;;  %v2130_v18 = vadd.f32 %v2129_v11, %v2038_v14 }
 0x240   :  { %2447 = vmatpush1.msra.mxu1 %v1841_v19  ;;  %v2042_v19 = vrot.slane %v2029_v9, %v804_v41 }
 0x241   :  { %2448 = vmatprep.subr.mxu1 %v2028_v10  ;;  %v2128_v10 = vadd.f32 %v2127_v8, %v2034_v16 }
 0x242   :  { %2449 = vmatpush2.msra.mxu1 %v2027_v22 }
 0x243   :  { %2450 = vmatprep.subr.mxu1 %v2022_v0 }
 0x244   :  { %2451 = vmatpush2.msra.mxu1 %v2021_v13 }
 0x245   :  { %2452 = vmatprep.subr.mxu1 %v2016_v27 }
 0x246   :  { %2453 = vmatpush2.msra.mxu1 %v2015_v30 }
 0x247   :  { %2454 = vmatprep.subr.mxu1 %v2010_v31 }
 0x248   :  { %2455 = vmatpush2.msra.mxu1 %v2009_v34 }
 0x249   :  { %2456 = vmatprep.subr.mxu1 %v2004_v33 }
 0x24a   :  { %2457 = vmatpush2.msra.mxu1 %v2003_v38 }
 0x24b   :  { %2458 = vmatprep.subr.mxu1 %v1998_v24 }
 0x24c   :  { %2459 = vmatpush2.msra.mxu1 %v1997_v29 }
 0x24d   :  { %2460 = vmatprep.subr.mxu1 %v1992_v39 }
 0x24e   :  { %2461 = vmatpush2.msra.mxu1 %v1991_v40 }
 0x24f   :  { %2462 = vmatprep.subr.mxu1 %v1986_v44 }
 0x250   :  { %2463 = vmatpush2.msra.mxu1 %v1985_v46 }
 0x251   :  { %2464 = vmatprep.subr.mxu1 %v1980_v47 }
 0x252   :  { %2465 = vmatpush2.msra.mxu1 %v1979_v49 }
 0x253   :  { %2466 = vmatprep.subr.mxu1 %v1974_v52 }
 0x254   :  { %2467 = vmatpush2.msra.mxu1 %v1973_v53 }
 0x255   :  { %2468 = vmatprep.subr.mxu1 %v1968_v57 }
 0x256   :  { %2469 = vmatpush2.msra.mxu1 %v1967_v4 }
 0x257   :  { %2470 = vmatprep.subr.mxu1 %v1962_v56 }
 0x258   :  { %2471 = vmatpush2.msra.mxu1 %v1961_v58 }
 0x259   :  { %2472 = vmatprep.subr.mxu1 %v1956_v60 }
 0x25a   :  { %2473 = vmatpush2.msra.mxu1 %v1955_v61 }
 0x25b   :  { %2474 = vmatprep.subr.mxu1 %v1950_v63 }
 0x25c   :  { %2475 = vmatpush2.msra.mxu1 %v1949_v1 }
 0x25d   :  { %2476 = vmatprep.subr.mxu1 %v1944_v3  ;;  %v2269_v15 = vpop.f32.mrf.mxu0 }
 0x25e   :  { %2477 = vmatpush2.msra.mxu1 %v1943_v25  ;;  %v2270_v0 = vadd.f32 %v2269_v15, %v2042_v19 }
 0x25f   :  { %2478 = vmatprep.subr.mxu1 %v1938_v6  ;;  %v2271_v20 = vpop.f32.mrf.mxu0 }
 0x260   :  { %2479 = vmatpush2.msra.mxu1 %v1937_v7 }
 0x261   :  { %2481 = vmatmul.mubr.f32.vlgmr.msra.gmra.mxu1 %v3829_v43  ;;  %v2046_v43 = vrot.slane %v2029_v9, %v808_v45  ;;  %v2049_v45 = vsub.s32 4, %v2746_v35 }
 0x263   :  { %v2272_v13 = vadd.f32 %v2271_v20, %v2046_v43  ;;  %v2050_v38 = vrot.slane %v2029_v9, %v2049_v45 }
 0x29d   :  { %v2411_v33 = vpop.f32.mrf.mxu0 }
 0x29e   :  { %v2412_v37 = vadd.f32 %v2411_v33, %v2050_v38 }
 0x29f   :  { %v2413_v24 = vpop.f32.mrf.mxu0 }
 0x2a0   :  { %v2414_v39 = vadd.f32 %v2413_v24, %v2054_v36 }
 0x2a1   :  { %v2198_v12 = vpop.f32.mrf.mxu1 }
 0x2a2   :  { %v2199_v26 = vadd.f32 %v2198_v12, %v2128_v10 }
 0x2a3   :  { %v2200_v17 = vpop.f32.mrf.mxu1 }
 0x2a4   :  { %v2201_v22 = vadd.f32 %v2200_v17, %v2130_v18 }
 0x2a6   :  { %v2493_v27 = vcombine.low %v2199_v26, %v2201_v22 }
 0x2a8   :  { %v2501_v31 = vrot.slane %v2493_v27, %v2764_v50 }
 0x2e1   :  { %v2340_v23 = vpop.f32.mrf.mxu1 }
 0x2e2   :  { %v2341_v30 = vadd.f32 %v2340_v23, %v2270_v0 }
 0x2e3   :  { %v2342_v28 = vpop.f32.mrf.mxu1 }
 0x2e4   :  { %v2343_v5 = vadd.f32 %v2342_v28, %v2272_v13 }
 0x2e6   :  { %v2494_v21 = vcombine.low %v2341_v30, %v2343_v5 }
 0x2e8   :  { %v2508_v34 = vrot.slane %v2494_v21, %v2764_v50 }
 0x2ea   :  { %v2509_v41 = vcombine.low %v2501_v31, %v2508_v34 }
 0x2ec   :  { %2520 = vst [vmem:[%s4062_s5] sm:$0xff] %v2509_v41 }
 0x321   :  { %v2482_v29 = vpop.f32.mrf.mxu1 }
 0x322   :  { %v2483_v42 = vadd.f32 %v2482_v29, %v2412_v37 }
 0x323   :  { %v2484_v40 = vpop.f32.mrf.mxu1 }
 0x324   :  { %v2485_v44 = vadd.f32 %v2484_v40, %v2414_v39 }
 0x326   :  { %v2510_v50 = vcombine.low %v2483_v42, %v2485_v44 }
 0x328   :  { %2530 = vst.sshfl [vmem:[%s4062_s5 + $0x8] sm:$0x33 pattern:$0x76325410] %v2510_v50 }

</bundles_post_ra>
